<compile_context>
chip_gen: v7x
topology: tpu7x:2x2x1
jax: 0.10.0
libtpu: 0.0.40
codegen_flags: <defaults>
</compile_context>

<pallas_src>
import math
from functools import partial

import jax
import jax.numpy as jnp
from jax import lax
from jax.experimental import pallas as pl
from jax.experimental.pallas import tpu as pltpu


# ----------------------------- numerics helpers -----------------------------
def _sigmoid(x):
    return 1.0 / (1.0 + jnp.exp(-x))


def _softplus(x):
    return jnp.where(x > 20.0, x, jnp.log(1.0 + jnp.exp(jnp.minimum(x, 20.0))))


# --------------------------------- kernel -----------------------------------
def mamba_bidir_kernel(x_ref, w_in_ref, conv_w_ref, conv_b_ref, w_xproj_ref,
                       w_dt_ref, b_dt_ref, a_neg_ref, d_vec_ref, w_out_ref,
                       out_ref,
                       h_ref, halo_ref, xp_ref, dt_buf, dtu_buf, u_buf, z_buf,
                       bc_buf, y_buf,
                       *, LT, DIN, NS, R, K, MM_DTYPE):
    d = pl.program_id(0)          # 0 = forward, 1 = reverse direction
    l = pl.program_id(2)          # L-tile index (in processing order)
    is_fwd = d == 0
    is_rev = jnp.logical_not(is_fwd)

    # reset carried state at the start of each (direction, batch) sequence
    @pl.when(l == 0)
    def _():
        h_ref[...] = jnp.zeros_like(h_ref)
        halo_ref[...] = jnp.zeros_like(halo_ref)

    x = x_ref[0]                                                    # (LT, D)

    # fused in_proj -> [x branch | gate branch z]  (bf16 MXU, f32 accumulate)
    xz = jnp.dot(x.astype(MM_DTYPE), w_in_ref[...],
                 preferred_element_type=jnp.float32)                # (LT, 2*DIN)
    xc = xz[:, :DIN]
    z_buf[...] = xz[:, DIN:]            # park gate in VMEM until after the scan

    # depthwise causal conv.  Reverse-direction taps were pre-reversed in the
    # wrapper, so both directions use cw[k]; only the halo side differs.
    @pl.when(is_fwd)
    def _():
        xp_ref[0:K - 1, :] = halo_ref[...]
        xp_ref[K - 1:LT + K - 1, :] = xc
        halo_ref[...] = xc[LT - (K - 1):LT, :]       # trailing rows -> next tile

    @pl.when(is_rev)
    def _():
        xp_ref[0:LT, :] = xc
        xp_ref[LT:LT + K - 1, :] = halo_ref[...]
        halo_ref[...] = xc[0:K - 1, :]               # leading rows -> next tile

    cw = conv_w_ref[0]                                              # (K, DIN)
    conv = jnp.broadcast_to(conv_b_ref[0], (LT, DIN))
    for k in range(K):
        conv = conv + xp_ref[k:k + LT, :] * cw[k:k + 1, :]
    u = conv * _sigmoid(conv)                                       # SiLU, (LT, DIN)
    u_buf[...] = u

    # fused x_proj -> [dt_low | B | C], then dt_proj (+bias) -> softplus
    xdbc = jnp.dot(u.astype(MM_DTYPE), w_xproj_ref[0],
                   preferred_element_type=jnp.float32)              # (LT, R+2NS)
    dt = jnp.dot(xdbc[:, :R].astype(MM_DTYPE), w_dt_ref[0],
                 preferred_element_type=jnp.float32)                # (LT, DIN)
    dt = _softplus(dt + b_dt_ref[0])

    dt_buf[...] = dt
    dtu_buf[...] = dt * u
    bc_buf[...] = xdbc[:, R:]                                       # (LT, 2*NS)

    a_neg = a_neg_ref[0]                             # (NS, DIN), = -exp(A_log)

    # identity mask: turns a (1, 2NS) row into a (2NS, 1) column with a
    # broadcast-multiply + lane reduce.  These turns are hoisted out of the
    # serial recurrence (8 per block, independent of h) so the XLU work runs at
    # throughput off the critical chain.
    ri = lax.broadcasted_iota(jnp.int32, (2 * NS, 2 * NS), 0)
    ci = lax.broadcasted_iota(jnp.int32, (2 * NS, 2 * NS), 1)
    eye2 = (ri == ci).astype(jnp.float32)

    NB = LT // 8

    def scan_body(forward):
        # Selective scan over this tile in sublane-aligned blocks of 8 rows.
        # h lives in vregs (fori_loop carry); h_ref only hands it across tiles.
        def run():
            def blk_body(blk, h):
                if forward:
                    base = pl.multiple_of(blk * 8, 8)
                else:
                    base = pl.multiple_of(LT - 8 - blk * 8, 8)
                dt_blk = dt_buf[pl.ds(base, 8), :]                  # (8, DIN)
                dtu_blk = dtu_buf[pl.ds(base, 8), :]                # (8, DIN)
                bc_blk = bc_buf[pl.ds(base, 8), :]                  # (8, 2NS)
                # hoisted, off the recurrence chain: column turns, EUP exps,
                # B*dt*u outer products for all 8 steps of this block.
                cols = [jnp.sum(eye2 * bc_blk[s:s + 1, :], axis=1, keepdims=True)
                        for s in range(8)]                          # (2NS, 1) each
                dA = [jnp.exp(dt_blk[s:s + 1, :] * a_neg) for s in range(8)]
                dBu = [cols[s][:NS, :] * dtu_blk[s:s + 1, :] for s in range(8)]
                y_rows = [None] * 8
                order = range(8) if forward else range(7, -1, -1)
                for s in order:                                     # serial chain
                    h = dA[s] * h + dBu[s]                          # (NS, DIN)
                    y_rows[s] = jnp.sum(h * cols[s][NS:, :], axis=0,
                                        keepdims=True)              # (1, DIN)
                y_buf[pl.ds(base, 8), :] = jnp.concatenate(y_rows, axis=0)
                return h

            h_fin = lax.fori_loop(0, NB, blk_body, h_ref[...])
            h_ref[...] = h_fin
        return run

    pl.when(is_fwd)(scan_body(True))
    pl.when(is_rev)(scan_body(False))

    # D skip connection, SiLU(z) gate, out_proj
    u2 = u_buf[...]
    z2 = z_buf[...]
    y = y_buf[...] + u2 * d_vec_ref[0]
    y = y * (z2 * _sigmoid(z2))
    out = jnp.dot(y.astype(MM_DTYPE), w_out_ref[...],
                  preferred_element_type=jnp.float32)               # (LT, D)
    out_ref[0, 0] = out.astype(out_ref.dtype)


# --------------------------------- wrapper ----------------------------------
def bimamba_pallas(x, p_fwd, p_rev, strategy="add", lt=None,
                   matmul_dtype=jnp.bfloat16):
    """BiMambaWrapper.forward.  x: (B, L, D) float32."""
    B, L, D = x.shape
    DIN = p_fwd["w_in_x"].shape[1]
    NS = p_fwd["w_xb"].shape[1]
    R = p_fwd["w_xdt"].shape[1]
    K = p_fwd["conv_w"].shape[0]

    if lt is None:
        lt = L if L <= 128 else 128
    assert L % lt == 0 and lt % 8 == 0, "L tile must divide L and be 8-aligned"
    nl = L // lt
    nl1 = nl - 1

    f32 = jnp.float32
    mm = matmul_dtype

    # --- pack parameters: shared (weight-tied) + per-direction stacks ---
    # matmul weights stored in the MXU dtype (bf16 by default); elementwise
    # parameters (conv taps/bias, dt bias, -exp(A), D) stay f32.
    w_in = jnp.concatenate([p_fwd["w_in_x"], p_fwd["w_in_z"]], axis=1).astype(mm)
    w_out = p_fwd["w_out"].astype(mm)

    def stack(name, dtype=f32):
        return jnp.stack([p_fwd[name], p_rev[name]], axis=0).astype(dtype)

    # reverse direction's conv taps pre-reversed -> kernel tap loop is
    # direction-independent (anti-causal conv on un-flipped data).
    conv_w = jnp.stack([p_fwd["conv_w"],
                        jnp.flip(p_rev["conv_w"], axis=0)], axis=0).astype(f32)
    conv_b = stack("conv_b")
    w_xproj = jnp.stack(
        [jnp.concatenate([p_fwd["w_xdt"], p_fwd["w_xb"], p_fwd["w_xc"]], axis=1),
         jnp.concatenate([p_rev["w_xdt"], p_rev["w_xb"], p_rev["w_xc"]], axis=1)],
        axis=0).astype(mm)                                          # (2, DIN, R+2NS)
    w_dt = stack("w_dt", mm)                                        # (2, R, DIN)
    b_dt = stack("b_dt")
    # -exp(A_log) hoisted out of the kernel (was an EUP exp every tile).
    a_neg = jnp.stack([-jnp.exp(p_fwd["a_logT"]),
                       -jnp.exp(p_rev["a_logT"])], axis=0).astype(f32)
    d_vec = stack("d_vec")

    kernel = partial(mamba_bidir_kernel, LT=lt, DIN=DIN, NS=NS, R=R, K=K,
                     MM_DTYPE=mm)

    # reverse direction walks L tiles right-to-left (no HBM flips)
    def x_map(d, b, l):
        return (b, l + d * (nl1 - 2 * l), 0)

    def o_map(d, b, l):
        return (d, b, l + d * (nl1 - 2 * l), 0)

    def dir_map(d, b, l):
        return (d, 0, 0)

    def shared_map(d, b, l):
        return (0, 0)

    in_specs = [
        pl.BlockSpec((1, lt, D), x_map),                      # x
        pl.BlockSpec(w_in.shape, shared_map),                 # fused in_proj (tied)
        pl.BlockSpec((1,) + conv_w.shape[1:], dir_map),       # conv taps (pre-reversed for rev)
        pl.BlockSpec((1,) + conv_b.shape[1:], dir_map),
        pl.BlockSpec((1,) + w_xproj.shape[1:], dir_map),      # fused x_proj
        pl.BlockSpec((1,) + w_dt.shape[1:], dir_map),
        pl.BlockSpec((1,) + b_dt.shape[1:], dir_map),
        pl.BlockSpec((1,) + a_neg.shape[1:], dir_map),        # -exp(A_log)
        pl.BlockSpec((1,) + d_vec.shape[1:], dir_map),
        pl.BlockSpec(w_out.shape, shared_map),                # out_proj (tied)
    ]
    out_specs = pl.BlockSpec((1, 1, lt, D), o_map)

    scratch = [
        pltpu.VMEM((NS, DIN), f32),            # SSM state h (cross-tile handoff)
        pltpu.VMEM((K - 1, DIN), f32),         # causal-conv halo
        pltpu.VMEM((lt + K - 1, DIN), f32),    # conv window (halo + tile)
        pltpu.VMEM((lt, DIN), f32),            # dt
        pltpu.VMEM((lt, DIN), f32),            # dt * u
        pltpu.VMEM((lt, DIN), f32),            # u (kept out of vregs across scan)
        pltpu.VMEM((lt, DIN), f32),            # z gate
        pltpu.VMEM((lt, 2 * NS), f32),         # [B | C] rows
        pltpu.VMEM((lt, DIN), f32),            # y accumulator
    ]

    # --- VMEM budget derived from the actual working set (not hardcoded) ---
    mm_bytes = jnp.dtype(mm).itemsize
    weight_bytes = ((w_in.size + w_out.size + w_xproj.size + w_dt.size) * mm_bytes
                    + (conv_w.size + conv_b.size + b_dt.size + a_neg.size
                       + d_vec.size) * 4)
    block_bytes = 2 * 2 * (lt * D * x.dtype.itemsize)   # x + out tiles, dbl-buffered
    scratch_bytes = 4 * (NS * DIN + (K - 1) * DIN + (lt + K - 1) * DIN
                         + 5 * lt * DIN + lt * 2 * NS)
    vmem_bytes = int(1.5 * (2 * weight_bytes + block_bytes + scratch_bytes)) + (4 << 20)
    vmem_bytes = max(16 << 20, min(vmem_bytes, 100 << 20))

    # advisory cost estimate (high transcendental count from the scan)
    steps = 2 * B * L
    flops = int(steps * (2 * D * 2 * DIN + 2 * K * DIN + 2 * DIN * (R + 2 * NS)
                         + 2 * R * DIN + 8 * NS * DIN + 10 * DIN + 2 * DIN * D))
    transc = int(steps * DIN * (NS + 4))
    bytes_acc = int(x.dtype.itemsize * (2 * x.size + 2 * B * L * D) + weight_bytes)

    out_pair = pl.pallas_call(
        kernel,
        out_shape=jax.ShapeDtypeStruct((2, B, L, D), x.dtype),
        grid_spec=pltpu.PrefetchScalarGridSpec(
            num_scalar_prefetch=0,
            grid=(2, B, nl),
            in_specs=in_specs,
            out_specs=out_specs,
            scratch_shapes=scratch,
        ),
        compiler_params=pltpu.CompilerParams(
            # NOTE: h/halo scratch is carried across the trailing L-tile axis, so
            # that axis MUST stay "arbitrary" and each (direction, batch) pair's
            # L tiles must run contiguously on one core (guaranteed with leading
            # parallel axes + trailing arbitrary axis).  Do not reorder the grid.
            dimension_semantics=("parallel", "parallel", "arbitrary"),
            vmem_limit_bytes=vmem_bytes,
        ),
        cost_estimate=pl.CostEstimate(flops=flops, transcendentals=transc,
                                      bytes_accessed=bytes_acc),
    )(x, w_in, conv_w, conv_b, w_xproj, w_dt, b_dt, a_neg, d_vec, w_out)

    if strategy == "add":
        return out_pair[0] + out_pair[1]
    elif strategy == "ew_multiply":
        return out_pair[0] * out_pair[1]
    raise NotImplementedError(strategy)


# ------------------------- pure-JAX reference (check) ------------------------
def mamba_ref(x, p):
    B, L, D = x.shape
    DIN = p["w_in_x"].shape[1]
    NS = p["w_xb"].shape[1]
    K = p["conv_w"].shape[0]

    def single(xb):
        xc = xb @ p["w_in_x"]
        z = xb @ p["w_in_z"]
        xp_ = jnp.concatenate([jnp.zeros((K - 1, DIN), xc.dtype), xc], axis=0)
        conv = p["conv_b"][0]
        for k in range(K):
            conv = conv + xp_[k:k + L] * p["conv_w"][k]
        u = conv * _sigmoid(conv)
        dt = _softplus((u @ p["w_xdt"]) @ p["w_dt"] + p["b_dt"][0])
        Bm = u @ p["w_xb"]
        Cm = u @ p["w_xc"]
        A = -jnp.exp(p["a_logT"])  # (NS, DIN)

        def step(h, inp):
            dt_t, B_t, C_t, u_t = inp
            dA = jnp.exp(dt_t[None, :] * A)
            dBu = dt_t[None, :] * u_t[None, :] * B_t[:, None]
            h = dA * h + dBu
            y_t = (h * C_t[:, None]).sum(0)
            return h, y_t

        _, ys = jax.lax.scan(step, jnp.zeros((NS, DIN), jnp.float32), (dt, Bm, Cm, u))
        y = ys + u * p["d_vec"][0]
        y = y * (z * _sigmoid(z))
        return y @ p["w_out"]

    return jax.vmap(single)(x)


def bimamba_ref(x, p_fwd, p_rev):
    out = mamba_ref(x, p_fwd)
    out_rev = jnp.flip(mamba_ref(jnp.flip(x, axis=1), p_rev), axis=1)
    return out + out_rev


# ------------------------------- parameter init ------------------------------
def init_bimamba_params(key, d_model, d_state=16, d_conv=4, expand=2):
    d_inner = expand * d_model
    dt_rank = math.ceil(d_model / 16)
    ks = jax.random.split(key, 20)

    def nrm(k, shape, scale):
        return (scale * jax.random.normal(k, shape)).astype(jnp.float32)

    shared = {
        "w_in_x": nrm(ks[0], (d_model, d_inner), 0.1),
        "w_in_z": nrm(ks[1], (d_model, d_inner), 0.1),
        "w_out": nrm(ks[2], (d_inner, d_model), 0.1),
    }

    a_logT = jnp.broadcast_to(
        jnp.log(jnp.arange(1, d_state + 1, dtype=jnp.float32))[:, None],
        (d_state, d_inner),
    )

    def direction(off):
        return {
            "conv_w": nrm(ks[off + 0], (d_conv, d_inner), 0.3),
            "conv_b": nrm(ks[off + 1], (1, d_inner), 0.1),
            "w_xdt": nrm(ks[off + 2], (d_inner, dt_rank), 0.1),
            "w_xb": nrm(ks[off + 3], (d_inner, d_state), 0.1),
            "w_xc": nrm(ks[off + 4], (d_inner, d_state), 0.1),
            "w_dt": nrm(ks[off + 5], (dt_rank, d_inner), 0.3),
            "b_dt": nrm(ks[off + 6], (1, d_inner), 0.1),
            "a_logT": a_logT,
            "d_vec": jnp.ones((1, d_inner), jnp.float32),
        }

    # in_proj / out_proj weight-tied (same arrays shared by both directions)
    p_fwd = dict(shared, **direction(3))
    p_rev = dict(shared, **direction(10))
    return p_fwd, p_rev


# ----------------------------------- main ------------------------------------
if __name__ == "__main__":
    B, L, D_MODEL = 2, 32, 32
    key = jax.random.PRNGKey(0)
    k_x, k_p = jax.random.split(key)
    x = jax.random.normal(k_x, (B, L, D_MODEL), jnp.float32)
    p_fwd, p_rev = init_bimamba_params(k_p, D_MODEL)

    # lt=16 -> two L tiles per sequence and two 8-row scan blocks per tile:
    # exercises the conv-halo / SSM-state carry across tiles AND the blocked,
    # vreg-carried scan, for both directions.
    out = bimamba_pallas(x, p_fwd, p_rev, strategy="add", lt=16)
    out = jax.block_until_ready(out)

    assert out.shape == x.shape and out.dtype == x.dtype

    ref = jax.block_until_ready(bimamba_ref(x, p_fwd, p_rev))
    max_err = float(jnp.max(jnp.abs(out - ref)))
    scale = max(1.0, float(jnp.max(jnp.abs(ref))))
    # default matmul_dtype is bf16 (MXU-native, f32 accumulation); reference is
    # pure f32, so allow bf16-level tolerance.
    assert max_err < 6e-2 * scale, f"mismatch vs reference: max abs err {max_err}"

    print("KERNEL_OK")
</pallas_src>

<mosaic_0001>
module attributes {stable_mosaic.version = 11 : i64} {
  func.func @mamba_bidir_kernel(%arg0: i32, %arg1: i32, %arg2: i32, %arg3: memref<1x16x32xf32, #tpu.memory_space<vmem>>, %arg4: memref<32x128xbf16, #tpu.memory_space<vmem>>, %arg5: memref<1x4x64xf32, #tpu.memory_space<vmem>>, %arg6: memref<1x1x64xf32, #tpu.memory_space<vmem>>, %arg7: memref<1x64x34xbf16, #tpu.memory_space<vmem>>, %arg8: memref<1x2x64xbf16, #tpu.memory_space<vmem>>, %arg9: memref<1x1x64xf32, #tpu.memory_space<vmem>>, %arg10: memref<1x16x64xf32, #tpu.memory_space<vmem>>, %arg11: memref<1x1x64xf32, #tpu.memory_space<vmem>>, %arg12: memref<64x32xbf16, #tpu.memory_space<vmem>>, %arg13: memref<1x1x16x32xf32, #tpu.memory_space<vmem>>, %arg14: memref<16x64xf32, #tpu.memory_space<vmem>>, %arg15: memref<3x64xf32, #tpu.memory_space<vmem>>, %arg16: memref<19x64xf32, #tpu.memory_space<vmem>>, %arg17: memref<16x64xf32, #tpu.memory_space<vmem>>, %arg18: memref<16x64xf32, #tpu.memory_space<vmem>>, %arg19: memref<16x64xf32, #tpu.memory_space<vmem>>, %arg20: memref<16x64xf32, #tpu.memory_space<vmem>>, %arg21: memref<16x32xf32, #tpu.memory_space<vmem>>, %arg22: memref<16x64xf32, #tpu.memory_space<vmem>>) attributes {dimension_semantics = [#tpu.dimension_semantics<parallel>, #tpu.dimension_semantics<parallel>, #tpu.dimension_semantics<arbitrary>], iteration_bounds = array<i64: 2, 2, 2>, scalar_prefetch = 0 : i64, scratch_operands = 9 : i64, tpu.core_type = #tpu.core_type<tc>, window_params = [{transform_indices = @transform_0, window_bounds = array<i64: 1, 16, 32>}, {pipeline_mode = #tpu.pipeline_mode<synchronous>, transform_indices = @transform_1, window_bounds = array<i64: 32, 128>}, {transform_indices = @transform_2, window_bounds = array<i64: 1, 4, 64>}, {transform_indices = @transform_3, window_bounds = array<i64: 1, 1, 64>}, {transform_indices = @transform_4, window_bounds = array<i64: 1, 64, 34>}, {transform_indices = @transform_5, window_bounds = array<i64: 1, 2, 64>}, {transform_indices = @transform_6, window_bounds = array<i64: 1, 1, 64>}, {transform_indices = @transform_7, window_bounds = array<i64: 1, 16, 64>}, {transform_indices = @transform_8, window_bounds = array<i64: 1, 1, 64>}, {pipeline_mode = #tpu.pipeline_mode<synchronous>, transform_indices = @transform_9, window_bounds = array<i64: 64, 32>}, {transform_indices = @transform_10, window_bounds = array<i64: 1, 1, 16, 32>}]} {
    %c0_i32 = arith.constant 0 : i32
    %0 = arith.cmpi eq, %arg0, %c0_i32 : i32
    %true = arith.constant true
    %1 = arith.xori %0, %true : i1
    %c0_i32_0 = arith.constant 0 : i32
    %2 = arith.cmpi eq, %arg2, %c0_i32_0 : i32
    %3 = arith.extui %2 : i1 to i32
    %c0_i32_1 = arith.constant 0 : i32
    %4 = arith.cmpi ne, %3, %c0_i32_1 : i32
    scf.if %4 {
      %cst_70 = arith.constant 0.000000e+00 : f32
      %113 = vector.broadcast %cst_70 : f32 to vector<16x64xf32>
      %c0_71 = arith.constant 0 : index
      %c0_72 = arith.constant 0 : index
      %114 = vector.load %arg14[%c0_71, %c0_72] : memref<16x64xf32, #tpu.memory_space<vmem>>, vector<16x64xf32>
      tpu.vector_store %arg14[%c0_71, %c0_72], %113 {strides = array<i32>} : memref<16x64xf32, #tpu.memory_space<vmem>>, vector<16x64xf32>,
      %cst_73 = arith.constant 0.000000e+00 : f32
      %115 = vector.broadcast %cst_73 : f32 to vector<3x64xf32>
      %c0_74 = arith.constant 0 : index
      %c0_75 = arith.constant 0 : index
      %116 = vector.load %arg15[%c0_74, %c0_75] : memref<3x64xf32, #tpu.memory_space<vmem>>, vector<3x64xf32>
      tpu.vector_store %arg15[%c0_74, %c0_75], %115 {strides = array<i32>} : memref<3x64xf32, #tpu.memory_space<vmem>>, vector<3x64xf32>,
    } else {
    }
    %c0 = arith.constant 0 : index
    %c0_2 = arith.constant 0 : index
    %c0_3 = arith.constant 0 : index
    %5 = vector.load %arg3[%c0, %c0_2, %c0_3] : memref<1x16x32xf32, #tpu.memory_space<vmem>>, vector<1x16x32xf32>
    %6 = vector.shape_cast %5 : vector<1x16x32xf32> to vector<16x32xf32>
    %7 = arith.truncf %6 : vector<16x32xf32> to vector<16x32xbf16>
    %c0_4 = arith.constant 0 : index
    %c0_5 = arith.constant 0 : index
    %8 = vector.load %arg4[%c0_4, %c0_5] : memref<32x128xbf16, #tpu.memory_space<vmem>>, vector<32x128xbf16>
    %cst = arith.constant dense<0.000000e+00> : vector<16x128xf32>
    %9 = tpu.matmul %7, %8, %cst {dimension_numbers = #tpu.dot_dimension_numbers<[1], [0], [0], [1], [0, 0, 1, 1], [], []>} : vector<16x32xbf16>, vector<32x128xbf16>, vector<16x128xf32> -> vector<16x128xf32>
    %10 = vector.extract_strided_slice %9 {offsets = [0, 0], sizes = [16, 64], strides = [1, 1]} : vector<16x128xf32> to vector<16x64xf32>
    %11 = vector.extract_strided_slice %9 {offsets = [0, 64], sizes = [16, 64], strides = [1, 1]} : vector<16x128xf32> to vector<16x64xf32>
    %c0_6 = arith.constant 0 : index
    %c0_7 = arith.constant 0 : index
    %12 = vector.load %arg20[%c0_6, %c0_7] : memref<16x64xf32, #tpu.memory_space<vmem>>, vector<16x64xf32>
    tpu.vector_store %arg20[%c0_6, %c0_7], %11 {strides = array<i32>} : memref<16x64xf32, #tpu.memory_space<vmem>>, vector<16x64xf32>,
    %13 = arith.extui %0 : i1 to i32
    %c0_i32_8 = arith.constant 0 : i32
    %14 = arith.cmpi ne, %13, %c0_i32_8 : i32
    scf.if %14 {
      %c0_70 = arith.constant 0 : index
      %c0_71 = arith.constant 0 : index
      %113 = vector.load %arg15[%c0_70, %c0_71] : memref<3x64xf32, #tpu.memory_space<vmem>>, vector<3x64xf32>
      %c0_72 = arith.constant 0 : index
      %c0_73 = arith.constant 0 : index
      %114 = vector.load %arg16[%c0_72, %c0_73] : memref<19x64xf32, #tpu.memory_space<vmem>>, vector<3x64xf32>
      tpu.vector_store %arg16[%c0_72, %c0_73], %113 {strides = array<i32>} : memref<19x64xf32, #tpu.memory_space<vmem>>, vector<3x64xf32>,
      %c3_74 = arith.constant 3 : index
      %c0_75 = arith.constant 0 : index
      %115 = vector.load %arg16[%c3_74, %c0_75] : memref<19x64xf32, #tpu.memory_space<vmem>>, vector<16x64xf32>
      tpu.vector_store %arg16[%c3_74, %c0_75], %10 {strides = array<i32>} : memref<19x64xf32, #tpu.memory_space<vmem>>, vector<16x64xf32>,
      %116 = vector.extract_strided_slice %10 {offsets = [13, 0], sizes = [3, 64], strides = [1, 1]} : vector<16x64xf32> to vector<3x64xf32>
      %c0_76 = arith.constant 0 : index
      %c0_77 = arith.constant 0 : index
      %117 = vector.load %arg15[%c0_76, %c0_77] : memref<3x64xf32, #tpu.memory_space<vmem>>, vector<3x64xf32>
      tpu.vector_store %arg15[%c0_76, %c0_77], %116 {strides = array<i32>} : memref<3x64xf32, #tpu.memory_space<vmem>>, vector<3x64xf32>,
    } else {
    }
    %15 = arith.extui %1 : i1 to i32
    %c0_i32_9 = arith.constant 0 : i32
    %16 = arith.cmpi ne, %15, %c0_i32_9 : i32
    scf.if %16 {
      %c0_70 = arith.constant 0 : index
      %c0_71 = arith.constant 0 : index
      %113 = vector.load %arg16[%c0_70, %c0_71] : memref<19x64xf32, #tpu.memory_space<vmem>>, vector<16x64xf32>
      tpu.vector_store %arg16[%c0_70, %c0_71], %10 {strides = array<i32>} : memref<19x64xf32, #tpu.memory_space<vmem>>, vector<16x64xf32>,
      %c0_72 = arith.constant 0 : index
      %c0_73 = arith.constant 0 : index
      %114 = vector.load %arg15[%c0_72, %c0_73] : memref<3x64xf32, #tpu.memory_space<vmem>>, vector<3x64xf32>
      %c16 = arith.constant 16 : index
      %c0_74 = arith.constant 0 : index
      %115 = vector.load %arg16[%c16, %c0_74] : memref<19x64xf32, #tpu.memory_space<vmem>>, vector<3x64xf32>
      tpu.vector_store %arg16[%c16, %c0_74], %114 {strides = array<i32>} : memref<19x64xf32, #tpu.memory_space<vmem>>, vector<3x64xf32>,
      %116 = vector.extract_strided_slice %10 {offsets = [0, 0], sizes = [3, 64], strides = [1, 1]} : vector<16x64xf32> to vector<3x64xf32>
      %c0_75 = arith.constant 0 : index
      %c0_76 = arith.constant 0 : index
      %117 = vector.load %arg15[%c0_75, %c0_76] : memref<3x64xf32, #tpu.memory_space<vmem>>, vector<3x64xf32>
      tpu.vector_store %arg15[%c0_75, %c0_76], %116 {strides = array<i32>} : memref<3x64xf32, #tpu.memory_space<vmem>>, vector<3x64xf32>,
    } else {
    }
    %c0_10 = arith.constant 0 : index
    %c0_11 = arith.constant 0 : index
    %c0_12 = arith.constant 0 : index
    %17 = vector.load %arg5[%c0_10, %c0_11, %c0_12] : memref<1x4x64xf32, #tpu.memory_space<vmem>>, vector<1x4x64xf32>
    %18 = vector.shape_cast %17 : vector<1x4x64xf32> to vector<4x64xf32>
    %c0_13 = arith.constant 0 : index
    %c0_14 = arith.constant 0 : index
    %c0_15 = arith.constant 0 : index
    %19 = vector.load %arg6[%c0_13, %c0_14, %c0_15] : memref<1x1x64xf32, #tpu.memory_space<vmem>>, vector<1x1x64xf32>
    %20 = vector.shape_cast %19 : vector<1x1x64xf32> to vector<1x64xf32>
    %21 = vector.shape_cast %20 : vector<1x64xf32> to vector<1x64xf32>
    %22 = vector.broadcast %21 : vector<1x64xf32> to vector<16x64xf32>
    %c0_16 = arith.constant 0 : index
    %c0_17 = arith.constant 0 : index
    %23 = vector.load %arg16[%c0_16, %c0_17] : memref<19x64xf32, #tpu.memory_space<vmem>>, vector<16x64xf32>
    %24 = vector.extract_strided_slice %18 {offsets = [0, 0], sizes = [1, 64], strides = [1, 1]} : vector<4x64xf32> to vector<1x64xf32>
    %25 = vector.broadcast %24 : vector<1x64xf32> to vector<16x64xf32>
    %26 = arith.mulf %23, %25 : vector<16x64xf32>
    %27 = arith.addf %22, %26 : vector<16x64xf32>
    %c1 = arith.constant 1 : index
    %c0_18 = arith.constant 0 : index
    %28 = vector.load %arg16[%c1, %c0_18] : memref<19x64xf32, #tpu.memory_space<vmem>>, vector<16x64xf32>
    %29 = vector.extract_strided_slice %18 {offsets = [1, 0], sizes = [1, 64], strides = [1, 1]} : vector<4x64xf32> to vector<1x64xf32>
    %30 = vector.broadcast %29 : vector<1x64xf32> to vector<16x64xf32>
    %31 = arith.mulf %28, %30 : vector<16x64xf32>
    %32 = arith.addf %27, %31 : vector<16x64xf32>
    %c2 = arith.constant 2 : index
    %c0_19 = arith.constant 0 : index
    %33 = vector.load %arg16[%c2, %c0_19] : memref<19x64xf32, #tpu.memory_space<vmem>>, vector<16x64xf32>
    %34 = vector.extract_strided_slice %18 {offsets = [2, 0], sizes = [1, 64], strides = [1, 1]} : vector<4x64xf32> to vector<1x64xf32>
    %35 = vector.broadcast %34 : vector<1x64xf32> to vector<16x64xf32>
    %36 = arith.mulf %33, %35 : vector<16x64xf32>
    %37 = arith.addf %32, %36 : vector<16x64xf32>
    %c3 = arith.constant 3 : index
    %c0_20 = arith.constant 0 : index
    %38 = vector.load %arg16[%c3, %c0_20] : memref<19x64xf32, #tpu.memory_space<vmem>>, vector<16x64xf32>
    %39 = vector.extract_strided_slice %18 {offsets = [3, 0], sizes = [1, 64], strides = [1, 1]} : vector<4x64xf32> to vector<1x64xf32>
    %40 = vector.broadcast %39 : vector<1x64xf32> to vector<16x64xf32>
    %41 = arith.mulf %38, %40 : vector<16x64xf32>
    %42 = arith.addf %37, %41 : vector<16x64xf32>
    %cst_21 = arith.constant 0.000000e+00 : f32
    %43 = vector.broadcast %cst_21 : f32 to vector<16x64xf32>
    %44 = arith.subf %43, %42 : vector<16x64xf32>
    %45 = math.exp %44 : vector<16x64xf32>
    %cst_22 = arith.constant 1.000000e+00 : f32
    %46 = vector.broadcast %cst_22 : f32 to vector<16x64xf32>
    %47 = arith.addf %46, %45 : vector<16x64xf32>
    %cst_23 = arith.constant 1.000000e+00 : f32
    %48 = vector.broadcast %cst_23 : f32 to vector<16x64xf32>
    %49 = arith.divf %48, %47 : vector<16x64xf32>
    %50 = arith.mulf %42, %49 : vector<16x64xf32>
    %c0_24 = arith.constant 0 : index
    %c0_25 = arith.constant 0 : index
    %51 = vector.load %arg19[%c0_24, %c0_25] : memref<16x64xf32, #tpu.memory_space<vmem>>, vector<16x64xf32>
    tpu.vector_store %arg19[%c0_24, %c0_25], %50 {strides = array<i32>} : memref<16x64xf32, #tpu.memory_space<vmem>>, vector<16x64xf32>,
    %52 = arith.truncf %50 : vector<16x64xf32> to vector<16x64xbf16>
    %c0_26 = arith.constant 0 : index
    %c0_27 = arith.constant 0 : index
    %c0_28 = arith.constant 0 : index
    %53 = vector.load %arg7[%c0_26, %c0_27, %c0_28] : memref<1x64x34xbf16, #tpu.memory_space<vmem>>, vector<1x64x34xbf16>
    %54 = vector.shape_cast %53 : vector<1x64x34xbf16> to vector<64x34xbf16>
    %cst_29 = arith.constant dense<0.000000e+00> : vector<16x34xf32>
    %55 = tpu.matmul %52, %54, %cst_29 {dimension_numbers = #tpu.dot_dimension_numbers<[1], [0], [0], [1], [0, 0, 1, 1], [], []>} : vector<16x64xbf16>, vector<64x34xbf16>, vector<16x34xf32> -> vector<16x34xf32>
    %56 = vector.extract_strided_slice %55 {offsets = [0, 0], sizes = [16, 2], strides = [1, 1]} : vector<16x34xf32> to vector<16x2xf32>
    %57 = arith.truncf %56 : vector<16x2xf32> to vector<16x2xbf16>
    %c0_30 = arith.constant 0 : index
    %c0_31 = arith.constant 0 : index
    %c0_32 = arith.constant 0 : index
    %58 = vector.load %arg8[%c0_30, %c0_31, %c0_32] : memref<1x2x64xbf16, #tpu.memory_space<vmem>>, vector<1x2x64xbf16>
    %59 = vector.shape_cast %58 : vector<1x2x64xbf16> to vector<2x64xbf16>
    %cst_33 = arith.constant dense<0.000000e+00> : vector<16x64xf32>
    %60 = tpu.matmul %57, %59, %cst_33 {dimension_numbers = #tpu.dot_dimension_numbers<[1], [0], [0], [1], [0, 0, 1, 1], [], []>} : vector<16x2xbf16>, vector<2x64xbf16>, vector<16x64xf32> -> vector<16x64xf32>
    %c0_34 = arith.constant 0 : index
    %c0_35 = arith.constant 0 : index
    %c0_36 = arith.constant 0 : index
    %61 = vector.load %arg9[%c0_34, %c0_35, %c0_36] : memref<1x1x64xf32, #tpu.memory_space<vmem>>, vector<1x1x64xf32>
    %62 = vector.shape_cast %61 : vector<1x1x64xf32> to vector<1x64xf32>
    %63 = vector.broadcast %62 : vector<1x64xf32> to vector<16x64xf32>
    %64 = arith.addf %60, %63 : vector<16x64xf32>
    %cst_37 = arith.constant 2.000000e+01 : f32
    %65 = vector.broadcast %cst_37 : f32 to vector<16x64xf32>
    %66 = arith.cmpf ogt, %64, %65 : vector<16x64xf32>
    %cst_38 = arith.constant 2.000000e+01 : f32
    %67 = vector.broadcast %cst_38 : f32 to vector<16x64xf32>
    %68 = arith.minimumf %64, %67 : vector<16x64xf32>
    %69 = math.exp %68 : vector<16x64xf32>
    %cst_39 = arith.constant 1.000000e+00 : f32
    %70 = vector.broadcast %cst_39 : f32 to vector<16x64xf32>
    %71 = arith.addf %70, %69 : vector<16x64xf32>
    %72 = math.log %71 : vector<16x64xf32>
    %73 = arith.select %66, %64, %72 : vector<16x64xi1>, vector<16x64xf32>
    %c0_40 = arith.constant 0 : index
    %c0_41 = arith.constant 0 : index
    %74 = vector.load %arg17[%c0_40, %c0_41] : memref<16x64xf32, #tpu.memory_space<vmem>>, vector<16x64xf32>
    tpu.vector_store %arg17[%c0_40, %c0_41], %73 {strides = array<i32>} : memref<16x64xf32, #tpu.memory_space<vmem>>, vector<16x64xf32>,
    %75 = arith.mulf %73, %50 : vector<16x64xf32>
    %c0_42 = arith.constant 0 : index
    %c0_43 = arith.constant 0 : index
    %76 = vector.load %arg18[%c0_42, %c0_43] : memref<16x64xf32, #tpu.memory_space<vmem>>, vector<16x64xf32>
    tpu.vector_store %arg18[%c0_42, %c0_43], %75 {strides = array<i32>} : memref<16x64xf32, #tpu.memory_space<vmem>>, vector<16x64xf32>,
    %77 = vector.extract_strided_slice %55 {offsets = [0, 2], sizes = [16, 32], strides = [1, 1]} : vector<16x34xf32> to vector<16x32xf32>
    %c0_44 = arith.constant 0 : index
    %c0_45 = arith.constant 0 : index
    %78 = vector.load %arg21[%c0_44, %c0_45] : memref<16x32xf32, #tpu.memory_space<vmem>>, vector<16x32xf32>
    tpu.vector_store %arg21[%c0_44, %c0_45], %77 {strides = array<i32>} : memref<16x32xf32, #tpu.memory_space<vmem>>, vector<16x32xf32>,
    %c0_46 = arith.constant 0 : index
    %c0_47 = arith.constant 0 : index
    %c0_48 = arith.constant 0 : index
    %79 = vector.load %arg10[%c0_46, %c0_47, %c0_48] : memref<1x16x64xf32, #tpu.memory_space<vmem>>, vector<1x16x64xf32>
    %80 = vector.shape_cast %79 : vector<1x16x64xf32> to vector<16x64xf32>
    %81 = tpu.iota {dimensions = array<i32: 0>} : vector<32x32xi32>
    %82 = tpu.iota {dimensions = array<i32: 1>} : vector<32x32xi32>
    %83 = arith.cmpi eq, %81, %82 : vector<32x32xi32>
    %84 = arith.extui %83 : vector<32x32xi1> to vector<32x32xi32>
    %85 = arith.sitofp %84 : vector<32x32xi32> to vector<32x32xf32>
    %86 = arith.extui %0 : i1 to i32
    %c0_i32_49 = arith.constant 0 : i32
    %87 = arith.cmpi ne, %86, %c0_i32_49 : i32
    scf.if %87 {
      %c0_70 = arith.constant 0 : index
      %c0_71 = arith.constant 0 : index
      %113 = vector.load %arg14[%c0_70, %c0_71] : memref<16x64xf32, #tpu.memory_space<vmem>>, vector<16x64xf32>
      %c0_i32_72 = arith.constant 0 : i32
      %c2_i32 = arith.constant 2 : i32
      %114 = arith.addi %c0_i32_72, %c2_i32 : i32
      %c1_i32 = arith.constant 1 : i32
      %115 = scf.for %arg23 = %c0_i32_72 to %114 step %c1_i32 iter_args(%arg24 = %113) -> (vector<16x64xf32>)  : i32 {
        %c8_i32 = arith.constant 8 : i32
        %117 = arith.muli %arg23, %c8_i32 : i32
        %118 = tpu.assume_multiple %117, 8 : i32
        %119 = arith.index_cast %118 : i32 to index
        %c0_76 = arith.constant 0 : index
        %120 = vector.load %arg17[%119, %c0_76] : memref<16x64xf32, #tpu.memory_space<vmem>>, vector<8x64xf32>
        %121 = arith.index_cast %118 : i32 to index
        %c0_77 = arith.constant 0 : index
        %122 = vector.load %arg18[%121, %c0_77] : memref<16x64xf32, #tpu.memory_space<vmem>>, vector<8x64xf32>
        %123 = arith.index_cast %118 : i32 to index
        %c0_78 = arith.constant 0 : index
        %124 = vector.load %arg21[%123, %c0_78] : memref<16x32xf32, #tpu.memory_space<vmem>>, vector<8x32xf32>
        %125 = vector.extract_strided_slice %124 {offsets = [0, 0], sizes = [1, 32], strides = [1, 1]} : vector<8x32xf32> to vector<1x32xf32>
        %126 = vector.broadcast %125 : vector<1x32xf32> to vector<32x32xf32>
        %127 = arith.mulf %85, %126 : vector<32x32xf32>
        %cst_79 = arith.constant dense<0.000000e+00> : vector<32xf32>
        %128 = vector.multi_reduction <add>, %127, %cst_79 [1] : vector<32x32xf32> to vector<32xf32>
        %129 = vector.shape_cast %128 : vector<32xf32> to vector<32x1xf32>
        %130 = vector.extract_strided_slice %124 {offsets = [1, 0], sizes = [1, 32], strides = [1, 1]} : vector<8x32xf32> to vector<1x32xf32>
        %131 = vector.broadcast %130 : vector<1x32xf32> to vector<32x32xf32>
        %132 = arith.mulf %85, %131 : vector<32x32xf32>
        %cst_80 = arith.constant dense<0.000000e+00> : vector<32xf32>
        %133 = vector.multi_reduction <add>, %132, %cst_80 [1] : vector<32x32xf32> to vector<32xf32>
        %134 = vector.shape_cast %133 : vector<32xf32> to vector<32x1xf32>
        %135 = vector.extract_strided_slice %124 {offsets = [2, 0], sizes = [1, 32], strides = [1, 1]} : vector<8x32xf32> to vector<1x32xf32>
        %136 = vector.broadcast %135 : vector<1x32xf32> to vector<32x32xf32>
        %137 = arith.mulf %85, %136 : vector<32x32xf32>
        %cst_81 = arith.constant dense<0.000000e+00> : vector<32xf32>
        %138 = vector.multi_reduction <add>, %137, %cst_81 [1] : vector<32x32xf32> to vector<32xf32>
        %139 = vector.shape_cast %138 : vector<32xf32> to vector<32x1xf32>
        %140 = vector.extract_strided_slice %124 {offsets = [3, 0], sizes = [1, 32], strides = [1, 1]} : vector<8x32xf32> to vector<1x32xf32>
        %141 = vector.broadcast %140 : vector<1x32xf32> to vector<32x32xf32>
        %142 = arith.mulf %85, %141 : vector<32x32xf32>
        %cst_82 = arith.constant dense<0.000000e+00> : vector<32xf32>
        %143 = vector.multi_reduction <add>, %142, %cst_82 [1] : vector<32x32xf32> to vector<32xf32>
        %144 = vector.shape_cast %143 : vector<32xf32> to vector<32x1xf32>
        %145 = vector.extract_strided_slice %124 {offsets = [4, 0], sizes = [1, 32], strides = [1, 1]} : vector<8x32xf32> to vector<1x32xf32>
        %146 = vector.broadcast %145 : vector<1x32xf32> to vector<32x32xf32>
        %147 = arith.mulf %85, %146 : vector<32x32xf32>
        %cst_83 = arith.constant dense<0.000000e+00> : vector<32xf32>
        %148 = vector.multi_reduction <add>, %147, %cst_83 [1] : vector<32x32xf32> to vector<32xf32>
        %149 = vector.shape_cast %148 : vector<32xf32> to vector<32x1xf32>
        %150 = vector.extract_strided_slice %124 {offsets = [5, 0], sizes = [1, 32], strides = [1, 1]} : vector<8x32xf32> to vector<1x32xf32>
        %151 = vector.broadcast %150 : vector<1x32xf32> to vector<32x32xf32>
        %152 = arith.mulf %85, %151 : vector<32x32xf32>
        %cst_84 = arith.constant dense<0.000000e+00> : vector<32xf32>
        %153 = vector.multi_reduction <add>, %152, %cst_84 [1] : vector<32x32xf32> to vector<32xf32>
        %154 = vector.shape_cast %153 : vector<32xf32> to vector<32x1xf32>
        %155 = vector.extract_strided_slice %124 {offsets = [6, 0], sizes = [1, 32], strides = [1, 1]} : vector<8x32xf32> to vector<1x32xf32>
        %156 = vector.broadcast %155 : vector<1x32xf32> to vector<32x32xf32>
        %157 = arith.mulf %85, %156 : vector<32x32xf32>
        %cst_85 = arith.constant dense<0.000000e+00> : vector<32xf32>
        %158 = vector.multi_reduction <add>, %157, %cst_85 [1] : vector<32x32xf32> to vector<32xf32>
        %159 = vector.shape_cast %158 : vector<32xf32> to vector<32x1xf32>
        %160 = vector.extract_strided_slice %124 {offsets = [7, 0], sizes = [1, 32], strides = [1, 1]} : vector<8x32xf32> to vector<1x32xf32>
        %161 = vector.broadcast %160 : vector<1x32xf32> to vector<32x32xf32>
        %162 = arith.mulf %85, %161 : vector<32x32xf32>
        %cst_86 = arith.constant dense<0.000000e+00> : vector<32xf32>
        %163 = vector.multi_reduction <add>, %162, %cst_86 [1] : vector<32x32xf32> to vector<32xf32>
        %164 = vector.shape_cast %163 : vector<32xf32> to vector<32x1xf32>
        %165 = vector.extract_strided_slice %120 {offsets = [0, 0], sizes = [1, 64], strides = [1, 1]} : vector<8x64xf32> to vector<1x64xf32>
        %166 = vector.broadcast %165 : vector<1x64xf32> to vector<16x64xf32>
        %167 = arith.mulf %166, %80 : vector<16x64xf32>
        %168 = math.exp %167 : vector<16x64xf32>
        %169 = vector.extract_strided_slice %120 {offsets = [1, 0], sizes = [1, 64], strides = [1, 1]} : vector<8x64xf32> to vector<1x64xf32>
        %170 = vector.broadcast %169 : vector<1x64xf32> to vector<16x64xf32>
        %171 = arith.mulf %170, %80 : vector<16x64xf32>
        %172 = math.exp %171 : vector<16x64xf32>
        %173 = vector.extract_strided_slice %120 {offsets = [2, 0], sizes = [1, 64], strides = [1, 1]} : vector<8x64xf32> to vector<1x64xf32>
        %174 = vector.broadcast %173 : vector<1x64xf32> to vector<16x64xf32>
        %175 = arith.mulf %174, %80 : vector<16x64xf32>
        %176 = math.exp %175 : vector<16x64xf32>
        %177 = vector.extract_strided_slice %120 {offsets = [3, 0], sizes = [1, 64], strides = [1, 1]} : vector<8x64xf32> to vector<1x64xf32>
        %178 = vector.broadcast %177 : vector<1x64xf32> to vector<16x64xf32>
        %179 = arith.mulf %178, %80 : vector<16x64xf32>
        %180 = math.exp %179 : vector<16x64xf32>
        %181 = vector.extract_strided_slice %120 {offsets = [4, 0], sizes = [1, 64], strides = [1, 1]} : vector<8x64xf32> to vector<1x64xf32>
        %182 = vector.broadcast %181 : vector<1x64xf32> to vector<16x64xf32>
        %183 = arith.mulf %182, %80 : vector<16x64xf32>
        %184 = math.exp %183 : vector<16x64xf32>
        %185 = vector.extract_strided_slice %120 {offsets = [5, 0], sizes = [1, 64], strides = [1, 1]} : vector<8x64xf32> to vector<1x64xf32>
        %186 = vector.broadcast %185 : vector<1x64xf32> to vector<16x64xf32>
        %187 = arith.mulf %186, %80 : vector<16x64xf32>
        %188 = math.exp %187 : vector<16x64xf32>
        %189 = vector.extract_strided_slice %120 {offsets = [6, 0], sizes = [1, 64], strides = [1, 1]} : vector<8x64xf32> to vector<1x64xf32>
        %190 = vector.broadcast %189 : vector<1x64xf32> to vector<16x64xf32>
        %191 = arith.mulf %190, %80 : vector<16x64xf32>
        %192 = math.exp %191 : vector<16x64xf32>
        %193 = vector.extract_strided_slice %120 {offsets = [7, 0], sizes = [1, 64], strides = [1, 1]} : vector<8x64xf32> to vector<1x64xf32>
        %194 = vector.broadcast %193 : vector<1x64xf32> to vector<16x64xf32>
        %195 = arith.mulf %194, %80 : vector<16x64xf32>
        %196 = math.exp %195 : vector<16x64xf32>
        %197 = vector.extract_strided_slice %129 {offsets = [0, 0], sizes = [16, 1], strides = [1, 1]} : vector<32x1xf32> to vector<16x1xf32>
        %198 = vector.extract_strided_slice %122 {offsets = [0, 0], sizes = [1, 64], strides = [1, 1]} : vector<8x64xf32> to vector<1x64xf32>
        %199 = vector.broadcast %197 : vector<16x1xf32> to vector<16x64xf32>
        %200 = vector.broadcast %198 : vector<1x64xf32> to vector<16x64xf32>
        %201 = arith.mulf %199, %200 : vector<16x64xf32>
        %202 = vector.extract_strided_slice %134 {offsets = [0, 0], sizes = [16, 1], strides = [1, 1]} : vector<32x1xf32> to vector<16x1xf32>
        %203 = vector.extract_strided_slice %122 {offsets = [1, 0], sizes = [1, 64], strides = [1, 1]} : vector<8x64xf32> to vector<1x64xf32>
        %204 = vector.broadcast %202 : vector<16x1xf32> to vector<16x64xf32>
        %205 = vector.broadcast %203 : vector<1x64xf32> to vector<16x64xf32>
        %206 = arith.mulf %204, %205 : vector<16x64xf32>
        %207 = vector.extract_strided_slice %139 {offsets = [0, 0], sizes = [16, 1], strides = [1, 1]} : vector<32x1xf32> to vector<16x1xf32>
        %208 = vector.extract_strided_slice %122 {offsets = [2, 0], sizes = [1, 64], strides = [1, 1]} : vector<8x64xf32> to vector<1x64xf32>
        %209 = vector.broadcast %207 : vector<16x1xf32> to vector<16x64xf32>
        %210 = vector.broadcast %208 : vector<1x64xf32> to vector<16x64xf32>
        %211 = arith.mulf %209, %210 : vector<16x64xf32>
        %212 = vector.extract_strided_slice %144 {offsets = [0, 0], sizes = [16, 1], strides = [1, 1]} : vector<32x1xf32> to vector<16x1xf32>
        %213 = vector.extract_strided_slice %122 {offsets = [3, 0], sizes = [1, 64], strides = [1, 1]} : vector<8x64xf32> to vector<1x64xf32>
        %214 = vector.broadcast %212 : vector<16x1xf32> to vector<16x64xf32>
        %215 = vector.broadcast %213 : vector<1x64xf32> to vector<16x64xf32>
        %216 = arith.mulf %214, %215 : vector<16x64xf32>
        %217 = vector.extract_strided_slice %149 {offsets = [0, 0], sizes = [16, 1], strides = [1, 1]} : vector<32x1xf32> to vector<16x1xf32>
        %218 = vector.extract_strided_slice %122 {offsets = [4, 0], sizes = [1, 64], strides = [1, 1]} : vector<8x64xf32> to vector<1x64xf32>
        %219 = vector.broadcast %217 : vector<16x1xf32> to vector<16x64xf32>
        %220 = vector.broadcast %218 : vector<1x64xf32> to vector<16x64xf32>
        %221 = arith.mulf %219, %220 : vector<16x64xf32>
        %222 = vector.extract_strided_slice %154 {offsets = [0, 0], sizes = [16, 1], strides = [1, 1]} : vector<32x1xf32> to vector<16x1xf32>
        %223 = vector.extract_strided_slice %122 {offsets = [5, 0], sizes = [1, 64], strides = [1, 1]} : vector<8x64xf32> to vector<1x64xf32>
        %224 = vector.broadcast %222 : vector<16x1xf32> to vector<16x64xf32>
        %225 = vector.broadcast %223 : vector<1x64xf32> to vector<16x64xf32>
        %226 = arith.mulf %224, %225 : vector<16x64xf32>
        %227 = vector.extract_strided_slice %159 {offsets = [0, 0], sizes = [16, 1], strides = [1, 1]} : vector<32x1xf32> to vector<16x1xf32>
        %228 = vector.extract_strided_slice %122 {offsets = [6, 0], sizes = [1, 64], strides = [1, 1]} : vector<8x64xf32> to vector<1x64xf32>
        %229 = vector.broadcast %227 : vector<16x1xf32> to vector<16x64xf32>
        %230 = vector.broadcast %228 : vector<1x64xf32> to vector<16x64xf32>
        %231 = arith.mulf %229, %230 : vector<16x64xf32>
        %232 = vector.extract_strided_slice %164 {offsets = [0, 0], sizes = [16, 1], strides = [1, 1]} : vector<32x1xf32> to vector<16x1xf32>
        %233 = vector.extract_strided_slice %122 {offsets = [7, 0], sizes = [1, 64], strides = [1, 1]} : vector<8x64xf32> to vector<1x64xf32>
        %234 = vector.broadcast %232 : vector<16x1xf32> to vector<16x64xf32>
        %235 = vector.broadcast %233 : vector<1x64xf32> to vector<16x64xf32>
        %236 = arith.mulf %234, %235 : vector<16x64xf32>
        %237 = arith.mulf %168, %arg24 : vector<16x64xf32>
        %238 = arith.addf %237, %201 : vector<16x64xf32>
        %239 = vector.extract_strided_slice %129 {offsets = [16, 0], sizes = [16, 1], strides = [1, 1]} : vector<32x1xf32> to vector<16x1xf32>
        %240 = vector.broadcast %239 : vector<16x1xf32> to vector<16x64xf32>
        %241 = arith.mulf %238, %240 : vector<16x64xf32>
        %cst_87 = arith.constant dense<0.000000e+00> : vector<64xf32>
        %242 = vector.multi_reduction <add>, %241, %cst_87 [0] : vector<16x64xf32> to vector<64xf32>
        %243 = vector.shape_cast %242 : vector<64xf32> to vector<1x64xf32>
        %244 = arith.mulf %172, %238 : vector<16x64xf32>
        %245 = arith.addf %244, %206 : vector<16x64xf32>
        %246 = vector.extract_strided_slice %134 {offsets = [16, 0], sizes = [16, 1], strides = [1, 1]} : vector<32x1xf32> to vector<16x1xf32>
        %247 = vector.broadcast %246 : vector<16x1xf32> to vector<16x64xf32>
        %248 = arith.mulf %245, %247 : vector<16x64xf32>
        %cst_88 = arith.constant dense<0.000000e+00> : vector<64xf32>
        %249 = vector.multi_reduction <add>, %248, %cst_88 [0] : vector<16x64xf32> to vector<64xf32>
        %250 = vector.shape_cast %249 : vector<64xf32> to vector<1x64xf32>
        %251 = arith.mulf %176, %245 : vector<16x64xf32>
        %252 = arith.addf %251, %211 : vector<16x64xf32>
        %253 = vector.extract_strided_slice %139 {offsets = [16, 0], sizes = [16, 1], strides = [1, 1]} : vector<32x1xf32> to vector<16x1xf32>
        %254 = vector.broadcast %253 : vector<16x1xf32> to vector<16x64xf32>
        %255 = arith.mulf %252, %254 : vector<16x64xf32>
        %cst_89 = arith.constant dense<0.000000e+00> : vector<64xf32>
        %256 = vector.multi_reduction <add>, %255, %cst_89 [0] : vector<16x64xf32> to vector<64xf32>
        %257 = vector.shape_cast %256 : vector<64xf32> to vector<1x64xf32>
        %258 = arith.mulf %180, %252 : vector<16x64xf32>
        %259 = arith.addf %258, %216 : vector<16x64xf32>
        %260 = vector.extract_strided_slice %144 {offsets = [16, 0], sizes = [16, 1], strides = [1, 1]} : vector<32x1xf32> to vector<16x1xf32>
        %261 = vector.broadcast %260 : vector<16x1xf32> to vector<16x64xf32>
        %262 = arith.mulf %259, %261 : vector<16x64xf32>
        %cst_90 = arith.constant dense<0.000000e+00> : vector<64xf32>
        %263 = vector.multi_reduction <add>, %262, %cst_90 [0] : vector<16x64xf32> to vector<64xf32>
        %264 = vector.shape_cast %263 : vector<64xf32> to vector<1x64xf32>
        %265 = arith.mulf %184, %259 : vector<16x64xf32>
        %266 = arith.addf %265, %221 : vector<16x64xf32>
        %267 = vector.extract_strided_slice %149 {offsets = [16, 0], sizes = [16, 1], strides = [1, 1]} : vector<32x1xf32> to vector<16x1xf32>
        %268 = vector.broadcast %267 : vector<16x1xf32> to vector<16x64xf32>
        %269 = arith.mulf %266, %268 : vector<16x64xf32>
        %cst_91 = arith.constant dense<0.000000e+00> : vector<64xf32>
        %270 = vector.multi_reduction <add>, %269, %cst_91 [0] : vector<16x64xf32> to vector<64xf32>
        %271 = vector.shape_cast %270 : vector<64xf32> to vector<1x64xf32>
        %272 = arith.mulf %188, %266 : vector<16x64xf32>
        %273 = arith.addf %272, %226 : vector<16x64xf32>
        %274 = vector.extract_strided_slice %154 {offsets = [16, 0], sizes = [16, 1], strides = [1, 1]} : vector<32x1xf32> to vector<16x1xf32>
        %275 = vector.broadcast %274 : vector<16x1xf32> to vector<16x64xf32>
        %276 = arith.mulf %273, %275 : vector<16x64xf32>
        %cst_92 = arith.constant dense<0.000000e+00> : vector<64xf32>
        %277 = vector.multi_reduction <add>, %276, %cst_92 [0] : vector<16x64xf32> to vector<64xf32>
        %278 = vector.shape_cast %277 : vector<64xf32> to vector<1x64xf32>
        %279 = arith.mulf %192, %273 : vector<16x64xf32>
        %280 = arith.addf %279, %231 : vector<16x64xf32>
        %281 = vector.extract_strided_slice %159 {offsets = [16, 0], sizes = [16, 1], strides = [1, 1]} : vector<32x1xf32> to vector<16x1xf32>
        %282 = vector.broadcast %281 : vector<16x1xf32> to vector<16x64xf32>
        %283 = arith.mulf %280, %282 : vector<16x64xf32>
        %cst_93 = arith.constant dense<0.000000e+00> : vector<64xf32>
        %284 = vector.multi_reduction <add>, %283, %cst_93 [0] : vector<16x64xf32> to vector<64xf32>
        %285 = vector.shape_cast %284 : vector<64xf32> to vector<1x64xf32>
        %286 = arith.mulf %196, %280 : vector<16x64xf32>
        %287 = arith.addf %286, %236 : vector<16x64xf32>
        %288 = vector.extract_strided_slice %164 {offsets = [16, 0], sizes = [16, 1], strides = [1, 1]} : vector<32x1xf32> to vector<16x1xf32>
        %289 = vector.broadcast %288 : vector<16x1xf32> to vector<16x64xf32>
        %290 = arith.mulf %287, %289 : vector<16x64xf32>
        %cst_94 = arith.constant dense<0.000000e+00> : vector<64xf32>
        %291 = vector.multi_reduction <add>, %290, %cst_94 [0] : vector<16x64xf32> to vector<64xf32>
        %292 = vector.shape_cast %291 : vector<64xf32> to vector<1x64xf32>
        %293 = tpu.concatenate %243, %250, %257, %264, %271, %278, %285, %292 in 0 : vector<1x64xf32>, vector<1x64xf32>, vector<1x64xf32>, vector<1x64xf32>, vector<1x64xf32>, vector<1x64xf32>, vector<1x64xf32>, vector<1x64xf32> -> vector<8x64xf32>
        %294 = arith.index_cast %118 : i32 to index
        %c0_95 = arith.constant 0 : index
        %295 = vector.load %arg22[%294, %c0_95] : memref<16x64xf32, #tpu.memory_space<vmem>>, vector<8x64xf32>
        tpu.vector_store %arg22[%294, %c0_95], %293 {strides = array<i32>} : memref<16x64xf32, #tpu.memory_space<vmem>>, vector<8x64xf32>,
        scf.yield %287 : vector<16x64xf32>
      }
      %c2_i32_73 = arith.constant 2 : i32
      %c0_74 = arith.constant 0 : index
      %c0_75 = arith.constant 0 : index
      %116 = vector.load %arg14[%c0_74, %c0_75] : memref<16x64xf32, #tpu.memory_space<vmem>>, vector<16x64xf32>
      tpu.vector_store %arg14[%c0_74, %c0_75], %115 {strides = array<i32>} : memref<16x64xf32, #tpu.memory_space<vmem>>, vector<16x64xf32>,
    } else {
    }
    %88 = arith.extui %1 : i1 to i32
    %c0_i32_50 = arith.constant 0 : i32
    %89 = arith.cmpi ne, %88, %c0_i32_50 : i32
    scf.if %89 {
      %c0_70 = arith.constant 0 : index
      %c0_71 = arith.constant 0 : index
      %113 = vector.load %arg14[%c0_70, %c0_71] : memref<16x64xf32, #tpu.memory_space<vmem>>, vector<16x64xf32>
      %c0_i32_72 = arith.constant 0 : i32
      %c2_i32 = arith.constant 2 : i32
      %114 = arith.addi %c0_i32_72, %c2_i32 : i32
      %c1_i32 = arith.constant 1 : i32
      %115 = scf.for %arg23 = %c0_i32_72 to %114 step %c1_i32 iter_args(%arg24 = %113) -> (vector<16x64xf32>)  : i32 {
        %c8_i32 = arith.constant 8 : i32
        %117 = arith.muli %arg23, %c8_i32 : i32
        %c8_i32_76 = arith.constant 8 : i32
        %118 = arith.subi %c8_i32_76, %117 : i32
        %119 = tpu.assume_multiple %118, 8 : i32
        %120 = arith.index_cast %119 : i32 to index
        %c0_77 = arith.constant 0 : index
        %121 = vector.load %arg17[%120, %c0_77] : memref<16x64xf32, #tpu.memory_space<vmem>>, vector<8x64xf32>
        %122 = arith.index_cast %119 : i32 to index
        %c0_78 = arith.constant 0 : index
        %123 = vector.load %arg18[%122, %c0_78] : memref<16x64xf32, #tpu.memory_space<vmem>>, vector<8x64xf32>
        %124 = arith.index_cast %119 : i32 to index
        %c0_79 = arith.constant 0 : index
        %125 = vector.load %arg21[%124, %c0_79] : memref<16x32xf32, #tpu.memory_space<vmem>>, vector<8x32xf32>
        %126 = vector.extract_strided_slice %125 {offsets = [0, 0], sizes = [1, 32], strides = [1, 1]} : vector<8x32xf32> to vector<1x32xf32>
        %127 = vector.broadcast %126 : vector<1x32xf32> to vector<32x32xf32>
        %128 = arith.mulf %85, %127 : vector<32x32xf32>
        %cst_80 = arith.constant dense<0.000000e+00> : vector<32xf32>
        %129 = vector.multi_reduction <add>, %128, %cst_80 [1] : vector<32x32xf32> to vector<32xf32>
        %130 = vector.shape_cast %129 : vector<32xf32> to vector<32x1xf32>
        %131 = vector.extract_strided_slice %125 {offsets = [1, 0], sizes = [1, 32], strides = [1, 1]} : vector<8x32xf32> to vector<1x32xf32>
        %132 = vector.broadcast %131 : vector<1x32xf32> to vector<32x32xf32>
        %133 = arith.mulf %85, %132 : vector<32x32xf32>
        %cst_81 = arith.constant dense<0.000000e+00> : vector<32xf32>
        %134 = vector.multi_reduction <add>, %133, %cst_81 [1] : vector<32x32xf32> to vector<32xf32>
        %135 = vector.shape_cast %134 : vector<32xf32> to vector<32x1xf32>
        %136 = vector.extract_strided_slice %125 {offsets = [2, 0], sizes = [1, 32], strides = [1, 1]} : vector<8x32xf32> to vector<1x32xf32>
        %137 = vector.broadcast %136 : vector<1x32xf32> to vector<32x32xf32>
        %138 = arith.mulf %85, %137 : vector<32x32xf32>
        %cst_82 = arith.constant dense<0.000000e+00> : vector<32xf32>
        %139 = vector.multi_reduction <add>, %138, %cst_82 [1] : vector<32x32xf32> to vector<32xf32>
        %140 = vector.shape_cast %139 : vector<32xf32> to vector<32x1xf32>
        %141 = vector.extract_strided_slice %125 {offsets = [3, 0], sizes = [1, 32], strides = [1, 1]} : vector<8x32xf32> to vector<1x32xf32>
        %142 = vector.broadcast %141 : vector<1x32xf32> to vector<32x32xf32>
        %143 = arith.mulf %85, %142 : vector<32x32xf32>
        %cst_83 = arith.constant dense<0.000000e+00> : vector<32xf32>
        %144 = vector.multi_reduction <add>, %143, %cst_83 [1] : vector<32x32xf32> to vector<32xf32>
        %145 = vector.shape_cast %144 : vector<32xf32> to vector<32x1xf32>
        %146 = vector.extract_strided_slice %125 {offsets = [4, 0], sizes = [1, 32], strides = [1, 1]} : vector<8x32xf32> to vector<1x32xf32>
        %147 = vector.broadcast %146 : vector<1x32xf32> to vector<32x32xf32>
        %148 = arith.mulf %85, %147 : vector<32x32xf32>
        %cst_84 = arith.constant dense<0.000000e+00> : vector<32xf32>
        %149 = vector.multi_reduction <add>, %148, %cst_84 [1] : vector<32x32xf32> to vector<32xf32>
        %150 = vector.shape_cast %149 : vector<32xf32> to vector<32x1xf32>
        %151 = vector.extract_strided_slice %125 {offsets = [5, 0], sizes = [1, 32], strides = [1, 1]} : vector<8x32xf32> to vector<1x32xf32>
        %152 = vector.broadcast %151 : vector<1x32xf32> to vector<32x32xf32>
        %153 = arith.mulf %85, %152 : vector<32x32xf32>
        %cst_85 = arith.constant dense<0.000000e+00> : vector<32xf32>
        %154 = vector.multi_reduction <add>, %153, %cst_85 [1] : vector<32x32xf32> to vector<32xf32>
        %155 = vector.shape_cast %154 : vector<32xf32> to vector<32x1xf32>
        %156 = vector.extract_strided_slice %125 {offsets = [6, 0], sizes = [1, 32], strides = [1, 1]} : vector<8x32xf32> to vector<1x32xf32>
        %157 = vector.broadcast %156 : vector<1x32xf32> to vector<32x32xf32>
        %158 = arith.mulf %85, %157 : vector<32x32xf32>
        %cst_86 = arith.constant dense<0.000000e+00> : vector<32xf32>
        %159 = vector.multi_reduction <add>, %158, %cst_86 [1] : vector<32x32xf32> to vector<32xf32>
        %160 = vector.shape_cast %159 : vector<32xf32> to vector<32x1xf32>
        %161 = vector.extract_strided_slice %125 {offsets = [7, 0], sizes = [1, 32], strides = [1, 1]} : vector<8x32xf32> to vector<1x32xf32>
        %162 = vector.broadcast %161 : vector<1x32xf32> to vector<32x32xf32>
        %163 = arith.mulf %85, %162 : vector<32x32xf32>
        %cst_87 = arith.constant dense<0.000000e+00> : vector<32xf32>
        %164 = vector.multi_reduction <add>, %163, %cst_87 [1] : vector<32x32xf32> to vector<32xf32>
        %165 = vector.shape_cast %164 : vector<32xf32> to vector<32x1xf32>
        %166 = vector.extract_strided_slice %121 {offsets = [0, 0], sizes = [1, 64], strides = [1, 1]} : vector<8x64xf32> to vector<1x64xf32>
        %167 = vector.broadcast %166 : vector<1x64xf32> to vector<16x64xf32>
        %168 = arith.mulf %167, %80 : vector<16x64xf32>
        %169 = math.exp %168 : vector<16x64xf32>
        %170 = vector.extract_strided_slice %121 {offsets = [1, 0], sizes = [1, 64], strides = [1, 1]} : vector<8x64xf32> to vector<1x64xf32>
        %171 = vector.broadcast %170 : vector<1x64xf32> to vector<16x64xf32>
        %172 = arith.mulf %171, %80 : vector<16x64xf32>
        %173 = math.exp %172 : vector<16x64xf32>
        %174 = vector.extract_strided_slice %121 {offsets = [2, 0], sizes = [1, 64], strides = [1, 1]} : vector<8x64xf32> to vector<1x64xf32>
        %175 = vector.broadcast %174 : vector<1x64xf32> to vector<16x64xf32>
        %176 = arith.mulf %175, %80 : vector<16x64xf32>
        %177 = math.exp %176 : vector<16x64xf32>
        %178 = vector.extract_strided_slice %121 {offsets = [3, 0], sizes = [1, 64], strides = [1, 1]} : vector<8x64xf32> to vector<1x64xf32>
        %179 = vector.broadcast %178 : vector<1x64xf32> to vector<16x64xf32>
        %180 = arith.mulf %179, %80 : vector<16x64xf32>
        %181 = math.exp %180 : vector<16x64xf32>
        %182 = vector.extract_strided_slice %121 {offsets = [4, 0], sizes = [1, 64], strides = [1, 1]} : vector<8x64xf32> to vector<1x64xf32>
        %183 = vector.broadcast %182 : vector<1x64xf32> to vector<16x64xf32>
        %184 = arith.mulf %183, %80 : vector<16x64xf32>
        %185 = math.exp %184 : vector<16x64xf32>
        %186 = vector.extract_strided_slice %121 {offsets = [5, 0], sizes = [1, 64], strides = [1, 1]} : vector<8x64xf32> to vector<1x64xf32>
        %187 = vector.broadcast %186 : vector<1x64xf32> to vector<16x64xf32>
        %188 = arith.mulf %187, %80 : vector<16x64xf32>
        %189 = math.exp %188 : vector<16x64xf32>
        %190 = vector.extract_strided_slice %121 {offsets = [6, 0], sizes = [1, 64], strides = [1, 1]} : vector<8x64xf32> to vector<1x64xf32>
        %191 = vector.broadcast %190 : vector<1x64xf32> to vector<16x64xf32>
        %192 = arith.mulf %191, %80 : vector<16x64xf32>
        %193 = math.exp %192 : vector<16x64xf32>
        %194 = vector.extract_strided_slice %121 {offsets = [7, 0], sizes = [1, 64], strides = [1, 1]} : vector<8x64xf32> to vector<1x64xf32>
        %195 = vector.broadcast %194 : vector<1x64xf32> to vector<16x64xf32>
        %196 = arith.mulf %195, %80 : vector<16x64xf32>
        %197 = math.exp %196 : vector<16x64xf32>
        %198 = vector.extract_strided_slice %130 {offsets = [0, 0], sizes = [16, 1], strides = [1, 1]} : vector<32x1xf32> to vector<16x1xf32>
        %199 = vector.extract_strided_slice %123 {offsets = [0, 0], sizes = [1, 64], strides = [1, 1]} : vector<8x64xf32> to vector<1x64xf32>
        %200 = vector.broadcast %198 : vector<16x1xf32> to vector<16x64xf32>
        %201 = vector.broadcast %199 : vector<1x64xf32> to vector<16x64xf32>
        %202 = arith.mulf %200, %201 : vector<16x64xf32>
        %203 = vector.extract_strided_slice %135 {offsets = [0, 0], sizes = [16, 1], strides = [1, 1]} : vector<32x1xf32> to vector<16x1xf32>
        %204 = vector.extract_strided_slice %123 {offsets = [1, 0], sizes = [1, 64], strides = [1, 1]} : vector<8x64xf32> to vector<1x64xf32>
        %205 = vector.broadcast %203 : vector<16x1xf32> to vector<16x64xf32>
        %206 = vector.broadcast %204 : vector<1x64xf32> to vector<16x64xf32>
        %207 = arith.mulf %205, %206 : vector<16x64xf32>
        %208 = vector.extract_strided_slice %140 {offsets = [0, 0], sizes = [16, 1], strides = [1, 1]} : vector<32x1xf32> to vector<16x1xf32>
        %209 = vector.extract_strided_slice %123 {offsets = [2, 0], sizes = [1, 64], strides = [1, 1]} : vector<8x64xf32> to vector<1x64xf32>
        %210 = vector.broadcast %208 : vector<16x1xf32> to vector<16x64xf32>
        %211 = vector.broadcast %209 : vector<1x64xf32> to vector<16x64xf32>
        %212 = arith.mulf %210, %211 : vector<16x64xf32>
        %213 = vector.extract_strided_slice %145 {offsets = [0, 0], sizes = [16, 1], strides = [1, 1]} : vector<32x1xf32> to vector<16x1xf32>
        %214 = vector.extract_strided_slice %123 {offsets = [3, 0], sizes = [1, 64], strides = [1, 1]} : vector<8x64xf32> to vector<1x64xf32>
        %215 = vector.broadcast %213 : vector<16x1xf32> to vector<16x64xf32>
        %216 = vector.broadcast %214 : vector<1x64xf32> to vector<16x64xf32>
        %217 = arith.mulf %215, %216 : vector<16x64xf32>
        %218 = vector.extract_strided_slice %150 {offsets = [0, 0], sizes = [16, 1], strides = [1, 1]} : vector<32x1xf32> to vector<16x1xf32>
        %219 = vector.extract_strided_slice %123 {offsets = [4, 0], sizes = [1, 64], strides = [1, 1]} : vector<8x64xf32> to vector<1x64xf32>
        %220 = vector.broadcast %218 : vector<16x1xf32> to vector<16x64xf32>
        %221 = vector.broadcast %219 : vector<1x64xf32> to vector<16x64xf32>
        %222 = arith.mulf %220, %221 : vector<16x64xf32>
        %223 = vector.extract_strided_slice %155 {offsets = [0, 0], sizes = [16, 1], strides = [1, 1]} : vector<32x1xf32> to vector<16x1xf32>
        %224 = vector.extract_strided_slice %123 {offsets = [5, 0], sizes = [1, 64], strides = [1, 1]} : vector<8x64xf32> to vector<1x64xf32>
        %225 = vector.broadcast %223 : vector<16x1xf32> to vector<16x64xf32>
        %226 = vector.broadcast %224 : vector<1x64xf32> to vector<16x64xf32>
        %227 = arith.mulf %225, %226 : vector<16x64xf32>
        %228 = vector.extract_strided_slice %160 {offsets = [0, 0], sizes = [16, 1], strides = [1, 1]} : vector<32x1xf32> to vector<16x1xf32>
        %229 = vector.extract_strided_slice %123 {offsets = [6, 0], sizes = [1, 64], strides = [1, 1]} : vector<8x64xf32> to vector<1x64xf32>
        %230 = vector.broadcast %228 : vector<16x1xf32> to vector<16x64xf32>
        %231 = vector.broadcast %229 : vector<1x64xf32> to vector<16x64xf32>
        %232 = arith.mulf %230, %231 : vector<16x64xf32>
        %233 = vector.extract_strided_slice %165 {offsets = [0, 0], sizes = [16, 1], strides = [1, 1]} : vector<32x1xf32> to vector<16x1xf32>
        %234 = vector.extract_strided_slice %123 {offsets = [7, 0], sizes = [1, 64], strides = [1, 1]} : vector<8x64xf32> to vector<1x64xf32>
        %235 = vector.broadcast %233 : vector<16x1xf32> to vector<16x64xf32>
        %236 = vector.broadcast %234 : vector<1x64xf32> to vector<16x64xf32>
        %237 = arith.mulf %235, %236 : vector<16x64xf32>
        %238 = arith.mulf %197, %arg24 : vector<16x64xf32>
        %239 = arith.addf %238, %237 : vector<16x64xf32>
        %240 = vector.extract_strided_slice %165 {offsets = [16, 0], sizes = [16, 1], strides = [1, 1]} : vector<32x1xf32> to vector<16x1xf32>
        %241 = vector.broadcast %240 : vector<16x1xf32> to vector<16x64xf32>
        %242 = arith.mulf %239, %241 : vector<16x64xf32>
        %cst_88 = arith.constant dense<0.000000e+00> : vector<64xf32>
        %243 = vector.multi_reduction <add>, %242, %cst_88 [0] : vector<16x64xf32> to vector<64xf32>
        %244 = vector.shape_cast %243 : vector<64xf32> to vector<1x64xf32>
        %245 = arith.mulf %193, %239 : vector<16x64xf32>
        %246 = arith.addf %245, %232 : vector<16x64xf32>
        %247 = vector.extract_strided_slice %160 {offsets = [16, 0], sizes = [16, 1], strides = [1, 1]} : vector<32x1xf32> to vector<16x1xf32>
        %248 = vector.broadcast %247 : vector<16x1xf32> to vector<16x64xf32>
        %249 = arith.mulf %246, %248 : vector<16x64xf32>
        %cst_89 = arith.constant dense<0.000000e+00> : vector<64xf32>
        %250 = vector.multi_reduction <add>, %249, %cst_89 [0] : vector<16x64xf32> to vector<64xf32>
        %251 = vector.shape_cast %250 : vector<64xf32> to vector<1x64xf32>
        %252 = arith.mulf %189, %246 : vector<16x64xf32>
        %253 = arith.addf %252, %227 : vector<16x64xf32>
        %254 = vector.extract_strided_slice %155 {offsets = [16, 0], sizes = [16, 1], strides = [1, 1]} : vector<32x1xf32> to vector<16x1xf32>
        %255 = vector.broadcast %254 : vector<16x1xf32> to vector<16x64xf32>
        %256 = arith.mulf %253, %255 : vector<16x64xf32>
        %cst_90 = arith.constant dense<0.000000e+00> : vector<64xf32>
        %257 = vector.multi_reduction <add>, %256, %cst_90 [0] : vector<16x64xf32> to vector<64xf32>
        %258 = vector.shape_cast %257 : vector<64xf32> to vector<1x64xf32>
        %259 = arith.mulf %185, %253 : vector<16x64xf32>
        %260 = arith.addf %259, %222 : vector<16x64xf32>
        %261 = vector.extract_strided_slice %150 {offsets = [16, 0], sizes = [16, 1], strides = [1, 1]} : vector<32x1xf32> to vector<16x1xf32>
        %262 = vector.broadcast %261 : vector<16x1xf32> to vector<16x64xf32>
        %263 = arith.mulf %260, %262 : vector<16x64xf32>
        %cst_91 = arith.constant dense<0.000000e+00> : vector<64xf32>
        %264 = vector.multi_reduction <add>, %263, %cst_91 [0] : vector<16x64xf32> to vector<64xf32>
        %265 = vector.shape_cast %264 : vector<64xf32> to vector<1x64xf32>
        %266 = arith.mulf %181, %260 : vector<16x64xf32>
        %267 = arith.addf %266, %217 : vector<16x64xf32>
        %268 = vector.extract_strided_slice %145 {offsets = [16, 0], sizes = [16, 1], strides = [1, 1]} : vector<32x1xf32> to vector<16x1xf32>
        %269 = vector.broadcast %268 : vector<16x1xf32> to vector<16x64xf32>
        %270 = arith.mulf %267, %269 : vector<16x64xf32>
        %cst_92 = arith.constant dense<0.000000e+00> : vector<64xf32>
        %271 = vector.multi_reduction <add>, %270, %cst_92 [0] : vector<16x64xf32> to vector<64xf32>
        %272 = vector.shape_cast %271 : vector<64xf32> to vector<1x64xf32>
        %273 = arith.mulf %177, %267 : vector<16x64xf32>
        %274 = arith.addf %273, %212 : vector<16x64xf32>
        %275 = vector.extract_strided_slice %140 {offsets = [16, 0], sizes = [16, 1], strides = [1, 1]} : vector<32x1xf32> to vector<16x1xf32>
        %276 = vector.broadcast %275 : vector<16x1xf32> to vector<16x64xf32>
        %277 = arith.mulf %274, %276 : vector<16x64xf32>
        %cst_93 = arith.constant dense<0.000000e+00> : vector<64xf32>
        %278 = vector.multi_reduction <add>, %277, %cst_93 [0] : vector<16x64xf32> to vector<64xf32>
        %279 = vector.shape_cast %278 : vector<64xf32> to vector<1x64xf32>
        %280 = arith.mulf %173, %274 : vector<16x64xf32>
        %281 = arith.addf %280, %207 : vector<16x64xf32>
        %282 = vector.extract_strided_slice %135 {offsets = [16, 0], sizes = [16, 1], strides = [1, 1]} : vector<32x1xf32> to vector<16x1xf32>
        %283 = vector.broadcast %282 : vector<16x1xf32> to vector<16x64xf32>
        %284 = arith.mulf %281, %283 : vector<16x64xf32>
        %cst_94 = arith.constant dense<0.000000e+00> : vector<64xf32>
        %285 = vector.multi_reduction <add>, %284, %cst_94 [0] : vector<16x64xf32> to vector<64xf32>
        %286 = vector.shape_cast %285 : vector<64xf32> to vector<1x64xf32>
        %287 = arith.mulf %169, %281 : vector<16x64xf32>
        %288 = arith.addf %287, %202 : vector<16x64xf32>
        %289 = vector.extract_strided_slice %130 {offsets = [16, 0], sizes = [16, 1], strides = [1, 1]} : vector<32x1xf32> to vector<16x1xf32>
        %290 = vector.broadcast %289 : vector<16x1xf32> to vector<16x64xf32>
        %291 = arith.mulf %288, %290 : vector<16x64xf32>
        %cst_95 = arith.constant dense<0.000000e+00> : vector<64xf32>
        %292 = vector.multi_reduction <add>, %291, %cst_95 [0] : vector<16x64xf32> to vector<64xf32>
        %293 = vector.shape_cast %292 : vector<64xf32> to vector<1x64xf32>
        %294 = tpu.concatenate %293, %286, %279, %272, %265, %258, %251, %244 in 0 : vector<1x64xf32>, vector<1x64xf32>, vector<1x64xf32>, vector<1x64xf32>, vector<1x64xf32>, vector<1x64xf32>, vector<1x64xf32>, vector<1x64xf32> -> vector<8x64xf32>
        %295 = arith.index_cast %119 : i32 to index
        %c0_96 = arith.constant 0 : index
        %296 = vector.load %arg22[%295, %c0_96] : memref<16x64xf32, #tpu.memory_space<vmem>>, vector<8x64xf32>
        tpu.vector_store %arg22[%295, %c0_96], %294 {strides = array<i32>} : memref<16x64xf32, #tpu.memory_space<vmem>>, vector<8x64xf32>,
        scf.yield %288 : vector<16x64xf32>
      }
      %c2_i32_73 = arith.constant 2 : i32
      %c0_74 = arith.constant 0 : index
      %c0_75 = arith.constant 0 : index
      %116 = vector.load %arg14[%c0_74, %c0_75] : memref<16x64xf32, #tpu.memory_space<vmem>>, vector<16x64xf32>
      tpu.vector_store %arg14[%c0_74, %c0_75], %115 {strides = array<i32>} : memref<16x64xf32, #tpu.memory_space<vmem>>, vector<16x64xf32>,
    } else {
    }
    %c0_51 = arith.constant 0 : index
    %c0_52 = arith.constant 0 : index
    %90 = vector.load %arg19[%c0_51, %c0_52] : memref<16x64xf32, #tpu.memory_space<vmem>>, vector<16x64xf32>
    %c0_53 = arith.constant 0 : index
    %c0_54 = arith.constant 0 : index
    %91 = vector.load %arg20[%c0_53, %c0_54] : memref<16x64xf32, #tpu.memory_space<vmem>>, vector<16x64xf32>
    %c0_55 = arith.constant 0 : index
    %c0_56 = arith.constant 0 : index
    %92 = vector.load %arg22[%c0_55, %c0_56] : memref<16x64xf32, #tpu.memory_space<vmem>>, vector<16x64xf32>
    %c0_57 = arith.constant 0 : index
    %c0_58 = arith.constant 0 : index
    %c0_59 = arith.constant 0 : index
    %93 = vector.load %arg11[%c0_57, %c0_58, %c0_59] : memref<1x1x64xf32, #tpu.memory_space<vmem>>, vector<1x1x64xf32>
    %94 = vector.shape_cast %93 : vector<1x1x64xf32> to vector<1x64xf32>
    %95 = vector.broadcast %94 : vector<1x64xf32> to vector<16x64xf32>
    %96 = arith.mulf %90, %95 : vector<16x64xf32>
    %97 = arith.addf %92, %96 : vector<16x64xf32>
    %cst_60 = arith.constant 0.000000e+00 : f32
    %98 = vector.broadcast %cst_60 : f32 to vector<16x64xf32>
    %99 = arith.subf %98, %91 : vector<16x64xf32>
    %100 = math.exp %99 : vector<16x64xf32>
    %cst_61 = arith.constant 1.000000e+00 : f32
    %101 = vector.broadcast %cst_61 : f32 to vector<16x64xf32>
    %102 = arith.addf %101, %100 : vector<16x64xf32>
    %cst_62 = arith.constant 1.000000e+00 : f32
    %103 = vector.broadcast %cst_62 : f32 to vector<16x64xf32>
    %104 = arith.divf %103, %102 : vector<16x64xf32>
    %105 = arith.mulf %91, %104 : vector<16x64xf32>
    %106 = arith.mulf %97, %105 : vector<16x64xf32>
    %107 = arith.truncf %106 : vector<16x64xf32> to vector<16x64xbf16>
    %c0_63 = arith.constant 0 : index
    %c0_64 = arith.constant 0 : index
    %108 = vector.load %arg12[%c0_63, %c0_64] : memref<64x32xbf16, #tpu.memory_space<vmem>>, vector<64x32xbf16>
    %cst_65 = arith.constant dense<0.000000e+00> : vector<16x32xf32>
    %109 = tpu.matmul %107, %108, %cst_65 {dimension_numbers = #tpu.dot_dimension_numbers<[1], [0], [0], [1], [0, 0, 1, 1], [], []>} : vector<16x64xbf16>, vector<64x32xbf16>, vector<16x32xf32> -> vector<16x32xf32>
    %c0_66 = arith.constant 0 : index
    %c0_67 = arith.constant 0 : index
    %c0_68 = arith.constant 0 : index
    %c0_69 = arith.constant 0 : index
    %110 = vector.load %arg13[%c0_66, %c0_67, %c0_68, %c0_69] : memref<1x1x16x32xf32, #tpu.memory_space<vmem>>, vector<1x1x16x32xf32>
    %111 = vector.shape_cast %110 : vector<1x1x16x32xf32> to vector<16x32xf32>
    %112 = vector.shape_cast %109 : vector<16x32xf32> to vector<1x1x16x32xf32>
    tpu.vector_store %arg13[%c0_66, %c0_67, %c0_68, %c0_69], %112 {strides = array<i32>} : memref<1x1x16x32xf32, #tpu.memory_space<vmem>>, vector<1x1x16x32xf32>,
    return
  }
  func.func @transform_0(%arg0: i32, %arg1: i32, %arg2: i32) -> (i32, i32, i32) {
    %c2_i32 = arith.constant 2 : i32
    %0 = arith.muli %c2_i32, %arg2 : i32
    %c1_i32 = arith.constant 1 : i32
    %1 = arith.subi %c1_i32, %0 : i32
    %2 = arith.muli %arg0, %1 : i32
    %3 = arith.addi %arg2, %2 : i32
    %c0_i32 = arith.constant 0 : i32
    %c0_i32_0 = arith.constant 0 : i32
    return %arg1, %3, %c0_i32 : i32, i32, i32
  }
  func.func @transform_1(%arg0: i32, %arg1: i32, %arg2: i32) -> (i32, i32) {
    %c0_i32 = arith.constant 0 : i32
    %c0_i32_0 = arith.constant 0 : i32
    %c0_i32_1 = arith.constant 0 : i32
    return %c0_i32, %c0_i32_0 : i32, i32
  }
  func.func @transform_2(%arg0: i32, %arg1: i32, %arg2: i32) -> (i32, i32, i32) {
    %c0_i32 = arith.constant 0 : i32
    %c0_i32_0 = arith.constant 0 : i32
    %c0_i32_1 = arith.constant 0 : i32
    return %arg0, %c0_i32, %c0_i32_0 : i32, i32, i32
  }
  func.func @transform_3(%arg0: i32, %arg1: i32, %arg2: i32) -> (i32, i32, i32) {
    %c0_i32 = arith.constant 0 : i32
    %c0_i32_0 = arith.constant 0 : i32
    %c0_i32_1 = arith.constant 0 : i32
    return %arg0, %c0_i32, %c0_i32_0 : i32, i32, i32
  }
  func.func @transform_4(%arg0: i32, %arg1: i32, %arg2: i32) -> (i32, i32, i32) {
    %c0_i32 = arith.constant 0 : i32
    %c0_i32_0 = arith.constant 0 : i32
    %c0_i32_1 = arith.constant 0 : i32
    return %arg0, %c0_i32, %c0_i32_0 : i32, i32, i32
  }
  func.func @transform_5(%arg0: i32, %arg1: i32, %arg2: i32) -> (i32, i32, i32) {
    %c0_i32 = arith.constant 0 : i32
    %c0_i32_0 = arith.constant 0 : i32
    %c0_i32_1 = arith.constant 0 : i32
    return %arg0, %c0_i32, %c0_i32_0 : i32, i32, i32
  }
  func.func @transform_6(%arg0: i32, %arg1: i32, %arg2: i32) -> (i32, i32, i32) {
    %c0_i32 = arith.constant 0 : i32
    %c0_i32_0 = arith.constant 0 : i32
    %c0_i32_1 = arith.constant 0 : i32
    return %arg0, %c0_i32, %c0_i32_0 : i32, i32, i32
  }
  func.func @transform_7(%arg0: i32, %arg1: i32, %arg2: i32) -> (i32, i32, i32) {
    %c0_i32 = arith.constant 0 : i32
    %c0_i32_0 = arith.constant 0 : i32
    %c0_i32_1 = arith.constant 0 : i32
    return %arg0, %c0_i32, %c0_i32_0 : i32, i32, i32
  }
  func.func @transform_8(%arg0: i32, %arg1: i32, %arg2: i32) -> (i32, i32, i32) {
    %c0_i32 = arith.constant 0 : i32
    %c0_i32_0 = arith.constant 0 : i32
    %c0_i32_1 = arith.constant 0 : i32
    return %arg0, %c0_i32, %c0_i32_0 : i32, i32, i32
  }
  func.func @transform_9(%arg0: i32, %arg1: i32, %arg2: i32) -> (i32, i32) {
    %c0_i32 = arith.constant 0 : i32
    %c0_i32_0 = arith.constant 0 : i32
    %c0_i32_1 = arith.constant 0 : i32
    return %c0_i32, %c0_i32_0 : i32, i32
  }
  func.func @transform_10(%arg0: i32, %arg1: i32, %arg2: i32) -> (i32, i32, i32, i32) {
    %c2_i32 = arith.constant 2 : i32
    %0 = arith.muli %c2_i32, %arg2 : i32
    %c1_i32 = arith.constant 1 : i32
    %1 = arith.subi %c1_i32, %0 : i32
    %2 = arith.muli %arg0, %1 : i32
    %3 = arith.addi %arg2, %2 : i32
    %c0_i32 = arith.constant 0 : i32
    %c0_i32_0 = arith.constant 0 : i32
    return %arg0, %arg1, %3, %c0_i32 : i32, i32, i32, i32
  }
}

</mosaic_0001>

<bundles_post_ra>
// kernel: tpu_custom_call.1
= control target key start
LH: loop header
LB: loop body
LE: loop exit
PB: predicated region body
PF: predicated region fallthrough
CT: control target
= control target key end

     0   :  { %s3772_s0 = inlined_call_operand.vmem [shape: f32[2,32,32], index: 0, kind: input, shape index: {}]   ;;  %s3773_s1 = inlined_call_operand.vmem [shape: bf16[32,128], index: 1, kind: input, shape index: {}]   ;;  %s3774_s2 = inlined_call_operand.vmem [shape: f32[2,4,64], index: 2, kind: input, shape index: {}]   ;;  %s3775_s3 = inlined_call_operand.vmem [shape: f32[2,1,64], index: 3, kind: input, shape index: {}]   ;;  %s3776_s4 = inlined_call_operand.vmem [shape: bf16[2,64,34], index: 4, kind: input, shape index: {}]   ;;  %s3777_s5 = inlined_call_operand.vmem [shape: bf16[2,2,64], index: 5, kind: input, shape index: {}]   ;;  %s3778_s6 = inlined_call_operand.vmem [shape: f32[2,1,64], index: 6, kind: input, shape index: {}]   ;;  %s3779_s7 = inlined_call_operand.vmem [shape: f32[2,16,64], index: 7, kind: input, shape index: {}]   ;;  %s3780_s8 = inlined_call_operand.hbm [shape: f32[2,1,64], index: 8, kind: input, shape index: {}]   ;;  %s3781_s9 = inlined_call_operand.vmem [shape: bf16[64,32], index: 9, kind: input, shape index: {}]   ;;  %s3782_s10 = inlined_call_operand.hbm [shape: f32[2,2,32,32], index: 10, kind: output, shape index: {}]  }
   0x1   :  { %3804 = sst [smem:[#allocation32_spill]] %s3772_s0 }
   0x2   :  { %3805 = sst [smem:[#allocation33_spill]] %s3773_s1 }
   0x3   :  { %3806 = sst [smem:[#allocation34_spill]] %s3774_s2 }
   0x4   :  { %3807 = sst [smem:[#allocation35_spill]] %s3775_s3 }
   0x5   :  { %3808 = sst [smem:[#allocation36_spill]] %s3776_s4 }
   0x6   :  { %3809 = sst [smem:[#allocation37_spill]] %s3777_s5 }
   0x7   :  { %3810 = sst [smem:[#allocation38_spill]] %s3778_s6 }
   0x8   :  { %3811 = sst [smem:[#allocation39_spill]] %s3779_s7 }
   0x9   :  { %3812 = sst [smem:[#allocation40_spill]] %s3780_s8 }
   0xa   :  { %3813 = sst [smem:[#allocation41_spill]] %s3781_s9 }
   0xb   :  { %3814 = sst [smem:[#allocation42_spill]] %s3782_s10 }
   0xc   :  { %15 = vsyncpa [#allocation12], 0 }
   0xd   :  { %17 = vsyncpa [#allocation12 + $0x1], 0 }
   0xe   :  { %18 = vsyncpa [#allocation13], 0 }
   0xf   :  { %20 = vsyncpa [#allocation13 + $0x1], 0  ;;  %s2825_s13 = smov 0   ;;  %s2827_s14 = smov 0  }
  0x10   :  { %s2829_s15 = smov 0   ;;  %s2831_s16 = smov 0  }
  0x11   :  { %s2833_s17 = smov 0   ;;  %s2835_s18 = smov 0  }
  0x12   :  { %s2837_s19 = smov 0   ;;  %s2839_s20 = smov 0  }
  0x13   :  { %s2841_s21 = smov 0   ;;  %s2843_s22 = smov 0  }
  0x14   :  { %s2845_s23 = smov 0   ;;  %s2847_s24 = smov 0  }
  0x15   :  { %s2849_s25 = smov 0  }
  0x16 LB: > { %3815 = sst [smem:[#allocation17_spill]] %s2687_s13  ;;  %s3784_s26 = sadd.s32 4294967295, %s2735_s25   ;;  %s2735_s25 = sphi %s2849_s25, %s26_s25   ;;  %s2731_s24 = sphi %s2847_s24, %s3880_s24   ;;  %s2727_s23 = sphi %s2845_s23, %s3879_s23   ;;  %s2723_s22 = sphi %s2843_s22, %s3878_s22   ;;  %s2719_s21 = sphi %s2841_s21, %s3877_s21   ;;  %s2715_s20 = sphi %s2839_s20, %s3876_s20   ;;  %s2711_s19 = sphi %s2837_s19, %s3875_s19   ;;  %s2707_s18 = sphi %s2835_s18, %s3874_s18   ;;  %s2703_s17 = sphi %s2833_s17, %s3873_s17   ;;  %s2699_s16 = sphi %s2831_s16, %s3884_s16   ;;  %s2695_s15 = sphi %s2829_s15, %s3871_s15   ;;  %s2691_s14 = sphi %s2827_s14, %s3883_s14   ;;  %s2687_s13 = sphi %s2825_s13, %s3882_s13  }
  0x17   : > { %3816 = sst [smem:[#allocation18_spill]] %s2695_s15  ;;  %s38_s28 = sadd.s32 1, %s2723_s22 }
  0x18   : > { %3817 = sst [smem:[#allocation19_spill]] %s2703_s17  ;;  %s41_s29 = sadd.s32 1, %s2727_s23 }
  0x19   : > { %3818 = sst [smem:[#allocation20_spill]] %s2707_s18  ;;  %p39_p0 = scmp.ge.s32.totalorder %s38_s28, 2 }
  0x1a   : > { %3819 = sst [smem:[#allocation21_spill]] %s2723_s22  ;;  %s45_s30 = sadd.s32 1, %s2731_s24 }
  0x1b   : > { %3820 = sst [smem:[#allocation22_spill]] %s2727_s23  ;;  %s265_s11 = sadd.s32 1, %s2707_s18 }
  0x1c   : > { %3821 = sst [smem:[#allocation23_spill]] %s2731_s24  ;;  %p272_p1 = scmp.ne.s32.totalorder %s2707_s18, %s2703_s17 }
  0x1d   : > { %3822 = sst [smem:[#allocation24_spill]] %s2735_s25  ;;  %s3886_s28 = smov (%p39_p0, %s38_s28), 0 }
  0x1e   : > { %3823 = sst [smem:[#allocation25_spill]] %s3886_s28  ;;  %s3888_s29 = smov (!%p39_p0, %s41_s29), %s2727_s23 }
  0x1f   : > { %p273_p2 = scmp.eq.s32.totalorder %s2735_s25, 0  ;;  %p278_p3 = scmp.ne.s32.totalorder %s2703_s17, %s2699_s16 }
  0x20   : > { %p43_p4 = scmp.ge.s32.totalorder %s3888_s29, 2  ;;  %p279_p5 = scmp.eq.s32.totalorder %s3784_s26, 0 }
  0x21   : > { %p2903_p6 = por %p273_p2, %p272_p1  ;;  %s2166_s27 = sshll.u32 %s2723_s22, 1 }
  0x22   : > { %s3890_s29 = smov (%p43_p4, %s3888_s29), 0  ;;  %s3892_s30 = smov (!%p43_p4, %s45_s30), %s2731_s24 }
  0x23   : > { %3825 = sst [smem:[#allocation26_spill]] %s3890_s29  ;;  %p2911_p7 = por %p279_p5, %p278_p3 }
  0x24   : > { %s310_s16 = ssub.s32 1, %s2166_s27  ;;  %p47_p8 = scmp.ge.s32.totalorder %s3892_s30, 2 }
  0x25   : > { %s311_s26 = smul.u32 %s2731_s24, %s310_s16  ;;  %s2167_s9 = sshll.u32 %s3886_s28, 1 }
  0x26   : > { %s318_s1 = ssub.s32 %s2727_s23, %s3890_s29  ;;  %s3894_s30 = smov (%p47_p8, %s3892_s30), 0 }
  0x27   : > { %3827 = sst [smem:[#allocation27_spill]] %s3894_s30  ;;  %s312_s7 = sadd.s32 %s2723_s22, %s311_s26 }
  0x28   : > { %s314_s6 = ssub.s32 1, %s2167_s9  ;;  %s262_s5 = ssub.s32 %s2731_s24, %s3894_s30 }
  0x29   : > { %s315_s4 = smul.u32 %s314_s6, %s3894_s30  ;;  %p263_p9 = scmp.eq.s32.totalorder %s262_s5, 0 }
  0x2a   : > { %s319_s27 = sor.u32 %s318_s1, %s262_s5  ;;  %s324_s3 = sadd.s32 1, %s2695_s15 }
  0x2b   : > { %s316_s16 = sadd.s32 %s315_s4, %s3886_s28  ;;  %p334_p10 = scmp.ne.s32.totalorder %s2695_s15, %s2691_s14 }
  0x2c   : > { %s2928_s29 = scalar_select %p263_p9, %s2707_s18, %s265_s11  }
  0x2d   : > { %s320_s23 = ssub.s32 %s312_s7, %s316_s16  ;;  %s3829_s0 = sadd.s32 4294967295, %s2735_s25  }
  0x2e   : > { %3828 = sst [smem:[#allocation28_spill]] %s2928_s29  ;;  %s321_s2 = sor.u32 %s320_s23, %s319_s27 }
  0x2f   : > { %p335_p11 = scmp.eq.s32.totalorder %s3829_s0, 7  ;;  %p322_p12 = scmp.eq.s32.totalorder %s321_s2, 0 }
  0x30   : > { %p340_p13 = scmp.ne.s32.totalorder %s2691_s14, %s2687_s13  ;;  %s3832_s1 = sadd.s32 4294967294, %s2735_s25  }
  0x31   : > { %p2936_p0 = por %p335_p11, %p334_p10  ;;  %p341_p1 = scmp.eq.s32.totalorder %s3832_s1, 7 }
  0x32   : > { %s2943_s4 = scalar_select %p322_p12, %s2695_s15, %s324_s3  }
  0x33   : > { %s3830_s6 = scalar_select %p2936_p0, 1, 0 }
  0x34   : > { %3833 = sst [smem:[#allocation30_spill]] %s2943_s4  ;;  %p2945_p2 = por %p341_p1, %p340_p13 }
  0x35   : > { %3831 = sst [smem:[#allocation29_spill]] %s3830_s6  ;;  %p2284_p3 = scmp.lt.s32.totalorder %s2735_s25, 8 }
  0x36   : > { %s3834_s5 = scalar_select %p2945_p2, 1, 0 }
  0x37   : > { %s429_s7 = sand.u32 1, %s2707_s18   ;;  %s2170_s9 = sshll.u32 %s2731_s24, 4 }
  0x38   : > { %3835 = sst [smem:[#allocation31_spill]] %s3834_s5  ;;  %s432_s23 = scalar_lea.vmem [#allocation11], %s429_s7 }
  0x39   : > { %s439_s0 = sshll.u32 %s432_s23, 4  ;;  %s3836_s8 = sld [smem:[#allocation40_spill]]  ;;  %s2957_s0 = int_to_ptr.vmem [resolvable:$true] %s439_s0 }
  0x3a   : > { %p2961_p4 = pnand %p2284_p3, %p2903_p6  ;;  %s430_s27 = scalar_lea.sflag [#allocation12], %s429_s7 }
  0x3c   : > { %p2545_p10 = pneg %p2961_p4 }
  0x3f   : > { %s2955_s11 = scalar_lea.hbm %s3836_s8, %s2170_s9  ;;  %s2548_s12 = scalar_lea.hbm %s3836_s8, 32 }
  0x40   : > { %s2543_s16 = scalar_lea.hbm %s2955_s11, 16  ;;  %p2549_p6 = scmp.lt.u32.totalorder %s2955_s11, %s3836_s8 }
  0x41   : > { %p2544_p9 = scmp.ne.s32.totalorder %s2955_s11, %s2543_s16  ;;  %p2550_p13 = scmp.lt.u32.totalorder %s2548_s12, %s2543_s16 }
  0x42   : > { %p2552_p3 = scmp.lt.u32.totalorder %s2543_s16, %s2955_s11 }
  0x43   : > { %p2546_p11 = pnand %p2545_p10, %p2544_p9  ;;  %p2551_p1 = por %p2550_p13, %p2549_p6 }
  0x45   : > { %p2547_p12 = pneg %p2546_p11  ;;  %p2553_p5 = por %p2552_p3, %p2551_p1 }
  0x47   : > { %p2554_p8 = pnand %p2553_p5, %p2547_p12 }
  0x49   : > { %2557 = shalt.err (!%p2554_p8)
}
  0x4a   : > { %s2558_s7 = scalar_lea.vmem %s2957_s0, 16  ;;  %s2761_s2 = smov [#allocation11]  }
  0x4b   : > { %p2559_p9 = scmp.ne.s32.totalorder %s2957_s0, %s2558_s7  ;;  %s2563_s1 = sshll.u32 %s2761_s2, 4  ;;  %s2564_s1 = int_to_ptr.vmem [resolvable:$false] %s2563_s1 }
  0x4c   : > { %s2565_s9 = scalar_lea.vmem %s2564_s1, 32  ;;  %p2566_p0 = scmp.lt.s32.totalorder %s2957_s0, %s2564_s1 }
  0x4d   : > { %p2561_p11 = pnand %p2559_p9, %p2545_p10  ;;  %p2567_p6 = scmp.lt.s32.totalorder %s2565_s9, %s2558_s7 }
  0x4f   : > { %p2562_p2 = pneg %p2561_p11  ;;  %p2568_p13 = por %p2567_p6, %p2566_p0 }
  0x51   : > { %p2569_p1 = pnand %p2568_p13, %p2562_p2 }
  0x53   : > { %2572 = shalt.err (!%p2569_p1)
}
  0x54   : > { %2279 = dma.hbm_to_vmem [thread:$0]  (!%p2961_p4), %s2955_s11, 16, %s2957_s0, %s430_s27  }
  0x55   : > { %p3838_p5 = scmp.lt.s32.totalorder %s2735_s25, 9  ;;  %p3839_p8 = scmp.ge.s32.totalorder %s2735_s25, 1 }
  0x57   : > { %p445_p10 = pnand %p3839_p8, %p3838_p5 }
  0x58   : > { %s450_s16 = sand.u32 (!%p445_p10), 1, %s2703_s17  }
  0x59   : > { %448 = sbr.rel (%p445_p10) target bundleno = 1725 (0x6bd), region = 60  ;;  %s451_s12 = scalar_lea.sflag (!%p445_p10), [#allocation12], %s450_s16 }
  0x5a   : > { %s2997_s23 = scalar_lea.vmem (!%p445_p10), [#allocation11], %s450_s16 }
  0x60   : > { %2678 = dma.done.wait (%p2911_p7), %s451_s12, 16  }
  0x61   : > { %2680 = vsyncadd (%p2911_p7), %s451_s12, 4294967280  ;;  %s3790_s0 = sand.u32 1, %s2691_s14   ;;  %s2173_s11 = sshll.u32 %s2711_s19, 1 }
  0x62   : > { %s2172_s3 = sshll.u32 %s3790_s0, 4  ;;  %s526_s27 = ssub.s32 1, %s2173_s11 }
  0x63   : > { %s527_s26 = smul.u32 %s2719_s21, %s526_s27  ;;  %p530_p0 = scmp.lt.s32.totalorder %s2715_s20, 1 }
  0x64   : > { %p572_p2 = scmp.eq.s32.totalorder %s2719_s21, 0  ;;  %p543_p7 = scmp.lt.s32.totalorder %s2719_s21, 1 }
  0x65   : > { %s528_s7 = sadd.s32 %s2711_s19, %s527_s26  ;;  %s3840_s0 = sld [smem:[#allocation32_spill]] }
  0x66   : > { %s3011_s10 = sshll.u32 %s528_s7, 1  ;;  %s3841_s24 = sld [smem:[#allocation34_spill]] }
  0x67   : > { %s531_s2 = scalar_select %p530_p0, %s2715_s20, 1 }
  0x68   : > { %p532_p4 = scmp.lt.s32.totalorder %s3011_s10, 3  ;;  %s3842_s18 = sld [smem:[#allocation35_spill]] }
  0x69   : > { %s2175_s1 = sshll.u32 %s531_s2, 2  ;;  %s3843_s13 = sld [smem:[#allocation36_spill]] }
  0x6a   : > { %s533_s9 = scalar_select %p532_p4, %s3011_s10, 3 }
  0x6b   : > { %s3018_s16 = scalar_select %p543_p7, %s2719_s21, 1 }
  0x6c   : > { %s535_s12 = sadd.s32 %s2175_s1, %s533_s9  ;;  %s3844_s25 = sld [smem:[#allocation37_spill]] }
  0x6d   : > { %s2176_s11 = sshll.u32 %s535_s12, 3  ;;  %s2177_s27 = sshll.u32 %s3018_s16, 2 }
  0x6e   : > { %s537_s8 = scalar_lea.vmem %s3840_s0, %s2176_s11  ;;  %s3027_s2 = scalar_lea.vmem %s3841_s24, %s2177_s27 }
  0x6f   : > { %s549_s17 = scalar_lea.vmem %s3842_s18, %s3018_s16  ;;  %s2217_s4 = sshll.u32 %s3018_s16, 5 }
  0x70   : > { %s3037_s1 = scalar_lea.vmem %s3843_s13, %s2217_s4  ;;  %s3845_s7 = sld [smem:[#allocation38_spill]] }
  0x71   : > { %s2218_s24 = sshll.u32 %s3018_s16, 4  ;;  %s3846_s6 = sld [smem:[#allocation39_spill]] }
  0x72   : > { %s557_s26 = scalar_lea.vmem %s3844_s25, %s3018_s16  ;;  %s3053_s18 = scalar_lea.vmem [#allocation14], %s2172_s3 }
  0x73   : > { %p2182_p12 = scmp.ne.s32.totalorder %s2711_s19, 0 }
  0x74   : > { %vm578_vm0 = vcmask (!%p2182_p12), 523264   ;;  %vm581_vm1 = vcmask (!%p2182_p12), 518144   ;;  %v2762_v0 = vmov (!%p2182_p12), 0.0  }
  0x75   : > { %577 = sbr.rel (%p2182_p12) target bundleno = 124 (0x7c), region = 68  ;;  %579 = vst.msk [vmem:[#allocation2] sm:$0xff] (!%p2182_p12), %vm578_vm0, %v2762_v0  ;;  %580 = vst.msk [vmem:[#allocation2 + $0x8] sm:$0xff] (!%p2182_p12), %vm578_vm0, %v2762_v0 }
  0x76   : > { %s560_s28 = scalar_lea.vmem %s3845_s7, %s3018_s16  ;;  %582 = vst.msk [vmem:[#allocation3] sm:$0x7] (!%p2182_p12), %vm581_vm1, %v2762_v0 }
  0x77   : > { %s3051_s22 = scalar_lea.vmem %s3846_s6, %s2218_s24 }
  0x7c PF: > { %s3847_s25 = sld [smem:[#allocation33_spill]]  ;;  %v2763_v2 = vmov 0.0   ;;  %vm2764_vm2 = vmmov 0   ;;  %v583_v4 = vld [vmem:[%s537_s8] sm:$0xff]  ;;  %v584_v5 = vld [vmem:[%s537_s8 + $0x8] sm:$0xff]  ;;  %vm602_vm3 = vcmask 261120  }
  0x7d   : > { %2234 = vmatprep.subr.bf16.mxu1 %v2763_v2  ;;  %2238 = vmatprep.mubr.msk.bf16.mxu1 %vm2764_vm2, %v2763_v2  ;;  %v585_v6 = vpack.c.bf16 %v584_v5, %v583_v4  ;;  %s2765_s19 = smov 64   ;;  %vm655_vm4 = vcmask 523264   ;;  %p2186_p3 = scmp.ne.s32.totalorder %s2719_s21, 0 }
  0x7e   : > { %v661_v13 = vld [vmem:[#allocation3] sm:$0x7] (!%p2186_p3)  ;;  %vm662_vm5 = vcmask (!%p2186_p3), 518144   ;;  %vm666_vm6 = vcmask (!%p2186_p3), 523269  }
  0x7f   : > { %663 = vst.msk [vmem:[#allocation4] sm:$0x7] (!%p2186_p3), %vm662_vm5, %v661_v13 }
  0x82   : > { %s3848_s29 = smov %s3847_s25  ;;  %v2445_v1 = vld [vmem:[%s3847_s25] sm:$0xff]  }
  0x83   : > { %2235 = vmatpush3.bf16.msra.mxu1 %v2445_v1  ;;  %v2446_v3 = vld [vmem:[%s3848_s29 + $0x8] sm:$0xff]  }
  0x84   : > { %2236 = vmatprep.subr.bf16.mxu1 %v2763_v2 }
  0x87   : > { %2237 = vmatpush3.bf16.msra.mxu1 %v2446_v3 }
  0x8a   : > { %2239 = vmatmul.mubr.msk.bf16.vlgmr.msra.gmra.mrb[0].mxu1 %vm602_vm3, %v585_v6 }
 0x15d   : > { %v640_v7 = vpop.f32.mrb[0].mxu1 }
 0x15e   : > { %649 = vrot.lane.b32.xlu0 %v640_v7, %s2765_s19  ;;  %v2240_v8 = vpop.f32.mrb[1].mxu1  ;;  %664 = vst.msk [vmem:[#allocation4 + $0x3] sm:$0xff] (!%p2186_p3), %vm655_vm4, %v640_v7 }
 0x15f   : > { %v643_v9 = vpop.f32.mrb[2].mxu1 }
 0x160   : > { %v2241_v10 = vpop.f32.mrb[3].mxu1  ;;  %665 = vst.msk [vmem:[#allocation4 + $0xb] sm:$0xff] (!%p2186_p3), %vm655_vm4, %v643_v9 }
 0x161   : > { %667 = vst.msk [vmem:[#allocation3 - $0x5] sm:$0xe0] (!%p2186_p3), %vm666_vm6, %v643_v9 }
 0x162   : > { %651 = vrot.lane.b32.xlu0 %v643_v9, %s2765_s19 }
 0x1cf   : > { %660 = sbr.rel (%p2186_p3) target bundleno = 470 (0x1d6), region = 72 }
 0x1d0   : > { %v650_v11 = vpop.permute.xlu0 %649 }
 0x1d1   : > { %656 = vst.msk [vmem:[#allocation8] sm:$0xff] %vm655_vm4, %v650_v11 }
 0x1d4   : > { %v652_v12 = vpop.permute.xlu0 %651 }
 0x1d5   : > { %657 = vst.msk [vmem:[#allocation8 + $0x8] sm:$0xff] %vm655_vm4, %v652_v12 }
 0x1d6 PF: > { %670 = sbr.rel (%p572_p2) target bundleno = 477 (0x1dd), region = 76  ;;  %671 = vst.msk [vmem:[#allocation4] sm:$0xff] (!%p572_p2), %vm655_vm4, %v640_v7  ;;  %672 = vst.msk [vmem:[#allocation4 + $0x8] sm:$0xff] (!%p572_p2), %vm655_vm4, %v643_v9  ;;  %v673_v14 = vld [vmem:[#allocation3] sm:$0x7] (!%p572_p2)  ;;  %vm674_vm7 = vcmask (!%p572_p2), 518144  }
 0x1d7   : > { %675 = vst.msk [vmem:[#allocation4 + $0x10] sm:$0x7] (!%p572_p2), %vm674_vm7, %v673_v14  ;;  %676 = vst.msk [vmem:[#allocation3] sm:$0x7] (!%p572_p2), %vm674_vm7, %v640_v7 }
 0x1dd PF: > { %2242 = vmatprep.subr.bf16.mxu1 %v2763_v2  ;;  %v2447_v15 = vld [vmem:[%s3037_s1] sm:$0xff]   ;;  %2250 = vmatprep.mubr.msk.bf16.mxu1 %vm2764_vm2, %v2763_v2  ;;  %v687_v16 = vlaneseq  ;;  %v2448_v17 = vld [vmem:[%s3037_s1 + $0x8] sm:$0xff]   ;;  %v685_v22 = vld [vmem:[#allocation4] sm:$0xff]  ;;  %vm831_vm12 = vcmask 1040384   ;;  %s2766_s9 = smov 126   ;;  %vm827_vm13 = vcmask 15360  }
 0x1de   : > { %2254 = vmatprep.subr.bf16.mxu0 %v2763_v2  ;;  %2256 = vmatprep.mubr.msk.bf16.mxu0 %vm2764_vm2, %v2763_v2  ;;  %v677_v20 = vld [vmem:[%s3027_s2] sm:$0xf]  ;;  %v2449_v27 = vld [vmem:[%s3037_s1 + $0x10] sm:$0xff]   ;;  %v2450_v47 = vld [vmem:[%s3037_s1 + $0x18] sm:$0xff]   ;;  %s3165_s16 = smov (!%p2186_p3), 0  }
 0x1df   : > { %2243 = vmatpush3.bf16.msra.mxu1 %v2447_v15  ;;  %v3086_v18 = vshrl.u32 %v687_v16, 7  ;;  %v916_v19 = vand.u32 127, %v687_v16  ;;  %v686_v23 = vld [vmem:[#allocation4 + $0x8] sm:$0xff] }
 0x1e0   : > { %2244 = vmatprep.subr.bf16.mxu1 %v2763_v2  ;;  %v695_v29 = vld [vmem:[#allocation4 + $0x1] sm:$0xff]  ;;  %v696_v30 = vld [vmem:[#allocation4 + $0x9] sm:$0xff] }
 0x1e1   : > { %v3091_v21 = vsub.s32 0, %v3086_v18  ;;  %v3094_v24 = vsub.s32 1, %v3086_v18  ;;  %v3097_v25 = vsub.s32 2, %v3086_v18  ;;  %v3100_v26 = vsub.s32 3, %v3086_v18  ;;  %v2188_v34 = vld [vmem:[%s549_s17] ss:$0 sm:$0xff] }
 0x1e2   : > { %vm917_vm8 = vcmp.eq.s32.totalorder %v3086_v18, %v916_v19  ;;  %v912_v31 = vadd.s32 8, %v3086_v18  ;;  %v913_v32 = vadd.s32 16, %v3086_v18  ;;  %v914_v33 = vadd.s32 24, %v3086_v18  ;;  %v705_v36 = vld [vmem:[#allocation4 + $0x2] sm:$0xff]  ;;  %v706_v37 = vld [vmem:[#allocation4 + $0xa] sm:$0xff] }
 0x1e3   : > { %2245 = vmatpush3.bf16.msra.mxu1 %v2448_v17  ;;  %v690_v28 = vrot.slane %v677_v20, %v3091_v21  ;;  %v700_v35 = vrot.slane %v677_v20, %v3094_v24  ;;  %v710_v38 = vrot.slane %v677_v20, %v3097_v25  ;;  %v720_v39 = vrot.slane %v677_v20, %v3100_v26  ;;  %v715_v43 = vld [vmem:[#allocation4 + $0x3] sm:$0xff]  ;;  %v716_v46 = vld [vmem:[#allocation4 + $0xb] sm:$0xff] }
 0x1e4   : > { %2246 = vmatprep.subr.bf16.mxu1 %v2763_v2  ;;  %v3120_v40 = vsel %vm917_vm8, 1.0, %v2763_v2  ;;  %vm918_vm9 = vcmp.eq.s32.totalorder %v912_v31, %v916_v19  ;;  %vm919_vm10 = vcmp.eq.s32.totalorder %v913_v32, %v916_v19  ;;  %vm920_vm11 = vcmp.eq.s32.totalorder %v914_v33, %v916_v19  ;;  %v819_v13 = vld [vmem:[%s557_s26] sm:$0x1] }
 0x1e5   : > { %v691_v41 = vmul.f32 %v690_v28, %v685_v22  ;;  %v692_v42 = vmul.f32 %v690_v28, %v686_v23  ;;  %v701_v44 = vmul.f32 %v700_v35, %v695_v29  ;;  %v702_v45 = vmul.f32 %v700_v35, %v696_v30  ;;  %v3148_v28 = vld [vmem:[%s3051_s22 + $0x8] sm:$0xff]  ;;  %v2194_v29 = vld [vmem:[%s560_s28] ss:$0 sm:$0xff] }
 0x1e6   : > { %v711_v50 = vmul.f32 %v710_v38, %v705_v36  ;;  %v712_v51 = vmul.f32 %v710_v38, %v706_v37  ;;  %v721_v52 = vmul.f32 %v720_v39, %v715_v43  ;;  %v3125_v53 = vsel %vm918_vm9, 1.0, %v2763_v2 }
 0x1e7   : > { %2247 = vmatpush3.bf16.msra.mxu1 %v2449_v27  ;;  %v693_v48 = vadd.f32 %v2188_v34, %v691_v41  ;;  %v694_v49 = vadd.f32 %v2188_v34, %v692_v42  ;;  %v3128_v54 = vsel %vm919_vm10, 1.0, %v2763_v2  ;;  %v722_v57 = vmul.f32 %v720_v39, %v716_v46  ;;  %v3145_v27 = vld [vmem:[%s3051_s22] sm:$0xff] }
 0x1e8   : > { %2248 = vmatprep.subr.bf16.mxu1 %v2763_v2  ;;  %v3131_v58 = vsel %vm920_vm11, 1.0, %v2763_v2  ;;  %v833_v14 = vsel %vm831_vm12, %v819_v13, 0 }
 0x1e9   : > { %v703_v55 = vadd.f32 %v701_v44, %v693_v48  ;;  %v704_v56 = vadd.f32 %v702_v45, %v694_v49  ;;  %2255 = vmatpush3.bf16.msra.mxu0 %v833_v14 }
 0x1eb   : > { %2249 = vmatpush3.bf16.msra.mxu1 %v2450_v47  ;;  %v713_v59 = vadd.f32 %v711_v50, %v703_v55  ;;  %v714_v60 = vadd.f32 %v712_v51, %v704_v56  ;;  %v932_v55 = vld [vmem:[#allocation2] sm:$0xff] (!%p2186_p3)   ;;  %v933_v56 = vld [vmem:[#allocation2 + $0x8] sm:$0xff] (!%p2186_p3)  }
 0x1ed   : > { %v723_v61 = vadd.f32 %v721_v52, %v713_v59  ;;  %v724_v62 = vadd.f32 %v722_v57, %v714_v60 }
 0x1ef   : > { %v725_v63 = vsub.f32 0.0, %v723_v61  ;;  %v726_v0 = vsub.f32 0.0, %v724_v62 }
 0x1f1   : > { %v727_v1 = vmul.f32 1.442695, %v725_v63  ;;  %v729_v3 = vmul.f32 1.442695, %v726_v0 }
 0x1f3   : > { %2451 = vpow2.f32 %v727_v1 }
 0x1f4   : > { %2453 = vpow2.f32 %v729_v3 }
 0x1fd   : > { %v2452_v4 = vpop.eup %2451 }
 0x1fe   : > { %v2454_v5 = vpop.eup %2453  ;;  %v731_v6 = vadd.f32 1.0, %v2452_v4 }
 0x1ff   : > { %v732_v7 = vadd.f32 1.0, %v2454_v5 }
 0x200   : > { %2455 = vrcp.f32 %v731_v6 }
 0x201   : > { %2457 = vrcp.f32 %v732_v7 }
 0x20a   : > { %v2456_v8 = vpop.eup %2455 }
 0x20b   : > { %v2458_v9 = vpop.eup %2457  ;;  %v737_v10 = vmul.f32 %v2456_v8, %v723_v61 }
 0x20c   : > { %v738_v11 = vmul.f32 %v2458_v9, %v724_v62 }
 0x20d   : > { %739 = vst.msk [vmem:[#allocation7] sm:$0xff] %vm655_vm4, %v737_v10 }
 0x20e   : > { %740 = vst.msk [vmem:[#allocation7 + $0x8] sm:$0xff] %vm655_vm4, %v738_v11  ;;  %v741_v12 = vpack.c.bf16 %v738_v11, %v737_v10 }
 0x210   : > { %2251 = vmatmul.mubr.msk.bf16.vlgmr.msra.gmra.mrb[4].mxu1 %vm655_vm4, %v741_v12 }
 0x2e3   : > { %v811_v15 = vpop.f32.mrb[4].mxu1 }
 0x2e4   : > { %900 = vrot.lane.b32.xlu0 %v811_v15, %s2766_s9  ;;  %v2252_v16 = vpop.f32.mrb[5].mxu1 }
 0x2e5   : > { %v814_v17 = vpop.f32.mrb[6].mxu1 }
 0x2e6   : > { %v818_v19 = vpack.c.bf16 %v814_v17, %v811_v15  ;;  %v2253_v20 = vpop.f32.mrb[7].mxu1 }
 0x2e8   : > { %902 = vrot.lane.b32.xlu0 %v814_v17, %s2766_s9  ;;  %2257 = vmatmul.mubr.msk.bf16.vlgmr.msra.gmra.mrb[0].mxu0 %vm827_vm13, %v818_v19 }
 0x356   : > { %v901_v22 = vpop.permute.xlu0 %900 }
 0x357   : > { %906 = vst.msk [vmem:[#allocation9] sm:$0xff] %vm602_vm3, %v901_v22 }
 0x35a   : > { %v903_v23 = vpop.permute.xlu0 %902 }
 0x35b   : > { %907 = vst.msk [vmem:[#allocation9 + $0x8] sm:$0xff] %vm602_vm3, %v903_v23 }
 0x3bb   : > { %v869_v30 = vpop.f32.mrb[0].mxu0 }
 0x3bc   : > { %v870_v31 = vadd.f32 %v2194_v29, %v869_v30  ;;  %v2258_v32 = vpop.f32.mrb[1].mxu0 }
 0x3bd   : > { %v872_v33 = vpop.f32.mrb[2].mxu0 }
 0x3be   : > { %v878_v34 = vmin.f32 %v870_v31, 20.0  ;;  %v873_v35 = vadd.f32 %v2194_v29, %v872_v33  ;;  %v2259_v36 = vpop.f32.mrb[3].mxu0  ;;  %vm876_vm14 = vcmp.gt.f32.partialorder %v870_v31, 20.0 }
 0x3c0   : > { %v880_v37 = vmul.f32 1.442695, %v878_v34  ;;  %v879_v38 = vmin.f32 %v873_v35, 20.0  ;;  %vm877_vm15 = vcmp.gt.f32.partialorder %v873_v35, 20.0 }
 0x3c2   : > { %2459 = vpow2.f32 %v880_v37  ;;  %v882_v39 = vmul.f32 1.442695, %v879_v38 }
 0x3c4   : > { %2461 = vpow2.f32 %v882_v39 }
 0x3cc   : > { %v2460_v41 = vpop.eup %2459 }
 0x3cd   : > { %v884_v42 = vadd.f32 1.0, %v2460_v41 }
 0x3ce   : > { %v2462_v43 = vpop.eup %2461 }
 0x3cf   : > { %2463 = vlog2.f32 %v884_v42  ;;  %v885_v44 = vadd.f32 1.0, %v2462_v43 }
 0x3d1   : > { %2465 = vlog2.f32 %v885_v44 }
 0x3d9   : > { %v2464_v45 = vpop.eup %2463 }
 0x3da   : > { %v887_v46 = vmul.f32 0.6931472, %v2464_v45 }
 0x3db   : > { %v2466_v47 = vpop.eup %2465  ;;  %931 = sbr.rel (%p2186_p3) target bundleno = 1223 (0x4c7), region = 80 }
 0x3dc   : > { %v890_v48 = vsel %vm876_vm14, %v870_v31, %v887_v46  ;;  %v889_v49 = vmul.f32 0.6931472, %v2466_v47 }
 0x3dd   : > { %892 = vst.msk [vmem:[#allocation5] sm:$0xff] %vm655_vm4, %v890_v48  ;;  %v894_v50 = vmul.f32 %v890_v48, %v737_v10 }
 0x3de   : > { %v891_v51 = vsel %vm877_vm15, %v873_v35, %v889_v49 }
 0x3df   : > { %896 = vst.msk [vmem:[#allocation6] sm:$0xff] %vm655_vm4, %v894_v50  ;;  %893 = vst.msk [vmem:[#allocation5 + $0x8] sm:$0xff] %vm655_vm4, %v891_v51  ;;  %v895_v52 = vmul.f32 %v891_v51, %v738_v11 }
 0x3e1   : > { %897 = vst.msk [vmem:[#allocation6 + $0x8] sm:$0xff] %vm655_vm4, %v895_v52 }
 0x3e2 LB: >> { %s3177_s11 = sshll.u32 %s2747_s16, 3  ;;  %v3197_v6 = vsub.s32 4, %v3086_v18  ;;  %v3208_v12 = vsub.s32 5, %v3086_v18  ;;  %v3217_v19 = vsub.s32 6, %v3086_v18  ;;  %v3244_v48 = vsub.s32 7, %v3086_v18  ;;  %s939_s16 = sadd.s32 1, %s2747_s16   ;;  %s2747_s16 = sphi %s3165_s16, %s939_s16   ;;  %v2743_v55 = vphi %v932_v55, %v3855_v55   ;;  %v2739_v56 = vphi %v933_v56, %v3854_v56  }
 0x3e3   : >> { %s947_s7 = scalar_lea.vmem [#allocation9], %s3177_s11  ;;  %s943_s28 = scalar_lea.vmem [#allocation5], %s3177_s11  ;;  %vm1358_vm0 = vcmask 1041408   ;;  %vm1360_vm1 = vcmask 1042432   ;;  %vm1362_vm5 = vcmask 1043456   ;;  %vm1364_vm6 = vcmask 1044480  }
 0x3e4   : >> { %v3180_v57 = vld [vmem:[%s947_s7] sm:$0xff]  ;;  %s945_s24 = scalar_lea.vmem [#allocation6], %s3177_s11  ;;  %vm1366_vm7 = vcmask 1045504   ;;  %vm1368_vm8 = vcmask 1046528   ;;  %s1370_s30 = scalar_lea.vmem [#allocation10], %s3177_s11 }
 0x3e5   : >> { %v972_v59 = vrot.slane %v3180_v57, %v3094_v24  ;;  %v952_v60 = vrot.slane %v3180_v57, %v3091_v21  ;;  %v992_v61 = vrot.slane %v3180_v57, %v3097_v25  ;;  %v1012_v5 = vrot.slane %v3180_v57, %v3100_v26  ;;  %p936_p9 = scmp.ge.s32.totalorder %s939_s16, 2  }
 0x3e6   : >> { %v3205_v11 = vrot.slane %v3180_v57, %v3197_v6  ;;  %v1052_v17 = vrot.slane %v3180_v57, %v3208_v12  ;;  %v1072_v34 = vrot.slane %v3180_v57, %v3217_v19 }
 0x3e7   : >> { %v973_v62 = vmul.f32 %v3120_v40, %v972_v59  ;;  %v953_v63 = vmul.f32 %v3120_v40, %v952_v60  ;;  %v974_v0 = vmul.f32 %v3125_v53, %v972_v59  ;;  %v954_v1 = vmul.f32 %v3125_v53, %v952_v60 }
 0x3e8   : >> { %v994_v9 = vmul.f32 %v3125_v53, %v992_v61  ;;  %v993_v10 = vmul.f32 %v3120_v40, %v992_v61  ;;  %v1014_v15 = vmul.f32 %v3125_v53, %v1012_v5  ;;  %v1013_v16 = vmul.f32 %v3120_v40, %v1012_v5 }
 0x3e9   : >> { %v977_v3 = vsel %vm602_vm3, %v973_v62, 0.0  ;;  %v957_v4 = vsel %vm602_vm3, %v953_v63, 0.0  ;;  %v980_v7 = vsel %vm602_vm3, %v974_v0, 0.0  ;;  %v960_v8 = vsel %vm602_vm3, %v954_v1, 0.0 }
 0x3ea   : >> { %978 = vadd.xlane.f32.xlu1 %v977_v3  ;;  %958 = vadd.xlane.f32.xlu0 %v957_v4  ;;  %v1000_v13 = vsel %vm602_vm3, %v994_v9, 0.0  ;;  %v997_v14 = vsel %vm602_vm3, %v993_v10, 0.0  ;;  %v1020_v20 = vsel %vm602_vm3, %v1014_v15, 0.0  ;;  %v1017_v22 = vsel %vm602_vm3, %v1013_v16, 0.0 }
 0x3eb   : >> { %v1034_v23 = vmul.f32 %v3125_v53, %v3205_v11  ;;  %v1033_v29 = vmul.f32 %v3120_v40, %v3205_v11  ;;  %v1054_v30 = vmul.f32 %v3125_v53, %v1052_v17  ;;  %v1053_v33 = vmul.f32 %v3120_v40, %v1052_v17 }
 0x3ec   : >> { %v1074_v37 = vmul.f32 %v3125_v53, %v1072_v34  ;;  %v1073_v38 = vmul.f32 %v3120_v40, %v1072_v34  ;;  %v956_v42 = vmul.f32 %v3131_v58, %v952_v60  ;;  %v955_v43 = vmul.f32 %v3128_v54, %v952_v60 }
 0x3ed   : >> { %v1040_v31 = vsel %vm602_vm3, %v1034_v23, 0.0  ;;  %v1037_v32 = vsel %vm602_vm3, %v1033_v29, 0.0  ;;  %v1060_v35 = vsel %vm602_vm3, %v1054_v30, 0.0  ;;  %v1057_v36 = vsel %vm602_vm3, %v1053_v33, 0.0 }
 0x3ee   : >> { %981 = vadd.xlane.f32.xlu1 %v980_v7  ;;  %961 = vadd.xlane.f32.xlu0 %v960_v8  ;;  %v1080_v39 = vsel %vm602_vm3, %v1074_v37, 0.0  ;;  %v1077_v41 = vsel %vm602_vm3, %v1073_v38, 0.0  ;;  %v966_v44 = vsel %vm602_vm3, %v956_v42, 0.0  ;;  %v963_v45 = vsel %vm602_vm3, %v955_v43, 0.0 }
 0x3ef   : >> { %v976_v46 = vmul.f32 %v3131_v58, %v972_v59  ;;  %v975_v47 = vmul.f32 %v3128_v54, %v972_v59  ;;  %v996_v51 = vmul.f32 %v3131_v58, %v992_v61  ;;  %v995_v52 = vmul.f32 %v3128_v54, %v992_v61 }
 0x3f0   : >> { %v1016_v60 = vmul.f32 %v3131_v58, %v1012_v5  ;;  %v1015_v63 = vmul.f32 %v3128_v54, %v1012_v5  ;;  %v1092_v0 = vrot.slane %v3180_v57, %v3244_v48  ;;  %v1036_v5 = vmul.f32 %v3131_v58, %v3205_v11 }
 0x3f1   : >> { %v986_v49 = vsel %vm602_vm3, %v976_v46, 0.0  ;;  %v983_v50 = vsel %vm602_vm3, %v975_v47, 0.0  ;;  %v1006_v62 = vsel %vm602_vm3, %v996_v51, 0.0  ;;  %v1003_v59 = vsel %vm602_vm3, %v995_v52, 0.0  ;;  %v3294_v52 = vld [vmem:[%s945_s24] sm:$0xff] }
 0x3f2   : >> { %1001 = vadd.xlane.f32.xlu1 %v1000_v13  ;;  %998 = vadd.xlane.f32.xlu0 %v997_v14  ;;  %v1026_v1 = vsel %vm602_vm3, %v1016_v60, 0.0  ;;  %v1023_v3 = vsel %vm602_vm3, %v1015_v63, 0.0  ;;  %v1094_v61 = vmul.f32 %v3125_v53, %v1092_v0  ;;  %v1093_v4 = vmul.f32 %v3120_v40, %v1092_v0 }
 0x3f3   : >> { %v1035_v57 = vmul.f32 %v3128_v54, %v3205_v11  ;;  %v1046_v9 = vsel %vm602_vm3, %v1036_v5, 0.0  ;;  %v1056_v13 = vmul.f32 %v3131_v58, %v1052_v17  ;;  %v1055_v14 = vmul.f32 %v3128_v54, %v1052_v17 }
 0x3f4   : >> { %v1100_v7 = vsel %vm602_vm3, %v1094_v61, 0.0  ;;  %v1097_v8 = vsel %vm602_vm3, %v1093_v4, 0.0  ;;  %v1075_v11 = vmul.f32 %v3128_v54, %v1072_v34  ;;  %v1096_v29 = vmul.f32 %v3131_v58, %v1092_v0 }
 0x3f5   : >> { %v1043_v10 = vsel %vm602_vm3, %v1035_v57, 0.0  ;;  %v1066_v15 = vsel %vm602_vm3, %v1056_v13, 0.0  ;;  %v1063_v16 = vsel %vm602_vm3, %v1055_v14, 0.0  ;;  %v1095_v17 = vmul.f32 %v3128_v54, %v1092_v0 }
 0x3f6   : >> { %1021 = vadd.xlane.f32.xlu1 %v1020_v20  ;;  %1018 = vadd.xlane.f32.xlu0 %v1017_v22  ;;  %v1076_v20 = vmul.f32 %v3131_v58, %v1072_v34  ;;  %v1083_v23 = vsel %vm602_vm3, %v1075_v11, 0.0  ;;  %v1106_v30 = vsel %vm602_vm3, %v1096_v29, 0.0  ;;  %v1198_v14 = vrot.slane %v3294_v52, %v3094_v24 }
 0x3f8   : >> { %v1086_v22 = vsel %vm602_vm3, %v1076_v20, 0.0 }
 0x3fa   : >> { %1041 = vadd.xlane.f32.xlu1 %v1040_v31  ;;  %1038 = vadd.xlane.f32.xlu0 %v1037_v32  ;;  %v1103_v31 = vsel %vm602_vm3, %v1095_v17, 0.0  ;;  %v944_v32 = vld [vmem:[%s943_s28] sm:$0xff] }
 0x3fb   : >> { %v1112_v33 = vrot.slane %v944_v32, %v3091_v21  ;;  %v1162_v60 = vrot.slane %v944_v32, %v3208_v12  ;;  %v1172_v61 = vrot.slane %v944_v32, %v3217_v19 }
 0x3fd   : >> { %v1113_v34 = vmul.f32 %v1112_v33, %v3145_v27  ;;  %v1163_v13 = vmul.f32 %v1162_v60, %v3145_v27  ;;  %v1164_v20 = vmul.f32 %v1162_v60, %v3148_v28 }
 0x3fe   : >> { %1061 = vadd.xlane.f32.xlu1 %v1060_v35  ;;  %1058 = vadd.xlane.f32.xlu0 %v1057_v36  ;;  %v1122_v35 = vrot.slane %v944_v32, %v3094_v24  ;;  %v1114_v36 = vmul.f32 %v1112_v33, %v3148_v28 }
 0x3ff   : >> { %v1115_v37 = vmul.f32 1.442695, %v1113_v34 }
 0x400   : >> { %v1123_v38 = vmul.f32 %v1122_v35, %v3145_v27  ;;  %v1124_v42 = vmul.f32 %v1122_v35, %v3148_v28 }
 0x401   : >> { %2467 = vpow2.f32 %v1115_v37 }
 0x402   : >> { %1081 = vadd.xlane.f32.xlu1 %v1080_v39  ;;  %1078 = vadd.xlane.f32.xlu0 %v1077_v41  ;;  %v1132_v39 = vrot.slane %v944_v32, %v3097_v25  ;;  %v1117_v41 = vmul.f32 1.442695, %v1114_v36  ;;  %v1125_v43 = vmul.f32 1.442695, %v1123_v38  ;;  %v1127_v46 = vmul.f32 1.442695, %v1124_v42 }
 0x403   : >> { %v1204_v36 = vrot.slane %v3294_v52, %v3097_v25  ;;  %v1167_v38 = vmul.f32 1.442695, %v1164_v20 }
 0x404   : >> { %2469 = vpow2.f32 %v1117_v41  ;;  %v1134_v47 = vmul.f32 %v1132_v39, %v3148_v28 }
 0x405   : >> { %2471 = vpow2.f32 %v1125_v43 }
 0x406   : >> { %967 = vadd.xlane.f32.xlu1 %v966_v44  ;;  %964 = vadd.xlane.f32.xlu0 %v963_v45  ;;  %v1133_v44 = vmul.f32 %v1132_v39, %v3145_v27  ;;  %v1142_v45 = vrot.slane %v944_v32, %v3100_v26  ;;  %2473 = vpow2.f32 %v1127_v46 }
 0x408   : >> { %v1143_v51 = vmul.f32 %v1142_v45, %v3145_v27 }
 0x40a   : >> { %987 = vadd.xlane.f32.xlu1 %v986_v49  ;;  %984 = vadd.xlane.f32.xlu0 %v983_v50  ;;  %v1152_v49 = vrot.slane %v944_v32, %v3197_v6  ;;  %v1135_v50 = vmul.f32 1.442695, %v1133_v44  ;;  %v1145_v0 = vmul.f32 1.442695, %v1143_v51  ;;  %v1210_v44 = vrot.slane %v3294_v52, %v3100_v26 }
 0x40b   : >> { %v2468_v63 = vpop.eup %2467 }
 0x40c   : >> { %2475 = vpow2.f32 %v1135_v50  ;;  %v1237_v4 = vmul.f32 %v2743_v55, %v2468_v63 }
 0x40e   : >> { %1007 = vadd.xlane.f32.xlu1 %v1006_v62  ;;  %1004 = vadd.xlane.f32.xlu0 %v1003_v59  ;;  %v1137_v62 = vmul.f32 1.442695, %v1134_v47  ;;  %v1144_v59 = vmul.f32 %v1142_v45, %v3148_v28  ;;  %v2470_v5 = vpop.eup %2469 }
 0x40f   : >> { %v1238_v55 = vmul.f32 %v2739_v56, %v2470_v5 }
 0x410   : >> { %2477 = vpow2.f32 %v1137_v62 }
 0x411   : >> { %2479 = vpow2.f32 %v1145_v0 }
 0x412   : >> { %1027 = vadd.xlane.f32.xlu1 %v1026_v1  ;;  %1024 = vadd.xlane.f32.xlu0 %v1023_v3  ;;  %v1153_v1 = vmul.f32 %v1152_v49, %v3145_v27  ;;  %v1192_v3 = vrot.slane %v3294_v52, %v3091_v21 }
 0x416   : >> { %1101 = vadd.xlane.f32.xlu1 %v1100_v7  ;;  %1098 = vadd.xlane.f32.xlu0 %v1097_v8  ;;  %v1147_v7 = vmul.f32 1.442695, %v1144_v59  ;;  %v1154_v8 = vmul.f32 %v1152_v49, %v3148_v28 }
 0x418   : >> { %2481 = vpow2.f32 %v1147_v7 }
 0x41a   : >> { %1047 = vadd.xlane.f32.xlu1 %v1046_v9  ;;  %1044 = vadd.xlane.f32.xlu0 %v1043_v10  ;;  %v1155_v10 = vmul.f32 1.442695, %v1153_v1 }
 0x41c   : >> { %2483 = vpow2.f32 %v1155_v10 }
 0x41e   : >> { %1067 = vadd.xlane.f32.xlu1 %v1066_v15  ;;  %1064 = vadd.xlane.f32.xlu0 %v1063_v16  ;;  %v2472_v16 = vpop.eup %2471 }
 0x41f   : >> { %v2474_v33 = vpop.eup %2473 }
 0x420   : >> { %v2476_v37 = vpop.eup %2475 }
 0x421   : >> { %v2478_v47 = vpop.eup %2477 }
 0x422   : >> { %1087 = vadd.xlane.f32.xlu1 %v1086_v22  ;;  %1084 = vadd.xlane.f32.xlu0 %v1083_v23  ;;  %v1157_v22 = vmul.f32 1.442695, %v1154_v8  ;;  %v1182_v23 = vrot.slane %v944_v32, %v3244_v48  ;;  %v1174_v32 = vmul.f32 %v1172_v61, %v3148_v28  ;;  %v2480_v62 = vpop.eup %2479 }
 0x423   : >> { %v2482_v8 = vpop.eup %2481 }
 0x424   : >> { %2485 = vpow2.f32 %v1157_v22  ;;  %v1183_v46 = vmul.f32 %v1182_v23, %v3145_v27  ;;  %v1177_v0 = vmul.f32 1.442695, %v1174_v32 }
 0x426   : >> { %1107 = vadd.xlane.f32.xlu1 %v1106_v30  ;;  %1104 = vadd.xlane.f32.xlu0 %v1103_v31  ;;  %v1165_v30 = vmul.f32 1.442695, %v1163_v13  ;;  %v1173_v31 = vmul.f32 %v1172_v61, %v3145_v27  ;;  %v1216_v61 = vrot.slane %v3294_v52, %v3197_v6  ;;  %v1185_v7 = vmul.f32 1.442695, %v1183_v46  ;;  %v2484_v13 = vpop.eup %2483 }
 0x427   : >> { %v1222_v6 = vrot.slane %v3294_v52, %v3208_v12 }
 0x428   : >> { %2487 = vpow2.f32 %v1165_v30  ;;  %v1175_v45 = vmul.f32 1.442695, %v1173_v31 }
 0x429   : >> { %2489 = vpow2.f32 %v1167_v38 }
 0x42a   : >> { %2491 = vpow2.f32 %v1175_v45 }
 0x42b   : >> { %2493 = vpow2.f32 %v1177_v0 }
 0x42c   : >> { %2495 = vpow2.f32 %v1185_v7 }
 0x42e   : >> { %v2486_v22 = vpop.eup %2485 }
 0x432   : >> { %v2488_v31 = vpop.eup %2487 }
 0x477   : >> { %v979_v57 = vpop.xlane.xlu1 %978  ;;  %v959_v9 = vpop.xlane.xlu0 %958 }
 0x478   : >> { %v1193_v15 = vmul.f32 %v1192_v3, %v959_v9  ;;  %v1199_v34 = vmul.f32 %v1198_v14, %v979_v57 }
 0x47a   : >> { %v3309_v11 = vadd.f32 %v1237_v4, %v1193_v15  ;;  %v1184_v4 = vmul.f32 %v1182_v23, %v3148_v28 }
 0x47b   : >> { %v982_v29 = vpop.xlane.xlu1 %981  ;;  %v962_v17 = vpop.xlane.xlu0 %961 }
 0x47c   : >> { %v1194_v35 = vmul.f32 %v1192_v3, %v962_v17  ;;  %v1252_v56 = vmul.f32 %v2472_v16, %v3309_v11  ;;  %v1200_v49 = vmul.f32 %v1198_v14, %v982_v29 }
 0x47e   : >> { %v3316_v39 = vadd.f32 %v1238_v55, %v1194_v35  ;;  %v3318_v41 = vadd.f32 %v1252_v56, %v1199_v34  ;;  %v1187_v55 = vmul.f32 1.442695, %v1184_v4  ;;  %v1228_v56 = vrot.slane %v3294_v52, %v3217_v19 }
 0x47f   : >> { %v1002_v42 = vpop.xlane.xlu1 %1001  ;;  %v999_v43 = vpop.xlane.xlu0 %998 }
 0x480   : >> { %v1205_v50 = vmul.f32 %v1204_v36, %v999_v43  ;;  %v1253_v51 = vmul.f32 %v2474_v33, %v3316_v39  ;;  %v1267_v60 = vmul.f32 %v2476_v37, %v3318_v41  ;;  %v1206_v5 = vmul.f32 %v1204_v36, %v1002_v42  ;;  %v2490_v37 = vpop.eup %2489 }
 0x481   : >> { %2497 = vpow2.f32 %v1187_v55  ;;  %v2492_v43 = vpop.eup %2491 }
 0x482   : >> { %v3326_v59 = vadd.f32 %v1253_v51, %v1200_v49  ;;  %v3328_v63 = vadd.f32 %v1267_v60, %v1205_v50  ;;  %v2494_v49 = vpop.eup %2493 }
 0x483   : >> { %v1022_v1 = vpop.xlane.xlu1 %1021  ;;  %v1019_v3 = vpop.xlane.xlu0 %1018 }
 0x484   : >> { %v1211_v57 = vmul.f32 %v1210_v44, %v1019_v3  ;;  %v1268_v9 = vmul.f32 %v2478_v47, %v3326_v59  ;;  %v1282_v10 = vmul.f32 %v2480_v62, %v3328_v63  ;;  %v1212_v23 = vmul.f32 %v1210_v44, %v1022_v1  ;;  %v2496_v62 = vpop.eup %2495 }
 0x486   : >> { %v1270_v14 = vadd.f32 %v1268_v9, %v1206_v5  ;;  %v3335_v15 = vadd.f32 %v1282_v10, %v1211_v57 }
 0x487   : >> { %v1042_v16 = vpop.xlane.xlu1 %1041  ;;  %v1039_v20 = vpop.xlane.xlu0 %1038 }
 0x488   : >> { %v1217_v29 = vmul.f32 %v1216_v61, %v1039_v20  ;;  %v1283_v17 = vmul.f32 %v2482_v8, %v1270_v14  ;;  %v1297_v30 = vmul.f32 %v2484_v13, %v3335_v15  ;;  %v1218_v12 = vmul.f32 %v1216_v61, %v1042_v16 }
 0x48a   : >> { %v1285_v33 = vadd.f32 %v1283_v17, %v1212_v23  ;;  %v3340_v34 = vadd.f32 %v1297_v30, %v1217_v29 }
 0x48b   : >> { %v1062_v35 = vpop.xlane.xlu1 %1061  ;;  %v1059_v36 = vpop.xlane.xlu0 %1058 }
 0x48c   : >> { %v1223_v38 = vmul.f32 %v1222_v6, %v1059_v36  ;;  %v1298_v32 = vmul.f32 %v2486_v22, %v1285_v33  ;;  %v1312_v42 = vmul.f32 %v2488_v31, %v3340_v34  ;;  %v1224_v50 = vmul.f32 %v1222_v6, %v1062_v35  ;;  %v2498_v5 = vpop.eup %2497 }
 0x48e   : >> { %v3345_v44 = vadd.f32 %v1298_v32, %v1218_v12  ;;  %v3347_v45 = vadd.f32 %v1312_v42, %v1223_v38  ;;  %v1234_v42 = vrot.slane %v3294_v52, %v3244_v48 }
 0x48f   : >> { %v1082_v46 = vpop.xlane.xlu1 %1081  ;;  %v1079_v47 = vpop.xlane.xlu0 %1078 }
 0x490   : >> { %v1229_v51 = vmul.f32 %v1228_v56, %v1079_v47  ;;  %v1313_v60 = vmul.f32 %v2490_v37, %v3345_v44  ;;  %v1327_v19 = vmul.f32 %v2492_v43, %v3347_v45  ;;  %v1230_v4 = vmul.f32 %v1228_v56, %v1082_v46 }
 0x492   : >> { %v3351_v0 = vadd.f32 %v1313_v60, %v1224_v50  ;;  %v3353_v1 = vadd.f32 %v1327_v19, %v1229_v51 }
 0x493   : >> { %v968_v3 = vpop.xlane.xlu1 %967  ;;  %v965_v61 = vpop.xlane.xlu0 %964 }
 0x494   : >> { %v1328_v7 = vmul.f32 %v2494_v49, %v3351_v0  ;;  %v1342_v8 = vmul.f32 %v2496_v62, %v3353_v1  ;;  %v1242_v9 = vmul.f32 %v3316_v39, %v968_v3  ;;  %v1241_v10 = vmul.f32 %v3309_v11, %v965_v61 }
 0x496   : >> { %v3357_v57 = vadd.f32 %v1328_v7, %v1230_v4  ;;  %v1244_v29 = vsel %vm655_vm4, %v1242_v9, 0.0  ;;  %v1243_v17 = vsel %vm655_vm4, %v1241_v10, 0.0 }
 0x497   : >> { %v988_v13 = vpop.xlane.xlu1 %987  ;;  %v985_v16 = vpop.xlane.xlu0 %984  ;;  %v1245_v36 = vadd.f32 %v1244_v29, %v1243_v17 }
 0x498   : >> { %v1257_v20 = vmul.f32 %v3326_v59, %v988_v13  ;;  %v1256_v6 = vmul.f32 %v3318_v41, %v985_v16  ;;  %v1343_v55 = vmul.f32 %v2498_v5, %v3357_v57 }
 0x499   : >> { %v1246_v46 = vrot.slane %v1245_v36, 4 }
 0x49a   : >> { %v1259_v22 = vsel %vm655_vm4, %v1257_v20, 0.0  ;;  %v1258_v23 = vsel %vm655_vm4, %v1256_v6, 0.0 }
 0x49b   : >> { %v1008_v30 = vpop.xlane.xlu1 %1007  ;;  %v1005_v39 = vpop.xlane.xlu0 %1004  ;;  %v1260_v35 = vadd.f32 %v1259_v22, %v1258_v23 }
 0x49c   : >> { %v1272_v31 = vmul.f32 %v1270_v14, %v1008_v30  ;;  %v1271_v11 = vmul.f32 %v3328_v63, %v1005_v39 }
 0x49d   : >> { %v1261_v43 = vrot.slane %v1260_v35, 4 }
 0x49e   : >> { %v1274_v59 = vsel %vm655_vm4, %v1272_v31, 0.0  ;;  %v1273_v41 = vsel %vm655_vm4, %v1271_v11, 0.0 }
 0x49f   : >> { %v1275_v56 = vadd.f32 %v1274_v59, %v1273_v41  ;;  %v1028_v37 = vpop.xlane.xlu1 %1027  ;;  %v1025_v12 = vpop.xlane.xlu0 %1024  ;;  %v1262_v62 = vadd.f32 %v1261_v43, %v1260_v35 }
 0x4a0   : >> { %v1287_v38 = vmul.f32 %v1285_v33, %v1028_v37  ;;  %v1286_v32 = vmul.f32 %v3335_v15, %v1025_v12  ;;  %v1247_v33 = vadd.f32 %v1246_v46, %v1245_v36 }
 0x4a1   : >> { %v1276_v14 = vrot.slane %v1275_v56, 4  ;;  %v1263_v10 = vrot.slane %v1262_v62, 2 }
 0x4a2   : >> { %v1289_v63 = vsel %vm655_vm4, %v1287_v38, 0.0  ;;  %v1288_v47 = vsel %vm655_vm4, %v1286_v32, 0.0  ;;  %v1248_v13 = vrot.slane %v1247_v33, 2 }
 0x4a3   : >> { %v1290_v49 = vadd.f32 %v1289_v63, %v1288_v47  ;;  %v1102_v50 = vpop.xlane.xlu1 %1101  ;;  %v1099_v51 = vpop.xlane.xlu0 %1098  ;;  %v1277_v61 = vadd.f32 %v1276_v14, %v1275_v56  ;;  %v1264_v30 = vadd.f32 %v1263_v10, %v1262_v62 }
 0x4a4   : >> { %v1236_v60 = vmul.f32 %v1234_v42, %v1102_v50  ;;  %v1235_v19 = vmul.f32 %v1234_v42, %v1099_v51 }
 0x4a5   : >> { %v1291_v3 = vrot.slane %v1290_v49, 4  ;;  %v1278_v16 = vrot.slane %v1277_v61, 2 }
 0x4a6   : >> { %v3376_v56 = vadd.f32 %v1343_v55, %v1236_v60   ;;  %v3378_v55 = vadd.f32 %v1342_v8, %v1235_v19  }
 0x4a7   : >> { %v1292_v52 = vadd.f32 %v1291_v3, %v1290_v49  ;;  %v1048_v4 = vpop.xlane.xlu1 %1047  ;;  %v1045_v7 = vpop.xlane.xlu0 %1044  ;;  %v1279_v31 = vadd.f32 %v1278_v16, %v1277_v61 }
 0x4a8   : >> { %v3852_v15 = vmov %v3376_v56  ;;  %v3853_v48 = vmov %v3378_v55  ;;  %v1302_v5 = vmul.f32 %v3345_v44, %v1048_v4  ;;  %v1301_v9 = vmul.f32 %v3340_v34, %v1045_v7 }
 0x4a9   : >> { %v1293_v22 = vrot.slane %v1292_v52, 2  ;;  %v1249_v44 = vadd.f32 %v1248_v13, %v1247_v33  ;;  %v1280_v42 = vrot.slane %v1279_v31, 1  ;;  %1372 = vst.msk [vmem:[#allocation2] sm:$0xff] (%p936_p9), %vm655_vm4, %v3853_v48  ;;  %1373 = vst.msk [vmem:[#allocation2 + $0x8] sm:$0xff] (%p936_p9), %vm655_vm4, %v3852_v15 }
 0x4aa   : >> { %v1304_v20 = vsel %vm655_vm4, %v1302_v5, 0.0  ;;  %v1303_v6 = vsel %vm655_vm4, %v1301_v9, 0.0 }
 0x4ab   : >> { %v1305_v23 = vadd.f32 %v1304_v20, %v1303_v6  ;;  %v1068_v29 = vpop.xlane.xlu1 %1067  ;;  %v1065_v17 = vpop.xlane.xlu0 %1064  ;;  %v1294_v35 = vadd.f32 %v1293_v22, %v1292_v52  ;;  %v1250_v32 = vrot.slane %v1249_v44, 1  ;;  %v1281_v61 = vadd.f32 %v1280_v42, %v1279_v31 }
 0x4ac   : >> { %v1317_v8 = vmul.f32 %v3351_v0, %v1068_v29  ;;  %v1316_v55 = vmul.f32 %v3347_v45, %v1065_v17  ;;  %v1265_v0 = vrot.slane %v1264_v30, 1 }
 0x4ad   : >> { %v1306_v39 = vrot.slane %v1305_v23, 4  ;;  %v1295_v14 = vrot.slane %v1294_v35, 1  ;;  %v1251_v33 = vadd.f32 %v1250_v32, %v1249_v44 }
 0x4ae   : >> { %v1319_v34 = vsel %vm655_vm4, %v1317_v8, 0.0  ;;  %v1318_v11 = vsel %vm655_vm4, %v1316_v55, 0.0  ;;  %v1266_v60 = vadd.f32 %v1265_v0, %v1264_v30 }
 0x4af   : >> { %v1307_v36 = vadd.f32 %v1306_v39, %v1305_v23  ;;  %v1320_v59 = vadd.f32 %v1319_v34, %v1318_v11  ;;  %v1088_v41 = vpop.xlane.xlu1 %1087  ;;  %v1085_v56 = vpop.xlane.xlu0 %1084  ;;  %v1296_v7 = vadd.f32 %v1295_v14, %v1294_v35 }
 0x4b0   : >> { %v1332_v37 = vmul.f32 %v3357_v57, %v1088_v41  ;;  %v1331_v12 = vmul.f32 %v3353_v1, %v1085_v56  ;;  %v1357_v16 = vsel %vm831_vm12, %v1251_v33, %v1266_v60  ;;  %v3854_v56 = vmov %v3852_v15 }
 0x4b1   : >> { %v1308_v38 = vrot.slane %v1307_v36, 2  ;;  %v1321_v45 = vrot.slane %v1320_v59, 4  ;;  %v1359_v23 = vsel %vm1358_vm0, %v1357_v16, %v1281_v61 }
 0x4b2   : >> { %v1334_v43 = vsel %vm655_vm4, %v1332_v37, 0.0  ;;  %v1333_v46 = vsel %vm655_vm4, %v1331_v12, 0.0  ;;  %v1361_v29 = vsel %vm1360_vm1, %v1359_v23, %v1296_v7 }
 0x4b3   : >> { %v1309_v63 = vadd.f32 %v1308_v38, %v1307_v36  ;;  %v1322_v47 = vadd.f32 %v1321_v45, %v1320_v59  ;;  %v1335_v49 = vadd.f32 %v1334_v43, %v1333_v46  ;;  %v1108_v50 = vpop.xlane.xlu1 %1107  ;;  %v1105_v51 = vpop.xlane.xlu0 %1104 }
 0x4b4   : >> { %v1347_v57 = vmul.f32 %v3852_v15, %v1108_v50  ;;  %v1346_v1 = vmul.f32 %v3853_v48, %v1105_v51 }
 0x4b5   : >> { %v1310_v19 = vrot.slane %v1309_v63, 1  ;;  %v1323_v62 = vrot.slane %v1322_v47, 2  ;;  %v1336_v3 = vrot.slane %v1335_v49, 4 }
 0x4b6   : >> { %v1349_v52 = vsel %vm655_vm4, %v1347_v57, 0.0  ;;  %v1348_v4 = vsel %vm655_vm4, %v1346_v1, 0.0 }
 0x4b7   : >> { %v1324_v5 = vadd.f32 %v1323_v62, %v1322_v47  ;;  %v1337_v9 = vadd.f32 %v1336_v3, %v1335_v49  ;;  %v1350_v10 = vadd.f32 %v1349_v52, %v1348_v4  ;;  %v1311_v13 = vadd.f32 %v1310_v19, %v1309_v63 }
 0x4b9   : >> { %v1325_v20 = vrot.slane %v1324_v5, 1  ;;  %v1338_v6 = vrot.slane %v1337_v9, 2  ;;  %v1351_v22 = vrot.slane %v1350_v10, 4  ;;  %v1363_v30 = vsel %vm1362_vm5, %v1361_v29, %v1311_v13 }
 0x4bb   : >> { %v1326_v17 = vadd.f32 %v1325_v20, %v1324_v5  ;;  %v1339_v8 = vadd.f32 %v1338_v6, %v1337_v9  ;;  %v1352_v55 = vadd.f32 %v1351_v22, %v1350_v10 }
 0x4bd   : >> { %v1365_v39 = vsel %vm1364_vm6, %v1363_v30, %v1326_v17  ;;  %v1340_v44 = vrot.slane %v1339_v8, 1  ;;  %v1353_v31 = vrot.slane %v1352_v55, 2 }
 0x4bf   : >> { %v1341_v34 = vadd.f32 %v1340_v44, %v1339_v8  ;;  %v1354_v11 = vadd.f32 %v1353_v31, %v1352_v55  ;;  %v3855_v55 = vmov %v3853_v48 }
 0x4c0   : > { %938 = sbr.rel (!%p936_p9) target bundleno = 994 (0x3e2), region = 168 }
 0x4c1   : >> { %v1367_v35 = vsel %vm1366_vm7, %v1365_v39, %v1341_v34  ;;  %v1355_v36 = vrot.slane %v1354_v11, 1 }
 0x4c3   : >> { %v1356_v59 = vadd.f32 %v1355_v36, %v1354_v11 }
 0x4c5   : >> { %v1369_v41 = vsel %vm1368_vm8, %v1367_v35, %v1356_v59 }
 0x4c6   : >> { %1371 = vst.msk [vmem:[%s1370_s30] sm:$0xff] %vm655_vm4, %v1369_v41 }
 0x4c7 PF: > { %1376 = sbr.rel (%p572_p2) target bundleno = 1460 (0x5b4), region = 91  ;;  %v1377_v37 = vld [vmem:[#allocation2] sm:$0xff] (!%p572_p2)   ;;  %v1378_v12 = vld [vmem:[#allocation2 + $0x8] sm:$0xff] (!%p572_p2)   ;;  %s3419_s27 = smov (!%p572_p2), 0  }
 0x4ce LB: >> { %s2202_s22 = sshll.u32 %s2759_s27, 3  ;;  %v3432_v15 = vsub.s32 7, %v3086_v18  ;;  %v3435_v48 = vsub.s32 6, %v3086_v18  ;;  %v3440_v56 = vsub.s32 5, %v3086_v18  ;;  %v3453_v42 = vsub.s32 4, %v3086_v18  ;;  %s1384_s27 = sadd.s32 1, %s2759_s27   ;;  %s2759_s27 = sphi %s3419_s27, %s1384_s27   ;;  %v2755_v37 = vphi %v1377_v37, %v3859_v37   ;;  %v2751_v12 = vphi %v1378_v12, %v3858_v12  }
 0x4cf   : >> { %s3437_s13 = ssub.s32 8, %s2202_s22  ;;  %vm1804_vm9 = vcmask 1041408   ;;  %vm1806_vm10 = vcmask 1042432   ;;  %vm1808_vm11 = vcmask 1043456   ;;  %vm1810_vm13 = vcmask 1044480   ;;  %p1381_p11 = scmp.ge.s32.totalorder %s1384_s27, 2  }
 0x4d0   : >> { %s1393_s15 = scalar_lea.vmem [#allocation9], %s3437_s13  ;;  %s1389_s25 = scalar_lea.vmem [#allocation5], %s3437_s13  ;;  %vm1812_vm14 = vcmask 1045504   ;;  %vm1814_vm15 = vcmask 1046528  }
 0x4d1   : >> { %v1394_v0 = vld [vmem:[%s1393_s15] sm:$0xff]  ;;  %s1391_s6 = scalar_lea.vmem [#allocation6], %s3437_s13  ;;  %s1816_s4 = scalar_lea.vmem [#allocation10], %s3437_s13 }
 0x4d2   : >> { %v3444_v38 = vrot.slane %v1394_v0, %v3432_v15  ;;  %v3447_v45 = vrot.slane %v1394_v0, %v3435_v48  ;;  %v3450_v32 = vrot.slane %v1394_v0, %v3440_v56  ;;  %v3466_v50 = vrot.slane %v1394_v0, %v3453_v42 }
 0x4d3   : >> { %v1458_v61 = vrot.slane %v1394_v0, %v3100_v26  ;;  %v1438_v9 = vrot.slane %v1394_v0, %v3097_v25  ;;  %v1418_v10 = vrot.slane %v1394_v0, %v3094_v24  ;;  %v1398_v22 = vrot.slane %v1394_v0, %v3091_v21 }
 0x4d4   : >> { %v1539_v43 = vmul.f32 %v3120_v40, %v3444_v38  ;;  %v1519_v46 = vmul.f32 %v3120_v40, %v3447_v45  ;;  %v1540_v14 = vmul.f32 %v3125_v53, %v3444_v38  ;;  %v1520_v63 = vmul.f32 %v3125_v53, %v3447_v45 }
 0x4d5   : >> { %v1500_v1 = vmul.f32 %v3125_v53, %v3450_v32  ;;  %v1499_v60 = vmul.f32 %v3120_v40, %v3450_v32  ;;  %v1480_v19 = vmul.f32 %v3125_v53, %v3466_v50  ;;  %v1479_v33 = vmul.f32 %v3120_v40, %v3466_v50 }
 0x4d6   : >> { %v1543_v47 = vsel %vm602_vm3, %v1539_v43, 0.0  ;;  %v1523_v49 = vsel %vm602_vm3, %v1519_v46, 0.0  ;;  %v1546_v51 = vsel %vm602_vm3, %v1540_v14, 0.0  ;;  %v1526_v57 = vsel %vm602_vm3, %v1520_v63, 0.0 }
 0x4d7   : >> { %1544 = vadd.xlane.f32.xlu0 %v1543_v47  ;;  %1524 = vadd.xlane.f32.xlu1 %v1523_v49  ;;  %v1506_v62 = vsel %vm602_vm3, %v1500_v1, 0.0  ;;  %v1503_v3 = vsel %vm602_vm3, %v1499_v60, 0.0  ;;  %v1486_v52 = vsel %vm602_vm3, %v1480_v19, 0.0  ;;  %v1483_v4 = vsel %vm602_vm3, %v1479_v33, 0.0 }
 0x4d8   : >> { %v1460_v7 = vmul.f32 %v3125_v53, %v1458_v61  ;;  %v1459_v5 = vmul.f32 %v3120_v40, %v1458_v61  ;;  %v1440_v20 = vmul.f32 %v3125_v53, %v1438_v9  ;;  %v1439_v6 = vmul.f32 %v3120_v40, %v1438_v9 }
 0x4d9   : >> { %v1420_v17 = vmul.f32 %v3125_v53, %v1418_v10  ;;  %v1419_v8 = vmul.f32 %v3120_v40, %v1418_v10  ;;  %v1400_v39 = vmul.f32 %v3125_v53, %v1398_v22  ;;  %v1399_v44 = vmul.f32 %v3120_v40, %v1398_v22 }
 0x4da   : >> { %v1466_v13 = vsel %vm602_vm3, %v1460_v7, 0.0  ;;  %v1463_v16 = vsel %vm602_vm3, %v1459_v5, 0.0  ;;  %v1446_v23 = vsel %vm602_vm3, %v1440_v20, 0.0  ;;  %v1443_v29 = vsel %vm602_vm3, %v1439_v6, 0.0 }
 0x4db   : >> { %1547 = vadd.xlane.f32.xlu0 %v1546_v51  ;;  %1527 = vadd.xlane.f32.xlu1 %v1526_v57  ;;  %v1426_v55 = vsel %vm602_vm3, %v1420_v17, 0.0  ;;  %v1423_v30 = vsel %vm602_vm3, %v1419_v8, 0.0  ;;  %v1406_v31 = vsel %vm602_vm3, %v1400_v39, 0.0  ;;  %v1403_v34 = vsel %vm602_vm3, %v1399_v44, 0.0 }
 0x4dc   : >> { %v1402_v11 = vmul.f32 %v3131_v58, %v1398_v22  ;;  %v1401_v35 = vmul.f32 %v3128_v54, %v1398_v22  ;;  %v1422_v41 = vmul.f32 %v3131_v58, %v1418_v10  ;;  %v1421_v0 = vmul.f32 %v3128_v54, %v1418_v10 }
 0x4dd   : >> { %v1442_v14 = vmul.f32 %v3131_v58, %v1438_v9  ;;  %v1441_v63 = vmul.f32 %v3128_v54, %v1438_v9  ;;  %v1462_v51 = vmul.f32 %v3131_v58, %v1458_v61  ;;  %v1461_v57 = vmul.f32 %v3128_v54, %v1458_v61 }
 0x4de   : >> { %v1412_v36 = vsel %vm602_vm3, %v1402_v11, 0.0  ;;  %v1409_v59 = vsel %vm602_vm3, %v1401_v35, 0.0  ;;  %v1432_v43 = vsel %vm602_vm3, %v1422_v41, 0.0  ;;  %v1429_v46 = vsel %vm602_vm3, %v1421_v0, 0.0  ;;  %v3556_v41 = vld [vmem:[%s1391_s6] sm:$0xff] }
 0x4df   : >> { %1507 = vadd.xlane.f32.xlu1 %v1506_v62  ;;  %1504 = vadd.xlane.f32.xlu0 %v1503_v3  ;;  %v1452_v47 = vsel %vm602_vm3, %v1442_v14, 0.0  ;;  %v1449_v49 = vsel %vm602_vm3, %v1441_v63, 0.0  ;;  %v1472_v1 = vsel %vm602_vm3, %v1462_v51, 0.0  ;;  %v1469_v60 = vsel %vm602_vm3, %v1461_v57, 0.0 }
 0x4e0   : >> { %v1482_v19 = vmul.f32 %v3131_v58, %v3466_v50  ;;  %v1481_v62 = vmul.f32 %v3128_v54, %v3466_v50  ;;  %v1502_v61 = vmul.f32 %v3131_v58, %v3450_v32  ;;  %v1522_v50 = vmul.f32 %v3131_v58, %v3447_v45 }
 0x4e1   : >> { %v1521_v5 = vmul.f32 %v3128_v54, %v3447_v45  ;;  %v1390_v45 = vld [vmem:[%s1389_s25] sm:$0xff] }
 0x4e2   : >> { %v1492_v3 = vsel %vm602_vm3, %v1482_v19, 0.0  ;;  %v1489_v33 = vsel %vm602_vm3, %v1481_v62, 0.0  ;;  %v1532_v9 = vsel %vm602_vm3, %v1522_v50, 0.0  ;;  %v1628_v6 = vrot.slane %v1390_v45, %v3432_v15 }
 0x4e3   : >> { %1487 = vadd.xlane.f32.xlu1 %v1486_v52  ;;  %1484 = vadd.xlane.f32.xlu0 %v1483_v4  ;;  %v1501_v52 = vmul.f32 %v3128_v54, %v3450_v32  ;;  %v1512_v4 = vsel %vm602_vm3, %v1502_v61, 0.0  ;;  %v1529_v10 = vsel %vm602_vm3, %v1521_v5, 0.0  ;;  %v1542_v32 = vmul.f32 %v3131_v58, %v3444_v38 }
 0x4e4   : >> { %v1629_v22 = vmul.f32 %v1628_v6, %v3145_v27  ;;  %v1630_v17 = vmul.f32 %v1628_v6, %v3148_v28  ;;  %v1598_v39 = vrot.slane %v1390_v45, %v3453_v42  ;;  %v1568_v61 = vrot.slane %v1390_v45, %v3094_v24 }
 0x4e5   : >> { %v1509_v7 = vsel %vm602_vm3, %v1501_v52, 0.0 }
 0x4e7   : >> { %1467 = vadd.xlane.f32.xlu1 %v1466_v13  ;;  %1464 = vadd.xlane.f32.xlu0 %v1463_v16  ;;  %v1541_v13 = vmul.f32 %v3128_v54, %v3444_v38  ;;  %v1552_v16 = vsel %vm602_vm3, %v1542_v32, 0.0  ;;  %v1608_v38 = vrot.slane %v1390_v45, %v3440_v56 }
 0x4e9   : >> { %v1549_v20 = vsel %vm602_vm3, %v1541_v13, 0.0  ;;  %v1610_v11 = vmul.f32 %v1608_v38, %v3148_v28  ;;  %v1569_v13 = vmul.f32 %v1568_v61, %v3145_v27 }
 0x4eb   : >> { %1447 = vadd.xlane.f32.xlu1 %v1446_v23  ;;  %1444 = vadd.xlane.f32.xlu0 %v1443_v29  ;;  %v1618_v23 = vrot.slane %v1390_v45, %v3435_v48  ;;  %v1631_v29 = vmul.f32 1.442695, %v1629_v22  ;;  %v1613_v0 = vmul.f32 1.442695, %v1610_v11 }
 0x4ed   : >> { %v1619_v8 = vmul.f32 %v1618_v23, %v3145_v27  ;;  %2499 = vpow2.f32 %v1631_v29 }
 0x4ef   : >> { %1427 = vadd.xlane.f32.xlu1 %v1426_v55  ;;  %1424 = vadd.xlane.f32.xlu0 %v1423_v30  ;;  %v1633_v55 = vmul.f32 1.442695, %v1630_v17  ;;  %v1620_v30 = vmul.f32 %v1618_v23, %v3148_v28  ;;  %v1621_v44 = vmul.f32 1.442695, %v1619_v8  ;;  %v1668_v23 = vrot.slane %v3556_v41, %v3440_v56 }
 0x4f0   : >> { %v1570_v8 = vmul.f32 %v1568_v61, %v3148_v28 }
 0x4f1   : >> { %2501 = vpow2.f32 %v1633_v55 }
 0x4f2   : >> { %2503 = vpow2.f32 %v1621_v44 }
 0x4f3   : >> { %1407 = vadd.xlane.f32.xlu1 %v1406_v31  ;;  %1404 = vadd.xlane.f32.xlu0 %v1403_v34  ;;  %v1609_v31 = vmul.f32 %v1608_v38, %v3145_v27  ;;  %v1623_v34 = vmul.f32 1.442695, %v1620_v30 }
 0x4f5   : >> { %v1611_v35 = vmul.f32 1.442695, %v1609_v31  ;;  %2505 = vpow2.f32 %v1623_v34 }
 0x4f7   : >> { %1413 = vadd.xlane.f32.xlu1 %v1412_v36  ;;  %1410 = vadd.xlane.f32.xlu0 %v1409_v59  ;;  %v1599_v36 = vmul.f32 %v1598_v39, %v3145_v27  ;;  %v1588_v59 = vrot.slane %v1390_v45, %v3100_v26  ;;  %2507 = vpow2.f32 %v1611_v35 }
 0x4f8   : >> { %2509 = vpow2.f32 %v1613_v0 }
 0x4f9   : >> { %v1601_v14 = vmul.f32 1.442695, %v1599_v36  ;;  %v1589_v63 = vmul.f32 %v1588_v59, %v3145_v27 }
 0x4fb   : >> { %1433 = vadd.xlane.f32.xlu1 %v1432_v43  ;;  %1430 = vadd.xlane.f32.xlu0 %v1429_v46  ;;  %v1600_v43 = vmul.f32 %v1598_v39, %v3148_v28  ;;  %v2500_v46 = vpop.eup %2499  ;;  %2511 = vpow2.f32 %v1601_v14  ;;  %v1571_v39 = vmul.f32 1.442695, %v1569_v13  ;;  %v1656_v14 = vrot.slane %v3556_v41, %v3100_v26 }
 0x4fc   : >> { %v1683_v51 = vmul.f32 %v2755_v37, %v2500_v46 }
 0x4fd   : >> { %v1603_v57 = vmul.f32 1.442695, %v1600_v43  ;;  %v1573_v43 = vmul.f32 1.442695, %v1570_v8 }
 0x4ff   : >> { %1453 = vadd.xlane.f32.xlu1 %v1452_v47  ;;  %1450 = vadd.xlane.f32.xlu0 %v1449_v49  ;;  %v1578_v47 = vrot.slane %v1390_v45, %v3097_v25  ;;  %v1680_v49 = vrot.slane %v3556_v41, %v3432_v15  ;;  %2513 = vpow2.f32 %v1603_v57 }
 0x501   : >> { %v1580_v37 = vmul.f32 %v1578_v47, %v3148_v28 }
 0x503   : >> { %1473 = vadd.xlane.f32.xlu1 %v1472_v1  ;;  %1470 = vadd.xlane.f32.xlu0 %v1469_v60  ;;  %v1590_v1 = vmul.f32 %v1588_v59, %v3148_v28  ;;  %v2502_v60 = vpop.eup %2501 }
 0x504   : >> { %v2504_v15 = vpop.eup %2503  ;;  %v1684_v50 = vmul.f32 %v2751_v12, %v2502_v60  ;;  %v1583_v12 = vmul.f32 1.442695, %v1580_v37 }
 0x505   : >> { %v1593_v5 = vmul.f32 1.442695, %v1590_v1 }
 0x507   : >> { %1493 = vadd.xlane.f32.xlu1 %v1492_v3  ;;  %1490 = vadd.xlane.f32.xlu0 %v1489_v33  ;;  %v1591_v3 = vmul.f32 1.442695, %v1589_v63  ;;  %v1579_v33 = vmul.f32 %v1578_v47, %v3145_v27 }
 0x509   : >> { %2515 = vpow2.f32 %v1591_v3  ;;  %v1581_v32 = vmul.f32 1.442695, %v1579_v33 }
 0x50a   : >> { %2517 = vpow2.f32 %v1593_v5 }
 0x50b   : >> { %1513 = vadd.xlane.f32.xlu1 %v1512_v4  ;;  %1510 = vadd.xlane.f32.xlu0 %v1509_v7  ;;  %v1674_v4 = vrot.slane %v3556_v41, %v3435_v48  ;;  %2519 = vpow2.f32 %v1581_v32 }
 0x50c   : >> { %2521 = vpow2.f32 %v1583_v12 }
 0x50d   : >> { %2523 = vpow2.f32 %v1571_v39 }
 0x50e   : >> { %2525 = vpow2.f32 %v1573_v43 }
 0x50f   : >> { %1533 = vadd.xlane.f32.xlu1 %v1532_v9  ;;  %1530 = vadd.xlane.f32.xlu0 %v1529_v10 }
 0x513   : >> { %1553 = vadd.xlane.f32.xlu1 %v1552_v16  ;;  %1550 = vadd.xlane.f32.xlu0 %v1549_v20  ;;  %v1558_v16 = vrot.slane %v1390_v45, %v3091_v21  ;;  %v2506_v20 = vpop.eup %2505  ;;  %v1662_v45 = vrot.slane %v3556_v41, %v3453_v42 }
 0x514   : >> { %v2508_v29 = vpop.eup %2507 }
 0x515   : >> { %v1559_v44 = vmul.f32 %v1558_v16, %v3145_v27  ;;  %v2510_v31 = vpop.eup %2509  ;;  %v1560_v63 = vmul.f32 %v1558_v16, %v3148_v28 }
 0x516   : >> { %v2512_v36 = vpop.eup %2511 }
 0x517   : >> { %v1561_v47 = vmul.f32 1.442695, %v1559_v44  ;;  %v1638_v44 = vrot.slane %v3556_v41, %v3091_v21 }
 0x519   : >> { %2527 = vpow2.f32 %v1561_v47 }
 0x564   : >> { %v1545_v19 = vpop.xlane.xlu0 %1544  ;;  %v1525_v62 = vpop.xlane.xlu1 %1524 }
 0x565   : >> { %v1681_v52 = vmul.f32 %v1680_v49, %v1545_v19  ;;  %v1675_v6 = vmul.f32 %v1674_v4, %v1525_v62 }
 0x567   : >> { %v3570_v7 = vadd.f32 %v1683_v51, %v1681_v52  ;;  %v1650_v52 = vrot.slane %v3556_v41, %v3097_v25 }
 0x568   : >> { %v1548_v9 = vpop.xlane.xlu0 %1547  ;;  %v1528_v10 = vpop.xlane.xlu1 %1527 }
 0x569   : >> { %v1698_v48 = vmul.f32 %v2504_v15, %v3570_v7  ;;  %v1682_v22 = vmul.f32 %v1680_v49, %v1548_v9  ;;  %v1676_v56 = vmul.f32 %v1674_v4, %v1528_v10  ;;  %v2514_v49 = vpop.eup %2513  ;;  %v1563_v4 = vmul.f32 1.442695, %v1560_v63 }
 0x56a   : >> { %v2516_v19 = vpop.eup %2515 }
 0x56b   : >> { %v3578_v17 = vadd.f32 %v1698_v48, %v1675_v6  ;;  %v3580_v38 = vadd.f32 %v1684_v50, %v1682_v22  ;;  %v2518_v15 = vpop.eup %2517  ;;  %v1644_v6 = vrot.slane %v3556_v41, %v3094_v24  ;;  %2529 = vpow2.f32 %v1563_v4 }
 0x56c   : >> { %v1508_v55 = vpop.xlane.xlu1 %1507  ;;  %v1505_v30 = vpop.xlane.xlu0 %1504 }
 0x56d   : >> { %v1699_v34 = vmul.f32 %v2506_v20, %v3580_v38  ;;  %v1669_v11 = vmul.f32 %v1668_v23, %v1505_v30  ;;  %v1713_v35 = vmul.f32 %v2508_v29, %v3578_v17  ;;  %v1670_v51 = vmul.f32 %v1668_v23, %v1508_v55  ;;  %v2520_v10 = vpop.eup %2519 }
 0x56e   : >> { %v2522_v48 = vpop.eup %2521 }
 0x56f   : >> { %v3588_v59 = vadd.f32 %v1699_v34, %v1676_v56  ;;  %v3590_v0 = vadd.f32 %v1713_v35, %v1669_v11  ;;  %v2524_v8 = vpop.eup %2523 }
 0x570   : >> { %v1488_v46 = vpop.xlane.xlu1 %1487  ;;  %v1485_v42 = vpop.xlane.xlu0 %1484 }
 0x571   : >> { %v1714_v57 = vmul.f32 %v2510_v31, %v3588_v59  ;;  %v1663_v1 = vmul.f32 %v1662_v45, %v1485_v42  ;;  %v1728_v60 = vmul.f32 %v2512_v36, %v3590_v0  ;;  %v1664_v37 = vmul.f32 %v1662_v45, %v1488_v46  ;;  %v2526_v31 = vpop.eup %2525 }
 0x572   : >> { %v2528_v36 = vpop.eup %2527 }
 0x573   : >> { %v3597_v62 = vadd.f32 %v1714_v57, %v1670_v51  ;;  %v3599_v3 = vadd.f32 %v1728_v60, %v1663_v1 }
 0x574   : >> { %v1468_v33 = vpop.xlane.xlu1 %1467  ;;  %v1465_v61 = vpop.xlane.xlu0 %1464 }
 0x575   : >> { %v1729_v50 = vmul.f32 %v2514_v49, %v3597_v62  ;;  %v1657_v5 = vmul.f32 %v1656_v14, %v1465_v61  ;;  %v1743_v9 = vmul.f32 %v2516_v19, %v3599_v3  ;;  %v1658_v22 = vmul.f32 %v1656_v14, %v1468_v33  ;;  %v2530_v57 = vpop.eup %2529 }
 0x577   : >> { %v3605_v32 = vadd.f32 %v1729_v50, %v1664_v37  ;;  %v3607_v13 = vadd.f32 %v1743_v9, %v1657_v5 }
 0x578   : >> { %v1448_v16 = vpop.xlane.xlu1 %1447  ;;  %v1445_v20 = vpop.xlane.xlu0 %1444 }
 0x579   : >> { %v1744_v23 = vmul.f32 %v2518_v15, %v3605_v32  ;;  %v1651_v29 = vmul.f32 %v1650_v52, %v1445_v20  ;;  %v1758_v12 = vmul.f32 %v2520_v10, %v3607_v13  ;;  %v1652_v56 = vmul.f32 %v1650_v52, %v1448_v16 }
 0x57b   : >> { %v1746_v55 = vadd.f32 %v1744_v23, %v1658_v22  ;;  %v1760_v30 = vadd.f32 %v1758_v12, %v1651_v29 }
 0x57c   : >> { %v1428_v45 = vpop.xlane.xlu1 %1427  ;;  %v1425_v39 = vpop.xlane.xlu0 %1424 }
 0x57d   : >> { %v1759_v34 = vmul.f32 %v2522_v48, %v1746_v55  ;;  %v1645_v11 = vmul.f32 %v1644_v6, %v1425_v39  ;;  %v1773_v35 = vmul.f32 %v2524_v8, %v1760_v30  ;;  %v1646_v63 = vmul.f32 %v1644_v6, %v1428_v45 }
 0x57f   : >> { %v1761_v43 = vadd.f32 %v1759_v34, %v1652_v56  ;;  %v1775_v46 = vadd.f32 %v1773_v35, %v1645_v11 }
 0x580   : >> { %v1408_v42 = vpop.xlane.xlu1 %1407  ;;  %v1405_v14 = vpop.xlane.xlu0 %1404 }
 0x581   : >> { %v1774_v47 = vmul.f32 %v2526_v31, %v1761_v43  ;;  %v1639_v49 = vmul.f32 %v1638_v44, %v1405_v14  ;;  %v1788_v51 = vmul.f32 %v2528_v36, %v1775_v46  ;;  %v1640_v33 = vmul.f32 %v1638_v44, %v1408_v42 }
 0x583   : >> { %v1776_v1 = vadd.f32 %v1774_v47, %v1646_v63  ;;  %v3615_v37 = vadd.f32 %v1788_v51, %v1639_v49  }
 0x584   : >> { %v1414_v19 = vpop.xlane.xlu1 %1413  ;;  %v1411_v41 = vpop.xlane.xlu0 %1410 }
 0x585   : >> { %v3856_v60 = vmov %v3615_v37  ;;  %v1789_v61 = vmul.f32 %v2530_v57, %v1776_v1 }
 0x586   : >> { %v1792_v4 = vmul.f32 %v3856_v60, %v1411_v41  ;;  %1818 = vst.msk [vmem:[#allocation2] sm:$0xff] (%p1381_p11), %vm655_vm4, %v3856_v60 }
 0x587   : >> { %v3617_v12 = vadd.f32 %v1789_v61, %v1640_v33  }
 0x588   : >> { %v1434_v15 = vpop.xlane.xlu1 %1433  ;;  %v1431_v50 = vpop.xlane.xlu0 %1430  ;;  %v1794_v20 = vsel %vm655_vm4, %v1792_v4, 0.0 }
 0x589   : >> { %v3857_v52 = vmov %v3617_v12  ;;  %v1778_v9 = vmul.f32 %v1776_v1, %v1434_v15  ;;  %v1777_v10 = vmul.f32 %v1775_v46, %v1431_v50 }
 0x58a   : >> { %v1793_v5 = vmul.f32 %v3857_v52, %v1414_v19  ;;  %1819 = vst.msk [vmem:[#allocation2 + $0x8] sm:$0xff] (%p1381_p11), %vm655_vm4, %v3857_v52 }
 0x58b   : >> { %v1780_v37 = vsel %vm655_vm4, %v1778_v9, 0.0  ;;  %v1779_v6 = vsel %vm655_vm4, %v1777_v10, 0.0 }
 0x58c   : >> { %v1795_v16 = vsel %vm655_vm4, %v1793_v5, 0.0  ;;  %v1781_v22 = vadd.f32 %v1780_v37, %v1779_v6  ;;  %v1454_v23 = vpop.xlane.xlu1 %1453  ;;  %v1451_v29 = vpop.xlane.xlu0 %1450 }
 0x58d   : >> { %v1796_v48 = vadd.f32 %v1795_v16, %v1794_v20  ;;  %v1763_v12 = vmul.f32 %v1761_v43, %v1454_v23  ;;  %v1762_v8 = vmul.f32 %v1760_v30, %v1451_v29 }
 0x58e   : >> { %v1782_v39 = vrot.slane %v1781_v22, 4 }
 0x58f   : >> { %v1797_v45 = vrot.slane %v1796_v48, 4  ;;  %v1765_v44 = vsel %vm655_vm4, %v1763_v12, 0.0  ;;  %v1764_v31 = vsel %vm655_vm4, %v1762_v8, 0.0 }
 0x590   : >> { %v1783_v34 = vadd.f32 %v1782_v39, %v1781_v22  ;;  %v1766_v11 = vadd.f32 %v1765_v44, %v1764_v31  ;;  %v1474_v35 = vpop.xlane.xlu1 %1473  ;;  %v1471_v36 = vpop.xlane.xlu0 %1470 }
 0x591   : >> { %v1798_v56 = vadd.f32 %v1797_v45, %v1796_v48  ;;  %v1748_v46 = vmul.f32 %v1746_v55, %v1474_v35  ;;  %v1747_v42 = vmul.f32 %v3607_v13, %v1471_v36 }
 0x592   : >> { %v1784_v63 = vrot.slane %v1783_v34, 2  ;;  %v1767_v47 = vrot.slane %v1766_v11, 4 }
 0x593   : >> { %v1799_v14 = vrot.slane %v1798_v56, 2  ;;  %v1750_v43 = vsel %vm655_vm4, %v1748_v46, 0.0  ;;  %v1749_v30 = vsel %vm655_vm4, %v1747_v42, 0.0 }
 0x594   : >> { %v1785_v51 = vadd.f32 %v1784_v63, %v1783_v34  ;;  %v1768_v57 = vadd.f32 %v1767_v47, %v1766_v11  ;;  %v1751_v1 = vadd.f32 %v1750_v43, %v1749_v30  ;;  %v1494_v19 = vpop.xlane.xlu1 %1493  ;;  %v1491_v41 = vpop.xlane.xlu0 %1490 }
 0x595   : >> { %v1800_v49 = vadd.f32 %v1799_v14, %v1798_v56  ;;  %v1733_v33 = vmul.f32 %v3605_v32, %v1494_v19  ;;  %v1732_v61 = vmul.f32 %v3599_v3, %v1491_v41 }
 0x596   : >> { %v1786_v4 = vrot.slane %v1785_v51, 1  ;;  %v1769_v13 = vrot.slane %v1768_v57, 2  ;;  %v1752_v15 = vrot.slane %v1751_v1, 4 }
 0x597   : >> { %v1801_v55 = vrot.slane %v1800_v49, 1  ;;  %v1735_v50 = vsel %vm655_vm4, %v1733_v33, 0.0  ;;  %v1734_v5 = vsel %vm655_vm4, %v1732_v61, 0.0 }
 0x598   : >> { %v1787_v10 = vadd.f32 %v1786_v4, %v1785_v51  ;;  %v1770_v16 = vadd.f32 %v1769_v13, %v1768_v57  ;;  %v1753_v20 = vadd.f32 %v1752_v15, %v1751_v1  ;;  %v1514_v37 = vpop.xlane.xlu1 %1513  ;;  %v1511_v6 = vpop.xlane.xlu0 %1510  ;;  %v1736_v48 = vadd.f32 %v1735_v50, %v1734_v5 }
 0x599   : >> { %v1802_v9 = vadd.f32 %v1801_v55, %v1800_v49  ;;  %v1718_v22 = vmul.f32 %v3597_v62, %v1514_v37  ;;  %v1717_v32 = vmul.f32 %v3590_v0, %v1511_v6 }
 0x59a   : >> { %v1771_v23 = vrot.slane %v1770_v16, 1  ;;  %v1754_v29 = vrot.slane %v1753_v20, 2  ;;  %v1737_v12 = vrot.slane %v1736_v48, 4 }
 0x59b   : >> { %v1803_v3 = vsel %vm831_vm12, %v1802_v9, %v1787_v10  ;;  %v1720_v8 = vsel %vm655_vm4, %v1718_v22, 0.0  ;;  %v1719_v45 = vsel %vm655_vm4, %v1717_v32, 0.0 }
 0x59c   : >> { %v1772_v39 = vadd.f32 %v1771_v23, %v1770_v16  ;;  %v1755_v44 = vadd.f32 %v1754_v29, %v1753_v20  ;;  %v1721_v31 = vadd.f32 %v1720_v8, %v1719_v45  ;;  %v1534_v56 = vpop.xlane.xlu1 %1533  ;;  %v1531_v34 = vpop.xlane.xlu0 %1530  ;;  %v1738_v11 = vadd.f32 %v1737_v12, %v1736_v48 }
 0x59d   : >> { %v1703_v62 = vmul.f32 %v3588_v59, %v1534_v56  ;;  %v1702_v0 = vmul.f32 %v3578_v17, %v1531_v34 }
 0x59e   : >> { %v1805_v35 = vsel %vm1804_vm9, %v1803_v3, %v1772_v39  ;;  %v1756_v36 = vrot.slane %v1755_v44, 1  ;;  %v1722_v46 = vrot.slane %v1721_v31, 4  ;;  %v1739_v42 = vrot.slane %v1738_v11, 2 }
 0x59f   : >> { %v1705_v14 = vsel %vm655_vm4, %v1703_v62, 0.0  ;;  %v1704_v63 = vsel %vm655_vm4, %v1702_v0, 0.0 }
 0x5a0   : >> { %v1757_v47 = vadd.f32 %v1756_v36, %v1755_v44  ;;  %v1723_v43 = vadd.f32 %v1722_v46, %v1721_v31  ;;  %v1706_v30 = vadd.f32 %v1705_v14, %v1704_v63  ;;  %v1554_v49 = vpop.xlane.xlu1 %1553  ;;  %v1551_v51 = vpop.xlane.xlu0 %1550  ;;  %v1740_v57 = vadd.f32 %v1739_v42, %v1738_v11 }
 0x5a1   : >> { %v1688_v1 = vmul.f32 %v3580_v38, %v1554_v49  ;;  %v1687_v59 = vmul.f32 %v3570_v7, %v1551_v51 }
 0x5a2   : >> { %v1807_v17 = vsel %vm1806_vm10, %v1805_v35, %v1757_v47  ;;  %v1724_v19 = vrot.slane %v1723_v43, 2  ;;  %v1707_v41 = vrot.slane %v1706_v30, 4  ;;  %v1741_v33 = vrot.slane %v1740_v57, 1 }
 0x5a3   : >> { %v1690_v61 = vsel %vm655_vm4, %v1688_v1, 0.0  ;;  %v1689_v55 = vsel %vm655_vm4, %v1687_v59, 0.0 }
 0x5a4   : >> { %v1725_v4 = vadd.f32 %v1724_v19, %v1723_v43  ;;  %v1708_v13 = vadd.f32 %v1707_v41, %v1706_v30  ;;  %v1691_v15 = vadd.f32 %v1690_v61, %v1689_v55  ;;  %v1742_v50 = vadd.f32 %v1741_v33, %v1740_v57 }
 0x5a6   : >> { %v1726_v5 = vrot.slane %v1725_v4, 1  ;;  %v1709_v9 = vrot.slane %v1708_v13, 2  ;;  %v1692_v10 = vrot.slane %v1691_v15, 4  ;;  %v1809_v16 = vsel %vm1808_vm11, %v1807_v17, %v1742_v50 }
 0x5a8   : >> { %v1727_v7 = vadd.f32 %v1726_v5, %v1725_v4  ;;  %v1710_v38 = vadd.f32 %v1709_v9, %v1708_v13  ;;  %v1693_v20 = vadd.f32 %v1692_v10, %v1691_v15 }
 0x5aa   : >> { %v1811_v37 = vsel %vm1810_vm13, %v1809_v16, %v1727_v7  ;;  %v1711_v6 = vrot.slane %v1710_v38, 1  ;;  %v1694_v48 = vrot.slane %v1693_v20, 2 }
 0x5ac   : >> { %v1712_v22 = vadd.f32 %v1711_v6, %v1710_v38  ;;  %v1695_v32 = vadd.f32 %v1694_v48, %v1693_v20 }
 0x5ad   : > { %1383 = sbr.rel (!%p1381_p11) target bundleno = 1230 (0x4ce), region = 179 }
 0x5ae   : >> { %v1813_v3 = vsel %vm1812_vm14, %v1811_v37, %v1712_v22  ;;  %v1696_v23 = vrot.slane %v1695_v32, 1  ;;  %v3859_v37 = vmov %v3856_v60 }
 0x5b0   : >> { %v1697_v29 = vadd.f32 %v1696_v23, %v1695_v32 }
 0x5b2   : >> { %v1815_v12 = vsel %vm1814_vm15, %v1813_v3, %v1697_v29 }
 0x5b3   : >> { %1817 = vst.msk [vmem:[%s1816_s4] sm:$0xff] %vm655_vm4, %v1815_v12  ;;  %v3858_v12 = vmov %v3857_v52 }
 0x5b4 PF: > { %2260 = vmatprep.subr.bf16.mxu0 %v2763_v2  ;;  %s3860_s5 = sld [smem:[#allocation41_spill]]  ;;  %2268 = vmatprep.mubr.msk.bf16.mxu0 %vm2764_vm2, %v2763_v2  ;;  %v1822_v21 = vld [vmem:[#allocation8] sm:$0xff]  ;;  %v1823_v24 = vld [vmem:[#allocation8 + $0x8] sm:$0xff]  ;;  %v1820_v45 = vld [vmem:[#allocation7] sm:$0xff]  ;;  %s3861_s0 = sld [smem:[#allocation29_spill]] }
 0x5b5   : > { %v1837_v25 = vsub.f32 0.0, %v1822_v21  ;;  %v1838_v40 = vsub.f32 0.0, %v1823_v24  ;;  %v2203_v39 = vld [vmem:[%s2997_s23] ss:$0 sm:$0xff]  ;;  %v1821_v44 = vld [vmem:[#allocation7 + $0x8] sm:$0xff]  ;;  %s2212_s23 = sshll.u32 %s2715_s20, 2 }
 0x5b6   : > { %v1833_v31 = vmul.f32 %v2203_v39, %v1820_v45  ;;  %v1834_v34 = vmul.f32 %v2203_v39, %v1821_v44  ;;  %s1949_s26 = sadd.s32 %s2212_s23, %s3011_s10  ;;  %s2213_s16 = sshll.u32 %s2719_s21, 3 }
 0x5b7   : > { %v1839_v53 = vmul.f32 1.442695, %v1837_v25  ;;  %v1841_v54 = vmul.f32 1.442695, %v1838_v40  ;;  %s1951_s11 = sadd.s32 %s2213_s16, %s1949_s26  ;;  %s1954_s28 = sshll.u32 %s3053_s18, 4  ;;  %s3691_s28 = int_to_ptr.vmem [resolvable:$true] %s1954_s28 }
 0x5b8   : > { %s2214_s7 = sshll.u32 %s1951_s11, 7  ;;  %s3862_s27 = sld [smem:[#allocation42_spill]] }
 0x5b9   : > { %2535 = vpow2.f32 %v1839_v53  ;;  %s3863_s20 = sand.u32 1, %s2691_s14   ;;  %s2573_s10 = scalar_lea.vmem %s3691_s28, 256 }
 0x5ba   : > { %v2531_v8 = vld [vmem:[%s3860_s5] sm:$0xff]   ;;  %v2532_v18 = vld [vmem:[%s3860_s5 + $0x8] sm:$0xff]   ;;  %v2533_v26 = vld [vmem:[%s3860_s5 + $0x10] sm:$0xff]   ;;  %2537 = vpow2.f32 %v1841_v54  ;;  %s3699_s21 = scalar_lea.sflag [#allocation13], %s3863_s20  ;;  %p2574_p6 = scmp.ne.s32.totalorder %s3691_s28, %s2573_s10 }
 0x5bb   : > { %2261 = vmatpush3.bf16.msra.mxu0 %v2531_v8  ;;  %v2534_v58 = vld [vmem:[%s3860_s5 + $0x18] sm:$0xff]   ;;  %v1825_v11 = vld [vmem:[#allocation10 + $0x8] sm:$0xff]  ;;  %p3864_p13 = scmp.ne.s32.totalorder %s3861_s0, 0  ;;  %s2767_s13 = smov [#allocation14]  }
 0x5bc   : > { %2262 = vmatprep.subr.bf16.mxu0 %v2763_v2  ;;  %v1824_v56 = vld [vmem:[#allocation10] sm:$0xff]  ;;  %v1836_v0 = vadd.f32 %v1834_v34, %v1825_v11  ;;  %s2577_s15 = sshll.u32 %s2767_s13, 4  ;;  %s2578_s15 = int_to_ptr.vmem [resolvable:$false] %s2577_s15 }
 0x5bd   : > { %v1835_v62 = vadd.f32 %v1833_v31, %v1824_v56  ;;  %p2575_p1 = pnand %p2574_p6, %p3864_p13  ;;  %s2579_s25 = scalar_lea.vmem %s2578_s15, 512 }
 0x5be   : > { %s3689_s22 = scalar_lea.hbm %s3862_s27, %s2214_s7  ;;  %p2580_p8 = scmp.lt.s32.totalorder %s3691_s28, %s2578_s15 }
 0x5bf   : > { %2263 = vmatpush3.bf16.msra.mxu0 %v2532_v18  ;;  %p2576_p5 = pneg %p2575_p1  ;;  %p2581_p10 = scmp.lt.s32.totalorder %s2579_s25, %s2573_s10 }
 0x5c0   : > { %2264 = vmatprep.subr.bf16.mxu0 %v2763_v2 }
 0x5c1   : > { %p2582_p0 = por %p2581_p10, %p2580_p8 }
 0x5c3   : > { %2265 = vmatpush3.bf16.msra.mxu0 %v2533_v26  ;;  %v2536_v27 = vpop.eup %2535  ;;  %p2583_p2 = pnand %p2582_p0, %p2576_p5 }
 0x5c4   : > { %2266 = vmatprep.subr.bf16.mxu0 %v2763_v2  ;;  %v2538_v28 = vpop.eup %2537  ;;  %v1843_v60 = vadd.f32 1.0, %v2536_v27 }
 0x5c5   : > { %v1844_v52 = vadd.f32 1.0, %v2538_v28 }
 0x5c6   : > { %2539 = vrcp.f32 %v1843_v60 }
 0x5c7   : > { %2267 = vmatpush3.bf16.msra.mxu0 %v2534_v58  ;;  %2541 = vrcp.f32 %v1844_v52 }
 0x5d0   : > { %v2540_v2 = vpop.eup %2539 }
 0x5d1   : > { %v2542_v35 = vpop.eup %2541  ;;  %v1849_v36 = vmul.f32 %v2540_v2, %v1822_v21 }
 0x5d2   : > { %v1850_v46 = vmul.f32 %v2542_v35, %v1823_v24 }
 0x5d3   : > { %v1851_v42 = vmul.f32 %v1849_v36, %v1835_v62 }
 0x5d4   : > { %v1852_v14 = vmul.f32 %v1850_v46, %v1836_v0 }
 0x5d6   : > { %v1853_v63 = vpack.c.bf16 %v1852_v14, %v1851_v42 }
 0x5d8   : > { %2269 = vmatmul.mubr.msk.bf16.vlgmr.msra.gmra.mrb[4].mxu0 %vm655_vm4, %v1853_v63 }
 0x6ab   : > { %v1923_v47 = vpop.f32.mrb[4].mxu0 }
 0x6ac   : > { %1930 = vst.msk [vmem:[%s3053_s18] sm:$0xff] %vm602_vm3, %v1923_v47  ;;  %v2270_v43 = vpop.f32.mrb[5].mxu0 }
 0x6ad   : > { %v1926_v30 = vpop.f32.mrb[6].mxu0 }
 0x6ae   : > { %1931 = vst.msk [vmem:[%s3053_s18 + $0x8] sm:$0xff] %vm602_vm3, %v1926_v30  ;;  %v2271_v49 = vpop.f32.mrb[7].mxu0 }
 0x6af   : > { %2586 = shalt.err (!%p2583_p2)
}
 0x6b0   : > { %s2587_s18 = scalar_lea.hbm %s3689_s22, 256  ;;  %s2591_s19 = scalar_lea.hbm %s3862_s27, 2048 }
 0x6b1   : > { %p2588_p7 = scmp.ne.s32.totalorder %s3689_s22, %s2587_s18  ;;  %p2592_p3 = scmp.lt.u32.totalorder %s3689_s22, %s3862_s27 }
 0x6b2   : > { %p2593_p9 = scmp.lt.u32.totalorder %s2591_s19, %s2587_s18  ;;  %p2595_p6 = scmp.lt.u32.totalorder %s2587_s18, %s3689_s22 }
 0x6b3   : > { %p2589_p4 = pnand %p2588_p7, %p3864_p13 }
 0x6b4   : > { %p2594_p11 = por %p2593_p9, %p2592_p3 }
 0x6b5   : > { %p2590_p12 = pneg %p2589_p4 }
 0x6b6   : > { %p2596_p1 = por %p2595_p6, %p2594_p11 }
 0x6b8   : > { %p2597_p5 = pnand %p2596_p1, %p2590_p12 }
 0x6ba   : > { %2600 = shalt.err (!%p2597_p5)
}
 0x6bb   : > { %s2768_s17 = smov 128   ;;  %s2769_s2 = smov 8  }
 0x6bc   : > { %2274 = dma.vmem_to_hbm [thread:$0]  (%p3864_p13), %s3691_s28, 256, %s3689_s22, %s3699_s21, %s2768_s17, %s2768_s17, %s2769_s2  }
 0x6bd PF: > { %s3865_s1 = sld [smem:[#allocation24_spill]]  ;;  %s3866_s9 = sld [smem:[#allocation17_spill]] }
 0x6be   : > { %s3867_s12 = sld [smem:[#allocation31_spill]] }
 0x6c3   : > { %p2285_p8 = scmp.ge.s32.totalorder %s3865_s1, 2  ;;  %s1969_s23 = sand.u32 1, %s3866_s9  }
 0x6c4   : > { %p3868_p10 = scmp.ne.s32.totalorder %s3867_s12, 0  ;;  %s1970_s26 = scalar_lea.sflag [#allocation13], %s1969_s23 }
 0x6c6   : > { %p2281_p0 = pnand %p2285_p8, %p3868_p10 }
 0x6c8   : > { %2682 = dma.done.wait (!%p2281_p0), %s1970_s26, 256  }
 0x6c9   : > { %2684 = vsyncadd (!%p2281_p0), %s1970_s26, 4294967040  ;;  %s26_s25 = sadd.s32 1, %s3865_s1   ;;  %s3870_s0 = sld [smem:[#allocation18_spill]] }
 0x6ca   : > { %p3728_p2 = scmp.ge.s32.totalorder %s26_s25, 10   ;;  %s3871_s15 = sld [smem:[#allocation30_spill]] }
 0x6cb   : > { %s3872_s11 = sld [smem:[#allocation19_spill]]  ;;  %s3873_s17 = sld [smem:[#allocation20_spill]] }
 0x6cc   : > { %s3874_s18 = sld [smem:[#allocation28_spill]]  ;;  %s3875_s19 = sld [smem:[#allocation21_spill]] }
 0x6cd   : > { %s3876_s20 = sld [smem:[#allocation22_spill]]  ;;  %s3877_s21 = sld [smem:[#allocation23_spill]] }
 0x6ce   : > { %s3878_s22 = sld [smem:[#allocation25_spill]]  ;;  %s3879_s23 = sld [smem:[#allocation26_spill]] }
 0x6cf   : > { %s3880_s24 = sld [smem:[#allocation27_spill]]  ;;  %s3882_s13 = smov %s2691_s14 }
 0x6d0   : > { %s3883_s14 = smov %s3870_s0  ;;  %25 = sbr.rel (!%p3728_p2) target bundleno = 22 (0x16), region = 190 }
 0x6d1   : > { %s3884_s16 = smov %s3872_s11 }
 0x6d7   :  { %1975 = vsyncpa [#allocation12], 1 }
 0x6d8   :  { %1977 = vsyncpa [#allocation12 + $0x1], 1 }
 0x6d9   :  { %1978 = vsyncpa [#allocation13], 1 }
 0x6da   :  { %1980 = vsyncpa [#allocation13 + $0x1], 1 }

</bundles_post_ra>
